<compile_context>
chip_gen: v6e
topology: v6e:2x2x1
jax: 0.10.0
libtpu: 0.0.40
codegen_flags: <defaults>
</compile_context>

<pallas_src>
import functools
import math

import jax
import jax.numpy as jnp
from jax import lax
from jax.experimental import pallas as pl
from jax.experimental.pallas import tpu as pltpu


def _sstcn_kernel(x_ref, mask_ref, pos_ref,
                  w_in_ref, b_in_ref,
                  wd_ref, bd_ref,
                  w1_ref, b1_ref, bn_s_ref, bn_b_ref,
                  w_out_ref, b_out_ref,
                  o_ref, *, dilations, seq_len):
    x = x_ref[0].astype(jnp.float32)       # [dim, N]   (time/batch folded on lanes)
    m = mask_ref[0].astype(jnp.float32)    # [1, N]
    C = w_in_ref.shape[0]
    N = x.shape[-1]

    # Hoisted once (JAX does not CSE broadcast_in_dim).
    pos = pos_ref[...]                                 # [1, N] int32: t within its sequence
    posC = jnp.broadcast_to(pos, (C, N))               # for the shift boundary masks
    mC = jnp.broadcast_to(m, (C, N))                   # for the residual mask multiply

    # conv_1x1: dim -> C
    out = jnp.dot(w_in_ref[...], x, preferred_element_type=jnp.float32) + b_in_ref[...]

    for l, d in enumerate(dilations):
        # Dilated conv (k=3, padding=d, dilation=d): taps at t-d, t, t+d.
        # Circular roll on the XLU + zeroing of lanes whose tap falls outside the
        # sequence (also kills cross-sequence leakage when batch is folded on lanes).
        left = jnp.where(posC >= d, pltpu.roll(out, d, axis=1), 0.0)           # out[:, t-d]
        right = jnp.where(posC < seq_len - d, pltpu.roll(out, N - d, axis=1), 0.0)  # out[:, t+d]
        xs = jnp.concatenate([left, out, right], axis=0)                        # [3C, N]
        h = jnp.dot(wd_ref[l], xs, preferred_element_type=jnp.float32) + bd_ref[l]
        h = jnp.maximum(h, 0.0)                                                  # F.relu
        h = jnp.dot(w1_ref[l], h, preferred_element_type=jnp.float32) + b1_ref[l]
        h = jnp.maximum(h, 0.2 * h)                                              # LeakyReLU(0.2)
        h = h * bn_s_ref[l] + bn_b_ref[l]                                        # BatchNorm1d (eval)
        # Dropout(0.5): identity in eval mode.
        out = (out + h) * mC

    y = jnp.dot(w_out_ref[...], out, preferred_element_type=jnp.float32) + b_out_ref[...]
    o_ref[0] = (y * m).astype(o_ref.dtype)


def _tensorcores_per_chip():
    """How many TensorCores a 'parallel' grid axis can shard across (v7x: 2)."""
    try:
        kind = jax.devices()[0].device_kind.lower()
    except Exception:
        return 1
    return 2 if ("v7" in kind or "7x" in kind) else 1


def single_stage_model(x, mask, params, dilations, batch_per_block=None):
    """x: [B, dim, T]; mask: [B, T]; returns [B, num_classes, T]."""
    B, dim, T = x.shape
    C = params["w_in"].shape[0]
    ncls = params["w_out"].shape[0]
    L = len(dilations)
    assert max(dilations) < T, "dilation must be smaller than the sequence length"

    if batch_per_block is None:
        # Single-TC chips (v5e/v6e): fold the whole batch onto lanes -> grid=(1,), wider N.
        # v7x (2 TCs): keep one batch element per grid step so "parallel" feeds both cores.
        batch_per_block = 1 if _tensorcores_per_chip() > 1 else B
    bpb = max(1, min(int(batch_per_block), B))
    while B % bpb:
        bpb -= 1
    G = B // bpb
    N = bpb * T

    # Fold batch onto the lane axis: [B, dim, T] -> [G, dim, bpb*T] (batch-major, time-minor).
    if bpb == 1:
        xf = x
        mf = mask.reshape(B, 1, T)
    else:
        xf = x.reshape(G, bpb, dim, T).transpose(0, 2, 1, 3).reshape(G, dim, N)
        mf = mask.reshape(G, 1, N)
    pos = jnp.broadcast_to(jnp.arange(T, dtype=jnp.int32)[None, :], (bpb, T)).reshape(1, N)

    # Stack the three k=3 taps into one [C, 3C] weight per layer -> single K=3C MXU matmul.
    wd = jnp.concatenate([params["wdm"], params["wdc"], params["wdp"]], axis=-1)

    def full(a):
        return pl.BlockSpec(a.shape, lambda b, _nd=a.ndim: (0,) * _nd)

    kernel = functools.partial(_sstcn_kernel,
                               dilations=tuple(int(d) for d in dilations),
                               seq_len=T)

    flops = 2 * B * T * (dim * C + L * 4 * C * C + C * ncls)
    bytes_accessed = 4 * (int(x.size) + int(mask.size) + B * ncls * T + int(wd.size)
                          + sum(int(p.size) for k, p in params.items()
                                if k not in ("wdm", "wdc", "wdp")))

    yf = pl.pallas_call(
        kernel,
        out_shape=jax.ShapeDtypeStruct((G, ncls, N), x.dtype),
        grid=(G,),
        in_specs=[
            pl.BlockSpec((1, dim, N), lambda b: (b, 0, 0)),   # x (one lane-folded block)
            pl.BlockSpec((1, 1, N), lambda b: (b, 0, 0)),     # mask
            full(pos),                                        # position within sequence
            full(params["w_in"]), full(params["b_in"]),
            full(wd), full(params["bd"]),
            full(params["w1"]), full(params["b1"]),
            full(params["bn_scale"]), full(params["bn_shift"]),
            full(params["w_out"]), full(params["b_out"]),
        ],
        out_specs=pl.BlockSpec((1, ncls, N), lambda b: (b, 0, 0)),
        compiler_params=pltpu.CompilerParams(dimension_semantics=("parallel",)),
        cost_estimate=pl.CostEstimate(flops=flops, transcendentals=0,
                                      bytes_accessed=bytes_accessed),
    )(xf, mf, pos,
      params["w_in"], params["b_in"],
      wd, params["bd"],
      params["w1"], params["b1"],
      params["bn_scale"], params["bn_shift"],
      params["w_out"], params["b_out"])

    if bpb == 1:
        return yf
    return yf.reshape(G, ncls, bpb, T).transpose(0, 2, 1, 3).reshape(B, ncls, T)


def init_params(key, num_layers, num_f_maps, dim, num_classes):
    """PyTorch-style (kaiming-uniform-ish) init; conv weights stored (out, in)."""
    C, L = num_f_maps, num_layers
    keys = iter(jax.random.split(key, 16))

    def u(k, shape, fan_in):
        bound = 1.0 / math.sqrt(fan_in)
        return jax.random.uniform(k, shape, jnp.float32, -bound, bound)

    w_in = u(next(keys), (C, dim), dim)
    b_in = u(next(keys), (C, 1), dim)
    # Dilated conv (k=3) taps: [t-d, t, t+d] stored as three stacked [L, C, C] matrices.
    wdm = u(next(keys), (L, C, C), 3 * C)
    wdc = u(next(keys), (L, C, C), 3 * C)
    wdp = u(next(keys), (L, C, C), 3 * C)
    bd = u(next(keys), (L, C, 1), 3 * C)
    w1 = u(next(keys), (L, C, C), C)
    b1 = u(next(keys), (L, C, 1), C)
    # BatchNorm1d eval-mode parameters folded into per-channel scale/shift.
    gamma = 1.0 + 0.1 * jax.random.normal(next(keys), (L, C, 1), jnp.float32)
    beta = 0.1 * jax.random.normal(next(keys), (L, C, 1), jnp.float32)
    rmean = 0.1 * jax.random.normal(next(keys), (L, C, 1), jnp.float32)
    rvar = 1.0 + 0.1 * jax.random.uniform(next(keys), (L, C, 1), jnp.float32)
    eps = 1e-5
    bn_scale = gamma / jnp.sqrt(rvar + eps)
    bn_shift = beta - rmean * bn_scale
    w_out = u(next(keys), (num_classes, C), C)
    b_out = u(next(keys), (num_classes, 1), C)
    return dict(w_in=w_in, b_in=b_in, wdm=wdm, wdc=wdc, wdp=wdp, bd=bd,
                w1=w1, b1=b1, bn_scale=bn_scale, bn_shift=bn_shift,
                w_out=w_out, b_out=b_out)


def reference(x, mask, p, dilations):
    """Pure-JAX reference mirroring the PyTorch forward (eval mode)."""
    def shift(a, d):
        T = a.shape[-1]
        if d > 0:
            return jnp.pad(a, ((0, 0), (0, 0), (d, 0)))[..., :T]
        if d < 0:
            return jnp.pad(a, ((0, 0), (0, 0), (0, -d)))[..., -d:]
        return a

    dot = functools.partial(jnp.einsum, precision=lax.Precision.HIGHEST)
    m = mask[:, None, :]
    out = dot('oc,bct->bot', p["w_in"], x) + p["b_in"][None]
    for l, d in enumerate(dilations):
        h = (dot('oc,bct->bot', p["wdm"][l], shift(out, d))
             + dot('oc,bct->bot', p["wdc"][l], out)
             + dot('oc,bct->bot', p["wdp"][l], shift(out, -d))
             + p["bd"][l][None])
        h = jnp.maximum(h, 0.0)
        h = dot('oc,bct->bot', p["w1"][l], h) + p["b1"][l][None]
        h = jnp.where(h > 0, h, 0.2 * h)
        h = h * p["bn_scale"][l][None] + p["bn_shift"][l][None]
        out = (out + h) * m
    y = (dot('oc,bct->bot', p["w_out"], out) + p["b_out"][None]) * m
    return y


if __name__ == "__main__":
    # SingleStageModel(num_layers=4, num_f_maps=32, dim=32, num_classes=16)
    num_layers, num_f_maps, dim, num_classes = 4, 32, 32, 16
    B, T = 2, 256                      # T multiple of 128 -> lane-dense tiles
    dilations = tuple(2 ** i for i in range(num_layers))

    key = jax.random.PRNGKey(0)
    kx, km, kp = jax.random.split(key, 3)
    x = jax.random.normal(kx, (B, dim, T), dtype=jnp.float32)
    mask = (jax.random.uniform(km, (B, T)) < 0.9).astype(jnp.float32)
    params = init_params(kp, num_layers, num_f_maps, dim, num_classes)

    fwd = jax.jit(lambda x_, m_, p_: single_stage_model(x_, m_, p_, dilations))
    out = jax.block_until_ready(fwd(x, mask, params))

    ref = reference(x, mask, params, dilations)
    assert out.shape == (B, num_classes, T)
    max_err = float(jnp.max(jnp.abs(out - ref)))
    assert jnp.allclose(out, ref, atol=1e-4, rtol=1e-4), f"mismatch vs reference: {max_err}"

    print("KERNEL_OK")
</pallas_src>

<mosaic_0001>
module attributes {stable_mosaic.version = 11 : i64} {
  func.func @_sstcn_kernel(%arg0: i32, %arg1: memref<1x32x512xf32, #tpu.memory_space<vmem>>, %arg2: memref<1x1x512xf32, #tpu.memory_space<vmem>>, %arg3: memref<1x512xi32, #tpu.memory_space<vmem>>, %arg4: memref<32x32xf32, #tpu.memory_space<vmem>>, %arg5: memref<32x1xf32, #tpu.memory_space<vmem>>, %arg6: memref<4x32x96xf32, #tpu.memory_space<vmem>>, %arg7: memref<4x32x1xf32, #tpu.memory_space<vmem>>, %arg8: memref<4x32x32xf32, #tpu.memory_space<vmem>>, %arg9: memref<4x32x1xf32, #tpu.memory_space<vmem>>, %arg10: memref<4x32x1xf32, #tpu.memory_space<vmem>>, %arg11: memref<4x32x1xf32, #tpu.memory_space<vmem>>, %arg12: memref<16x32xf32, #tpu.memory_space<vmem>>, %arg13: memref<16x1xf32, #tpu.memory_space<vmem>>, %arg14: memref<1x16x512xf32, #tpu.memory_space<vmem>>) attributes {dimension_semantics = [#tpu.dimension_semantics<parallel>], iteration_bounds = array<i64: 1>, scalar_prefetch = 0 : i64, scratch_operands = 0 : i64, tpu.core_type = #tpu.core_type<tc>, window_params = [{transform_indices = @transform_0, window_bounds = array<i64: 1, 32, 512>}, {transform_indices = @transform_1, window_bounds = array<i64: 1, 1, 512>}, {pipeline_mode = #tpu.pipeline_mode<synchronous>, transform_indices = @transform_2, window_bounds = array<i64: 1, 512>}, {pipeline_mode = #tpu.pipeline_mode<synchronous>, transform_indices = @transform_3, window_bounds = array<i64: 32, 32>}, {pipeline_mode = #tpu.pipeline_mode<synchronous>, transform_indices = @transform_4, window_bounds = array<i64: 32, 1>}, {pipeline_mode = #tpu.pipeline_mode<synchronous>, transform_indices = @transform_5, window_bounds = array<i64: 4, 32, 96>}, {pipeline_mode = #tpu.pipeline_mode<synchronous>, transform_indices = @transform_6, window_bounds = array<i64: 4, 32, 1>}, {pipeline_mode = #tpu.pipeline_mode<synchronous>, transform_indices = @transform_7, window_bounds = array<i64: 4, 32, 32>}, {pipeline_mode = #tpu.pipeline_mode<synchronous>, transform_indices = @transform_8, window_bounds = array<i64: 4, 32, 1>}, {pipeline_mode = #tpu.pipeline_mode<synchronous>, transform_indices = @transform_9, window_bounds = array<i64: 4, 32, 1>}, {pipeline_mode = #tpu.pipeline_mode<synchronous>, transform_indices = @transform_10, window_bounds = array<i64: 4, 32, 1>}, {pipeline_mode = #tpu.pipeline_mode<synchronous>, transform_indices = @transform_11, window_bounds = array<i64: 16, 32>}, {pipeline_mode = #tpu.pipeline_mode<synchronous>, transform_indices = @transform_12, window_bounds = array<i64: 16, 1>}, {transform_indices = @transform_13, window_bounds = array<i64: 1, 16, 512>}]} {
    %c0 = arith.constant 0 : index
    %c0_0 = arith.constant 0 : index
    %c0_1 = arith.constant 0 : index
    %0 = vector.load %arg1[%c0, %c0_0, %c0_1] : memref<1x32x512xf32, #tpu.memory_space<vmem>>, vector<1x32x512xf32>
    %1 = vector.shape_cast %0 : vector<1x32x512xf32> to vector<32x512xf32>
    %c0_2 = arith.constant 0 : index
    %c0_3 = arith.constant 0 : index
    %c0_4 = arith.constant 0 : index
    %2 = vector.load %arg2[%c0_2, %c0_3, %c0_4] : memref<1x1x512xf32, #tpu.memory_space<vmem>>, vector<1x1x512xf32>
    %3 = vector.shape_cast %2 : vector<1x1x512xf32> to vector<1x512xf32>
    %c0_5 = arith.constant 0 : index
    %c0_6 = arith.constant 0 : index
    %4 = vector.load %arg3[%c0_5, %c0_6] : memref<1x512xi32, #tpu.memory_space<vmem>>, vector<1x512xi32>
    %5 = vector.shape_cast %4 : vector<1x512xi32> to vector<1x512xi32>
    %6 = vector.broadcast %5 : vector<1x512xi32> to vector<32x512xi32>
    %7 = vector.shape_cast %3 : vector<1x512xf32> to vector<1x512xf32>
    %8 = vector.broadcast %7 : vector<1x512xf32> to vector<32x512xf32>
    %c0_7 = arith.constant 0 : index
    %c0_8 = arith.constant 0 : index
    %9 = vector.load %arg4[%c0_7, %c0_8] : memref<32x32xf32, #tpu.memory_space<vmem>>, vector<32x32xf32>
    %cst = arith.constant dense<0.000000e+00> : vector<32x512xf32>
    %10 = tpu.matmul %9, %1, %cst {dimension_numbers = #tpu.dot_dimension_numbers<[1], [0], [0], [1], [0, 0, 1, 1], [], []>} : vector<32x32xf32>, vector<32x512xf32>, vector<32x512xf32> -> vector<32x512xf32>
    %c0_9 = arith.constant 0 : index
    %c0_10 = arith.constant 0 : index
    %11 = vector.load %arg5[%c0_9, %c0_10] : memref<32x1xf32, #tpu.memory_space<vmem>>, vector<32x1xf32>
    %12 = vector.broadcast %11 : vector<32x1xf32> to vector<32x512xf32>
    %13 = arith.addf %10, %12 : vector<32x512xf32>
    %c1_i32 = arith.constant 1 : i32
    %14 = vector.broadcast %c1_i32 : i32 to vector<32x512xi32>
    %15 = arith.cmpi sge, %6, %14 : vector<32x512xi32>
    %c1_i32_11 = arith.constant 1 : i32
    %16 = tpu.dynamic_rotate %13 by %c1_i32_11 dim 1 : vector<32x512xf32>, i32 -> vector<32x512xf32>
    %cst_12 = arith.constant 0.000000e+00 : f32
    %17 = vector.broadcast %cst_12 : f32 to vector<32x512xf32>
    %18 = arith.select %15, %16, %17 : vector<32x512xi1>, vector<32x512xf32>
    %c255_i32 = arith.constant 255 : i32
    %19 = vector.broadcast %c255_i32 : i32 to vector<32x512xi32>
    %20 = arith.cmpi slt, %6, %19 : vector<32x512xi32>
    %c511_i32 = arith.constant 511 : i32
    %21 = tpu.dynamic_rotate %13 by %c511_i32 dim 1 : vector<32x512xf32>, i32 -> vector<32x512xf32>
    %cst_13 = arith.constant 0.000000e+00 : f32
    %22 = vector.broadcast %cst_13 : f32 to vector<32x512xf32>
    %23 = arith.select %20, %21, %22 : vector<32x512xi1>, vector<32x512xf32>
    %24 = tpu.concatenate %18, %13, %23 in 0 : vector<32x512xf32>, vector<32x512xf32>, vector<32x512xf32> -> vector<96x512xf32>
    %c0_14 = arith.constant 0 : index
    %c0_15 = arith.constant 0 : index
    %c0_16 = arith.constant 0 : index
    %25 = vector.load %arg6[%c0_14, %c0_15, %c0_16] : memref<4x32x96xf32, #tpu.memory_space<vmem>>, vector<1x32x96xf32>
    %26 = vector.shape_cast %25 : vector<1x32x96xf32> to vector<32x96xf32>
    %cst_17 = arith.constant dense<0.000000e+00> : vector<32x512xf32>
    %27 = tpu.matmul %26, %24, %cst_17 {dimension_numbers = #tpu.dot_dimension_numbers<[1], [0], [0], [1], [0, 0, 1, 1], [], []>} : vector<32x96xf32>, vector<96x512xf32>, vector<32x512xf32> -> vector<32x512xf32>
    %c0_18 = arith.constant 0 : index
    %c0_19 = arith.constant 0 : index
    %c0_20 = arith.constant 0 : index
    %28 = vector.load %arg7[%c0_18, %c0_19, %c0_20] : memref<4x32x1xf32, #tpu.memory_space<vmem>>, vector<1x32x1xf32>
    %29 = vector.shape_cast %28 : vector<1x32x1xf32> to vector<32x1xf32>
    %30 = vector.broadcast %29 : vector<32x1xf32> to vector<32x512xf32>
    %31 = arith.addf %27, %30 : vector<32x512xf32>
    %cst_21 = arith.constant 0.000000e+00 : f32
    %32 = vector.broadcast %cst_21 : f32 to vector<32x512xf32>
    %33 = arith.maximumf %31, %32 : vector<32x512xf32>
    %c0_22 = arith.constant 0 : index
    %c0_23 = arith.constant 0 : index
    %c0_24 = arith.constant 0 : index
    %34 = vector.load %arg8[%c0_22, %c0_23, %c0_24] : memref<4x32x32xf32, #tpu.memory_space<vmem>>, vector<1x32x32xf32>
    %35 = vector.shape_cast %34 : vector<1x32x32xf32> to vector<32x32xf32>
    %cst_25 = arith.constant dense<0.000000e+00> : vector<32x512xf32>
    %36 = tpu.matmul %35, %33, %cst_25 {dimension_numbers = #tpu.dot_dimension_numbers<[1], [0], [0], [1], [0, 0, 1, 1], [], []>} : vector<32x32xf32>, vector<32x512xf32>, vector<32x512xf32> -> vector<32x512xf32>
    %c0_26 = arith.constant 0 : index
    %c0_27 = arith.constant 0 : index
    %c0_28 = arith.constant 0 : index
    %37 = vector.load %arg9[%c0_26, %c0_27, %c0_28] : memref<4x32x1xf32, #tpu.memory_space<vmem>>, vector<1x32x1xf32>
    %38 = vector.shape_cast %37 : vector<1x32x1xf32> to vector<32x1xf32>
    %39 = vector.broadcast %38 : vector<32x1xf32> to vector<32x512xf32>
    %40 = arith.addf %36, %39 : vector<32x512xf32>
    %cst_29 = arith.constant 2.000000e-01 : f32
    %41 = vector.broadcast %cst_29 : f32 to vector<32x512xf32>
    %42 = arith.mulf %41, %40 : vector<32x512xf32>
    %43 = arith.maximumf %40, %42 : vector<32x512xf32>
    %c0_30 = arith.constant 0 : index
    %c0_31 = arith.constant 0 : index
    %c0_32 = arith.constant 0 : index
    %44 = vector.load %arg10[%c0_30, %c0_31, %c0_32] : memref<4x32x1xf32, #tpu.memory_space<vmem>>, vector<1x32x1xf32>
    %45 = vector.shape_cast %44 : vector<1x32x1xf32> to vector<32x1xf32>
    %46 = vector.broadcast %45 : vector<32x1xf32> to vector<32x512xf32>
    %47 = arith.mulf %43, %46 : vector<32x512xf32>
    %c0_33 = arith.constant 0 : index
    %c0_34 = arith.constant 0 : index
    %c0_35 = arith.constant 0 : index
    %48 = vector.load %arg11[%c0_33, %c0_34, %c0_35] : memref<4x32x1xf32, #tpu.memory_space<vmem>>, vector<1x32x1xf32>
    %49 = vector.shape_cast %48 : vector<1x32x1xf32> to vector<32x1xf32>
    %50 = vector.broadcast %49 : vector<32x1xf32> to vector<32x512xf32>
    %51 = arith.addf %47, %50 : vector<32x512xf32>
    %52 = arith.addf %13, %51 : vector<32x512xf32>
    %53 = arith.mulf %52, %8 : vector<32x512xf32>
    %c2_i32 = arith.constant 2 : i32
    %54 = vector.broadcast %c2_i32 : i32 to vector<32x512xi32>
    %55 = arith.cmpi sge, %6, %54 : vector<32x512xi32>
    %c2_i32_36 = arith.constant 2 : i32
    %56 = tpu.dynamic_rotate %53 by %c2_i32_36 dim 1 : vector<32x512xf32>, i32 -> vector<32x512xf32>
    %cst_37 = arith.constant 0.000000e+00 : f32
    %57 = vector.broadcast %cst_37 : f32 to vector<32x512xf32>
    %58 = arith.select %55, %56, %57 : vector<32x512xi1>, vector<32x512xf32>
    %c254_i32 = arith.constant 254 : i32
    %59 = vector.broadcast %c254_i32 : i32 to vector<32x512xi32>
    %60 = arith.cmpi slt, %6, %59 : vector<32x512xi32>
    %c510_i32 = arith.constant 510 : i32
    %61 = tpu.dynamic_rotate %53 by %c510_i32 dim 1 : vector<32x512xf32>, i32 -> vector<32x512xf32>
    %cst_38 = arith.constant 0.000000e+00 : f32
    %62 = vector.broadcast %cst_38 : f32 to vector<32x512xf32>
    %63 = arith.select %60, %61, %62 : vector<32x512xi1>, vector<32x512xf32>
    %64 = tpu.concatenate %58, %53, %63 in 0 : vector<32x512xf32>, vector<32x512xf32>, vector<32x512xf32> -> vector<96x512xf32>
    %c1 = arith.constant 1 : index
    %c0_39 = arith.constant 0 : index
    %c0_40 = arith.constant 0 : index
    %65 = vector.load %arg6[%c1, %c0_39, %c0_40] : memref<4x32x96xf32, #tpu.memory_space<vmem>>, vector<1x32x96xf32>
    %66 = vector.shape_cast %65 : vector<1x32x96xf32> to vector<32x96xf32>
    %cst_41 = arith.constant dense<0.000000e+00> : vector<32x512xf32>
    %67 = tpu.matmul %66, %64, %cst_41 {dimension_numbers = #tpu.dot_dimension_numbers<[1], [0], [0], [1], [0, 0, 1, 1], [], []>} : vector<32x96xf32>, vector<96x512xf32>, vector<32x512xf32> -> vector<32x512xf32>
    %c1_42 = arith.constant 1 : index
    %c0_43 = arith.constant 0 : index
    %c0_44 = arith.constant 0 : index
    %68 = vector.load %arg7[%c1_42, %c0_43, %c0_44] : memref<4x32x1xf32, #tpu.memory_space<vmem>>, vector<1x32x1xf32>
    %69 = vector.shape_cast %68 : vector<1x32x1xf32> to vector<32x1xf32>
    %70 = vector.broadcast %69 : vector<32x1xf32> to vector<32x512xf32>
    %71 = arith.addf %67, %70 : vector<32x512xf32>
    %cst_45 = arith.constant 0.000000e+00 : f32
    %72 = vector.broadcast %cst_45 : f32 to vector<32x512xf32>
    %73 = arith.maximumf %71, %72 : vector<32x512xf32>
    %c1_46 = arith.constant 1 : index
    %c0_47 = arith.constant 0 : index
    %c0_48 = arith.constant 0 : index
    %74 = vector.load %arg8[%c1_46, %c0_47, %c0_48] : memref<4x32x32xf32, #tpu.memory_space<vmem>>, vector<1x32x32xf32>
    %75 = vector.shape_cast %74 : vector<1x32x32xf32> to vector<32x32xf32>
    %cst_49 = arith.constant dense<0.000000e+00> : vector<32x512xf32>
    %76 = tpu.matmul %75, %73, %cst_49 {dimension_numbers = #tpu.dot_dimension_numbers<[1], [0], [0], [1], [0, 0, 1, 1], [], []>} : vector<32x32xf32>, vector<32x512xf32>, vector<32x512xf32> -> vector<32x512xf32>
    %c1_50 = arith.constant 1 : index
    %c0_51 = arith.constant 0 : index
    %c0_52 = arith.constant 0 : index
    %77 = vector.load %arg9[%c1_50, %c0_51, %c0_52] : memref<4x32x1xf32, #tpu.memory_space<vmem>>, vector<1x32x1xf32>
    %78 = vector.shape_cast %77 : vector<1x32x1xf32> to vector<32x1xf32>
    %79 = vector.broadcast %78 : vector<32x1xf32> to vector<32x512xf32>
    %80 = arith.addf %76, %79 : vector<32x512xf32>
    %cst_53 = arith.constant 2.000000e-01 : f32
    %81 = vector.broadcast %cst_53 : f32 to vector<32x512xf32>
    %82 = arith.mulf %81, %80 : vector<32x512xf32>
    %83 = arith.maximumf %80, %82 : vector<32x512xf32>
    %c1_54 = arith.constant 1 : index
    %c0_55 = arith.constant 0 : index
    %c0_56 = arith.constant 0 : index
    %84 = vector.load %arg10[%c1_54, %c0_55, %c0_56] : memref<4x32x1xf32, #tpu.memory_space<vmem>>, vector<1x32x1xf32>
    %85 = vector.shape_cast %84 : vector<1x32x1xf32> to vector<32x1xf32>
    %86 = vector.broadcast %85 : vector<32x1xf32> to vector<32x512xf32>
    %87 = arith.mulf %83, %86 : vector<32x512xf32>
    %c1_57 = arith.constant 1 : index
    %c0_58 = arith.constant 0 : index
    %c0_59 = arith.constant 0 : index
    %88 = vector.load %arg11[%c1_57, %c0_58, %c0_59] : memref<4x32x1xf32, #tpu.memory_space<vmem>>, vector<1x32x1xf32>
    %89 = vector.shape_cast %88 : vector<1x32x1xf32> to vector<32x1xf32>
    %90 = vector.broadcast %89 : vector<32x1xf32> to vector<32x512xf32>
    %91 = arith.addf %87, %90 : vector<32x512xf32>
    %92 = arith.addf %53, %91 : vector<32x512xf32>
    %93 = arith.mulf %92, %8 : vector<32x512xf32>
    %c4_i32 = arith.constant 4 : i32
    %94 = vector.broadcast %c4_i32 : i32 to vector<32x512xi32>
    %95 = arith.cmpi sge, %6, %94 : vector<32x512xi32>
    %c4_i32_60 = arith.constant 4 : i32
    %96 = tpu.dynamic_rotate %93 by %c4_i32_60 dim 1 : vector<32x512xf32>, i32 -> vector<32x512xf32>
    %cst_61 = arith.constant 0.000000e+00 : f32
    %97 = vector.broadcast %cst_61 : f32 to vector<32x512xf32>
    %98 = arith.select %95, %96, %97 : vector<32x512xi1>, vector<32x512xf32>
    %c252_i32 = arith.constant 252 : i32
    %99 = vector.broadcast %c252_i32 : i32 to vector<32x512xi32>
    %100 = arith.cmpi slt, %6, %99 : vector<32x512xi32>
    %c508_i32 = arith.constant 508 : i32
    %101 = tpu.dynamic_rotate %93 by %c508_i32 dim 1 : vector<32x512xf32>, i32 -> vector<32x512xf32>
    %cst_62 = arith.constant 0.000000e+00 : f32
    %102 = vector.broadcast %cst_62 : f32 to vector<32x512xf32>
    %103 = arith.select %100, %101, %102 : vector<32x512xi1>, vector<32x512xf32>
    %104 = tpu.concatenate %98, %93, %103 in 0 : vector<32x512xf32>, vector<32x512xf32>, vector<32x512xf32> -> vector<96x512xf32>
    %c2 = arith.constant 2 : index
    %c0_63 = arith.constant 0 : index
    %c0_64 = arith.constant 0 : index
    %105 = vector.load %arg6[%c2, %c0_63, %c0_64] : memref<4x32x96xf32, #tpu.memory_space<vmem>>, vector<1x32x96xf32>
    %106 = vector.shape_cast %105 : vector<1x32x96xf32> to vector<32x96xf32>
    %cst_65 = arith.constant dense<0.000000e+00> : vector<32x512xf32>
    %107 = tpu.matmul %106, %104, %cst_65 {dimension_numbers = #tpu.dot_dimension_numbers<[1], [0], [0], [1], [0, 0, 1, 1], [], []>} : vector<32x96xf32>, vector<96x512xf32>, vector<32x512xf32> -> vector<32x512xf32>
    %c2_66 = arith.constant 2 : index
    %c0_67 = arith.constant 0 : index
    %c0_68 = arith.constant 0 : index
    %108 = vector.load %arg7[%c2_66, %c0_67, %c0_68] : memref<4x32x1xf32, #tpu.memory_space<vmem>>, vector<1x32x1xf32>
    %109 = vector.shape_cast %108 : vector<1x32x1xf32> to vector<32x1xf32>
    %110 = vector.broadcast %109 : vector<32x1xf32> to vector<32x512xf32>
    %111 = arith.addf %107, %110 : vector<32x512xf32>
    %cst_69 = arith.constant 0.000000e+00 : f32
    %112 = vector.broadcast %cst_69 : f32 to vector<32x512xf32>
    %113 = arith.maximumf %111, %112 : vector<32x512xf32>
    %c2_70 = arith.constant 2 : index
    %c0_71 = arith.constant 0 : index
    %c0_72 = arith.constant 0 : index
    %114 = vector.load %arg8[%c2_70, %c0_71, %c0_72] : memref<4x32x32xf32, #tpu.memory_space<vmem>>, vector<1x32x32xf32>
    %115 = vector.shape_cast %114 : vector<1x32x32xf32> to vector<32x32xf32>
    %cst_73 = arith.constant dense<0.000000e+00> : vector<32x512xf32>
    %116 = tpu.matmul %115, %113, %cst_73 {dimension_numbers = #tpu.dot_dimension_numbers<[1], [0], [0], [1], [0, 0, 1, 1], [], []>} : vector<32x32xf32>, vector<32x512xf32>, vector<32x512xf32> -> vector<32x512xf32>
    %c2_74 = arith.constant 2 : index
    %c0_75 = arith.constant 0 : index
    %c0_76 = arith.constant 0 : index
    %117 = vector.load %arg9[%c2_74, %c0_75, %c0_76] : memref<4x32x1xf32, #tpu.memory_space<vmem>>, vector<1x32x1xf32>
    %118 = vector.shape_cast %117 : vector<1x32x1xf32> to vector<32x1xf32>
    %119 = vector.broadcast %118 : vector<32x1xf32> to vector<32x512xf32>
    %120 = arith.addf %116, %119 : vector<32x512xf32>
    %cst_77 = arith.constant 2.000000e-01 : f32
    %121 = vector.broadcast %cst_77 : f32 to vector<32x512xf32>
    %122 = arith.mulf %121, %120 : vector<32x512xf32>
    %123 = arith.maximumf %120, %122 : vector<32x512xf32>
    %c2_78 = arith.constant 2 : index
    %c0_79 = arith.constant 0 : index
    %c0_80 = arith.constant 0 : index
    %124 = vector.load %arg10[%c2_78, %c0_79, %c0_80] : memref<4x32x1xf32, #tpu.memory_space<vmem>>, vector<1x32x1xf32>
    %125 = vector.shape_cast %124 : vector<1x32x1xf32> to vector<32x1xf32>
    %126 = vector.broadcast %125 : vector<32x1xf32> to vector<32x512xf32>
    %127 = arith.mulf %123, %126 : vector<32x512xf32>
    %c2_81 = arith.constant 2 : index
    %c0_82 = arith.constant 0 : index
    %c0_83 = arith.constant 0 : index
    %128 = vector.load %arg11[%c2_81, %c0_82, %c0_83] : memref<4x32x1xf32, #tpu.memory_space<vmem>>, vector<1x32x1xf32>
    %129 = vector.shape_cast %128 : vector<1x32x1xf32> to vector<32x1xf32>
    %130 = vector.broadcast %129 : vector<32x1xf32> to vector<32x512xf32>
    %131 = arith.addf %127, %130 : vector<32x512xf32>
    %132 = arith.addf %93, %131 : vector<32x512xf32>
    %133 = arith.mulf %132, %8 : vector<32x512xf32>
    %c8_i32 = arith.constant 8 : i32
    %134 = vector.broadcast %c8_i32 : i32 to vector<32x512xi32>
    %135 = arith.cmpi sge, %6, %134 : vector<32x512xi32>
    %c8_i32_84 = arith.constant 8 : i32
    %136 = tpu.dynamic_rotate %133 by %c8_i32_84 dim 1 : vector<32x512xf32>, i32 -> vector<32x512xf32>
    %cst_85 = arith.constant 0.000000e+00 : f32
    %137 = vector.broadcast %cst_85 : f32 to vector<32x512xf32>
    %138 = arith.select %135, %136, %137 : vector<32x512xi1>, vector<32x512xf32>
    %c248_i32 = arith.constant 248 : i32
    %139 = vector.broadcast %c248_i32 : i32 to vector<32x512xi32>
    %140 = arith.cmpi slt, %6, %139 : vector<32x512xi32>
    %c504_i32 = arith.constant 504 : i32
    %141 = tpu.dynamic_rotate %133 by %c504_i32 dim 1 : vector<32x512xf32>, i32 -> vector<32x512xf32>
    %cst_86 = arith.constant 0.000000e+00 : f32
    %142 = vector.broadcast %cst_86 : f32 to vector<32x512xf32>
    %143 = arith.select %140, %141, %142 : vector<32x512xi1>, vector<32x512xf32>
    %144 = tpu.concatenate %138, %133, %143 in 0 : vector<32x512xf32>, vector<32x512xf32>, vector<32x512xf32> -> vector<96x512xf32>
    %c3 = arith.constant 3 : index
    %c0_87 = arith.constant 0 : index
    %c0_88 = arith.constant 0 : index
    %145 = vector.load %arg6[%c3, %c0_87, %c0_88] : memref<4x32x96xf32, #tpu.memory_space<vmem>>, vector<1x32x96xf32>
    %146 = vector.shape_cast %145 : vector<1x32x96xf32> to vector<32x96xf32>
    %cst_89 = arith.constant dense<0.000000e+00> : vector<32x512xf32>
    %147 = tpu.matmul %146, %144, %cst_89 {dimension_numbers = #tpu.dot_dimension_numbers<[1], [0], [0], [1], [0, 0, 1, 1], [], []>} : vector<32x96xf32>, vector<96x512xf32>, vector<32x512xf32> -> vector<32x512xf32>
    %c3_90 = arith.constant 3 : index
    %c0_91 = arith.constant 0 : index
    %c0_92 = arith.constant 0 : index
    %148 = vector.load %arg7[%c3_90, %c0_91, %c0_92] : memref<4x32x1xf32, #tpu.memory_space<vmem>>, vector<1x32x1xf32>
    %149 = vector.shape_cast %148 : vector<1x32x1xf32> to vector<32x1xf32>
    %150 = vector.broadcast %149 : vector<32x1xf32> to vector<32x512xf32>
    %151 = arith.addf %147, %150 : vector<32x512xf32>
    %cst_93 = arith.constant 0.000000e+00 : f32
    %152 = vector.broadcast %cst_93 : f32 to vector<32x512xf32>
    %153 = arith.maximumf %151, %152 : vector<32x512xf32>
    %c3_94 = arith.constant 3 : index
    %c0_95 = arith.constant 0 : index
    %c0_96 = arith.constant 0 : index
    %154 = vector.load %arg8[%c3_94, %c0_95, %c0_96] : memref<4x32x32xf32, #tpu.memory_space<vmem>>, vector<1x32x32xf32>
    %155 = vector.shape_cast %154 : vector<1x32x32xf32> to vector<32x32xf32>
    %cst_97 = arith.constant dense<0.000000e+00> : vector<32x512xf32>
    %156 = tpu.matmul %155, %153, %cst_97 {dimension_numbers = #tpu.dot_dimension_numbers<[1], [0], [0], [1], [0, 0, 1, 1], [], []>} : vector<32x32xf32>, vector<32x512xf32>, vector<32x512xf32> -> vector<32x512xf32>
    %c3_98 = arith.constant 3 : index
    %c0_99 = arith.constant 0 : index
    %c0_100 = arith.constant 0 : index
    %157 = vector.load %arg9[%c3_98, %c0_99, %c0_100] : memref<4x32x1xf32, #tpu.memory_space<vmem>>, vector<1x32x1xf32>
    %158 = vector.shape_cast %157 : vector<1x32x1xf32> to vector<32x1xf32>
    %159 = vector.broadcast %158 : vector<32x1xf32> to vector<32x512xf32>
    %160 = arith.addf %156, %159 : vector<32x512xf32>
    %cst_101 = arith.constant 2.000000e-01 : f32
    %161 = vector.broadcast %cst_101 : f32 to vector<32x512xf32>
    %162 = arith.mulf %161, %160 : vector<32x512xf32>
    %163 = arith.maximumf %160, %162 : vector<32x512xf32>
    %c3_102 = arith.constant 3 : index
    %c0_103 = arith.constant 0 : index
    %c0_104 = arith.constant 0 : index
    %164 = vector.load %arg10[%c3_102, %c0_103, %c0_104] : memref<4x32x1xf32, #tpu.memory_space<vmem>>, vector<1x32x1xf32>
    %165 = vector.shape_cast %164 : vector<1x32x1xf32> to vector<32x1xf32>
    %166 = vector.broadcast %165 : vector<32x1xf32> to vector<32x512xf32>
    %167 = arith.mulf %163, %166 : vector<32x512xf32>
    %c3_105 = arith.constant 3 : index
    %c0_106 = arith.constant 0 : index
    %c0_107 = arith.constant 0 : index
    %168 = vector.load %arg11[%c3_105, %c0_106, %c0_107] : memref<4x32x1xf32, #tpu.memory_space<vmem>>, vector<1x32x1xf32>
    %169 = vector.shape_cast %168 : vector<1x32x1xf32> to vector<32x1xf32>
    %170 = vector.broadcast %169 : vector<32x1xf32> to vector<32x512xf32>
    %171 = arith.addf %167, %170 : vector<32x512xf32>
    %172 = arith.addf %133, %171 : vector<32x512xf32>
    %173 = arith.mulf %172, %8 : vector<32x512xf32>
    %c0_108 = arith.constant 0 : index
    %c0_109 = arith.constant 0 : index
    %174 = vector.load %arg12[%c0_108, %c0_109] : memref<16x32xf32, #tpu.memory_space<vmem>>, vector<16x32xf32>
    %cst_110 = arith.constant dense<0.000000e+00> : vector<16x512xf32>
    %175 = tpu.matmul %174, %173, %cst_110 {dimension_numbers = #tpu.dot_dimension_numbers<[1], [0], [0], [1], [0, 0, 1, 1], [], []>} : vector<16x32xf32>, vector<32x512xf32>, vector<16x512xf32> -> vector<16x512xf32>
    %c0_111 = arith.constant 0 : index
    %c0_112 = arith.constant 0 : index
    %176 = vector.load %arg13[%c0_111, %c0_112] : memref<16x1xf32, #tpu.memory_space<vmem>>, vector<16x1xf32>
    %177 = vector.broadcast %176 : vector<16x1xf32> to vector<16x512xf32>
    %178 = arith.addf %175, %177 : vector<16x512xf32>
    %179 = vector.broadcast %3 : vector<1x512xf32> to vector<16x512xf32>
    %180 = arith.mulf %178, %179 : vector<16x512xf32>
    %c0_113 = arith.constant 0 : index
    %c0_114 = arith.constant 0 : index
    %c0_115 = arith.constant 0 : index
    %181 = vector.load %arg14[%c0_113, %c0_114, %c0_115] : memref<1x16x512xf32, #tpu.memory_space<vmem>>, vector<1x16x512xf32>
    %182 = vector.shape_cast %181 : vector<1x16x512xf32> to vector<16x512xf32>
    %183 = vector.shape_cast %180 : vector<16x512xf32> to vector<1x16x512xf32>
    tpu.vector_store %arg14[%c0_113, %c0_114, %c0_115], %183 {strides = array<i32>} : memref<1x16x512xf32, #tpu.memory_space<vmem>>, vector<1x16x512xf32>,
    return
  }
  func.func @transform_0(%arg0: i32) -> (i32, i32, i32) {
    %c0_i32 = arith.constant 0 : i32
    %c0_i32_0 = arith.constant 0 : i32
    %c0_i32_1 = arith.constant 0 : i32
    return %arg0, %c0_i32, %c0_i32_0 : i32, i32, i32
  }
  func.func @transform_1(%arg0: i32) -> (i32, i32, i32) {
    %c0_i32 = arith.constant 0 : i32
    %c0_i32_0 = arith.constant 0 : i32
    %c0_i32_1 = arith.constant 0 : i32
    return %arg0, %c0_i32, %c0_i32_0 : i32, i32, i32
  }
  func.func @transform_2(%arg0: i32) -> (i32, i32) {
    %c0_i32 = arith.constant 0 : i32
    %c0_i32_0 = arith.constant 0 : i32
    %c0_i32_1 = arith.constant 0 : i32
    return %c0_i32, %c0_i32_0 : i32, i32
  }
  func.func @transform_3(%arg0: i32) -> (i32, i32) {
    %c0_i32 = arith.constant 0 : i32
    %c0_i32_0 = arith.constant 0 : i32
    %c0_i32_1 = arith.constant 0 : i32
    return %c0_i32, %c0_i32_0 : i32, i32
  }
  func.func @transform_4(%arg0: i32) -> (i32, i32) {
    %c0_i32 = arith.constant 0 : i32
    %c0_i32_0 = arith.constant 0 : i32
    %c0_i32_1 = arith.constant 0 : i32
    return %c0_i32, %c0_i32_0 : i32, i32
  }
  func.func @transform_5(%arg0: i32) -> (i32, i32, i32) {
    %c0_i32 = arith.constant 0 : i32
    %c0_i32_0 = arith.constant 0 : i32
    %c0_i32_1 = arith.constant 0 : i32
    %c0_i32_2 = arith.constant 0 : i32
    return %c0_i32, %c0_i32_0, %c0_i32_1 : i32, i32, i32
  }
  func.func @transform_6(%arg0: i32) -> (i32, i32, i32) {
    %c0_i32 = arith.constant 0 : i32
    %c0_i32_0 = arith.constant 0 : i32
    %c0_i32_1 = arith.constant 0 : i32
    %c0_i32_2 = arith.constant 0 : i32
    return %c0_i32, %c0_i32_0, %c0_i32_1 : i32, i32, i32
  }
  func.func @transform_7(%arg0: i32) -> (i32, i32, i32) {
    %c0_i32 = arith.constant 0 : i32
    %c0_i32_0 = arith.constant 0 : i32
    %c0_i32_1 = arith.constant 0 : i32
    %c0_i32_2 = arith.constant 0 : i32
    return %c0_i32, %c0_i32_0, %c0_i32_1 : i32, i32, i32
  }
  func.func @transform_8(%arg0: i32) -> (i32, i32, i32) {
    %c0_i32 = arith.constant 0 : i32
    %c0_i32_0 = arith.constant 0 : i32
    %c0_i32_1 = arith.constant 0 : i32
    %c0_i32_2 = arith.constant 0 : i32
    return %c0_i32, %c0_i32_0, %c0_i32_1 : i32, i32, i32
  }
  func.func @transform_9(%arg0: i32) -> (i32, i32, i32) {
    %c0_i32 = arith.constant 0 : i32
    %c0_i32_0 = arith.constant 0 : i32
    %c0_i32_1 = arith.constant 0 : i32
    %c0_i32_2 = arith.constant 0 : i32
    return %c0_i32, %c0_i32_0, %c0_i32_1 : i32, i32, i32
  }
  func.func @transform_10(%arg0: i32) -> (i32, i32, i32) {
    %c0_i32 = arith.constant 0 : i32
    %c0_i32_0 = arith.constant 0 : i32
    %c0_i32_1 = arith.constant 0 : i32
    %c0_i32_2 = arith.constant 0 : i32
    return %c0_i32, %c0_i32_0, %c0_i32_1 : i32, i32, i32
  }
  func.func @transform_11(%arg0: i32) -> (i32, i32) {
    %c0_i32 = arith.constant 0 : i32
    %c0_i32_0 = arith.constant 0 : i32
    %c0_i32_1 = arith.constant 0 : i32
    return %c0_i32, %c0_i32_0 : i32, i32
  }
  func.func @transform_12(%arg0: i32) -> (i32, i32) {
    %c0_i32 = arith.constant 0 : i32
    %c0_i32_0 = arith.constant 0 : i32
    %c0_i32_1 = arith.constant 0 : i32
    return %c0_i32, %c0_i32_0 : i32, i32
  }
  func.func @transform_13(%arg0: i32) -> (i32, i32, i32) {
    %c0_i32 = arith.constant 0 : i32
    %c0_i32_0 = arith.constant 0 : i32
    %c0_i32_1 = arith.constant 0 : i32
    return %arg0, %c0_i32, %c0_i32_0 : i32, i32, i32
  }
}

</mosaic_0001>

<bundles_post_ra>
// kernel: _lambda_.1
= control target key start
LH: loop header
LB: loop body
LE: loop exit
PB: predicated region body
PF: predicated region fallthrough
CT: control target
= control target key end

     0   :  { %v3757_v3 = vmov 0.0   ;;  %vm127_vm0 = vcmask 261120   ;;  %v3758_v21 = vmov 0   ;;  %s3759_s20 = smov 127   ;;  %vm486_vm11 = vcmask 785408   ;;  %s3762_s14 = smov 2   ;;  %s5787_s0 = inlined_call_operand.vmem [shape: f32[1,32,512], index: 0, kind: input, shape index: {}]   ;;  %s5788_s3 = inlined_call_operand.vmem [shape: f32[32,32], index: 3, kind: input, shape index: {}]   ;;  %s5789_s4 = inlined_call_operand.vmem [shape: f32[32,1], index: 4, kind: input, shape index: {}]   ;;  %s5790_s6 = inlined_call_operand.vmem [shape: f32[4,32,1], index: 6, kind: input, shape index: {}]   ;;  %s5791_s8 = inlined_call_operand.vmem [shape: f32[4,32,1], index: 8, kind: input, shape index: {}]   ;;  %s5792_s9 = inlined_call_operand.vmem [shape: f32[4,32,1], index: 9, kind: input, shape index: {}]   ;;  %s5793_s10 = inlined_call_operand.vmem [shape: f32[4,32,1], index: 10, kind: input, shape index: {}]   ;;  %s5794_s2 = inlined_call_operand.vmem [shape: s32[1,512], index: 2, kind: input, shape index: {}]   ;;  %s5795_s5 = inlined_call_operand.vmem [shape: f32[4,32,96], index: 5, kind: input, shape index: {}]   ;;  %s5796_s7 = inlined_call_operand.vmem [shape: f32[4,32,32], index: 7, kind: input, shape index: {}]   ;;  %s5797_s1 = inlined_call_operand.vmem [shape: f32[1,1,512], index: 1, kind: input, shape index: {}]   ;;  %s5798_s12 = inlined_call_operand.vmem [shape: f32[16,1], index: 12, kind: input, shape index: {}]   ;;  %s5799_s11 = inlined_call_operand.vmem [shape: f32[16,32], index: 11, kind: input, shape index: {}]   ;;  %s5800_s13 = inlined_call_operand.vmem [shape: f32[1,16,512], index: 13, kind: output, shape index: {}]  }
   0x1   :  { %v57_v0 = vld [vmem:[%s5787_s0 + $0x68] sm:$0xff]  ;;  %v59_v1 = vld [vmem:[%s5787_s0 + $0x78] sm:$0xff]  ;;  %v56_v2 = vld [vmem:[%s5787_s0 + $0x60] sm:$0xff]  ;;  %204 = vmatprep.mubr.f32.mxu0 %v3757_v3  ;;  %293 = vmatprep.mubr.f32.mxu1 %v3757_v3  ;;  %s3763_s18 = smov 124   ;;  %s3764_s19 = smov 4  }
   0x2   :  { %164 = vmatprep.subr.mxu0 %v57_v0  ;;  %253 = vmatprep.subr.mxu1 %v59_v1  ;;  %v58_v4 = vld [vmem:[%s5787_s0 + $0x70] sm:$0xff]  ;;  %v53_v5 = vld [vmem:[%s5787_s0 + $0x48] sm:$0xff]  ;;  %v55_v6 = vld [vmem:[%s5787_s0 + $0x58] sm:$0xff]  ;;  %s3765_s22 = smov 120   ;;  %s3766_s23 = smov 8  }
   0x3   :  { %165 = vmatpush1.msra.mxu0 %v56_v2  ;;  %254 = vmatpush1.msra.mxu1 %v58_v4  ;;  %v52_v7 = vld [vmem:[%s5787_s0 + $0x40] sm:$0xff]  ;;  %v54_v8 = vld [vmem:[%s5787_s0 + $0x50] sm:$0xff]  ;;  %v49_v9 = vld [vmem:[%s5787_s0 + $0x28] sm:$0xff] }
   0x4   :  { %166 = vmatprep.subr.mxu0 %v53_v5  ;;  %255 = vmatprep.subr.mxu1 %v55_v6  ;;  %v51_v10 = vld [vmem:[%s5787_s0 + $0x38] sm:$0xff]  ;;  %v48_v11 = vld [vmem:[%s5787_s0 + $0x20] sm:$0xff]  ;;  %v50_v12 = vld [vmem:[%s5787_s0 + $0x30] sm:$0xff] }
   0x5   :  { %167 = vmatpush1.msra.mxu0 %v52_v7  ;;  %256 = vmatpush1.msra.mxu1 %v54_v8  ;;  %v45_v13 = vld [vmem:[%s5787_s0 + $0x8] sm:$0xff]  ;;  %v47_v14 = vld [vmem:[%s5787_s0 + $0x18] sm:$0xff]  ;;  %v44_v15 = vld [vmem:[%s5787_s0] sm:$0xff] }
   0x6   :  { %168 = vmatprep.subr.mxu0 %v49_v9  ;;  %257 = vmatprep.subr.mxu1 %v51_v10  ;;  %v46_v16 = vld [vmem:[%s5787_s0 + $0x10] sm:$0xff]  ;;  %v99_v17 = vld [vmem:[%s5788_s3] sm:$0xff]  ;;  %v104_v18 = vld [vmem:[%s5789_s4 + $0x8] sm:$0xff] }
   0x7   :  { %169 = vmatpush1.msra.mxu0 %v48_v11  ;;  %258 = vmatpush1.msra.mxu1 %v50_v12  ;;  %v106_v19 = vld [vmem:[%s5789_s4 + $0x18] sm:$0xff]  ;;  %v100_v20 = vld [vmem:[%s5788_s3 + $0x8] sm:$0xff]  ;;  %v103_v22 = vld [vmem:[%s5789_s4] sm:$0xff] }
   0x8   :  { %170 = vmatprep.subr.mxu0 %v45_v13  ;;  %259 = vmatprep.subr.mxu1 %v47_v14  ;;  %v105_v23 = vld [vmem:[%s5789_s4 + $0x10] sm:$0xff]  ;;  %v102_v25 = vld [vmem:[%s5788_s3 + $0x18] sm:$0xff]  ;;  %v463_v0 = vld [vmem:[%s5790_s6 + $0x8] sm:$0xff] }
   0x9   :  { %171 = vmatpush1.msra.mxu0 %v44_v15  ;;  %260 = vmatpush1.msra.mxu1 %v46_v16  ;;  %v101_v24 = vld [vmem:[%s5788_s3 + $0x10] sm:$0xff]  ;;  %s3760_s3 = smov 1   ;;  %v465_v62 = vld [vmem:[%s5790_s6 + $0x18] sm:$0xff]  ;;  %v462_v1 = vld [vmem:[%s5790_s6] sm:$0xff] }
   0xa   :  { %3469 = vmatmul.mubr.msk.f32.vlgmr.msra.gmra.mxu0 %vm127_vm0, %v99_v17  ;;  %3473 = vmatmul.mubr.msk.f32.vlgmr.msra.gmra.mxu1 %vm127_vm0, %v99_v17  ;;  %v464_v63 = vld [vmem:[%s5790_s6 + $0x10] sm:$0xff]  ;;  %v700_v2 = vld [vmem:[%s5791_s8 + $0x18] sm:$0xff]  ;;  %v698_v5 = vld [vmem:[%s5791_s8 + $0x8] sm:$0xff] }
   0xb   :  { %210 = vmatprep.mubr.f32.mxu0 %v3757_v3  ;;  %299 = vmatprep.mubr.f32.mxu1 %v3757_v3  ;;  %v699_v4 = vld [vmem:[%s5791_s8 + $0x10] sm:$0xff]  ;;  %v697_v6 = vld [vmem:[%s5791_s8] sm:$0xff]  ;;  %v946_v7 = vld [vmem:[%s5792_s9 + $0x18] sm:$0xff] }
   0xc   :  { %3756 = vset.pattern.permute.xlu1 %v3758_v21  ;;  %3755 = vset.pattern.permute.xlu0 %v3758_v21  ;;  %v945_v8 = vld [vmem:[%s5792_s9 + $0x10] sm:$0xff]  ;;  %v986_v9 = vld [vmem:[%s5793_s10 + $0x18] sm:$0xff]  ;;  %v944_v10 = vld [vmem:[%s5792_s9 + $0x8] sm:$0xff] }
   0xd   :  { %114 = vperm.xlu1 %3756, %v104_v18   ;;  %124 = vperm.xlu0 %3755, %v106_v19   ;;  %v985_v11 = vld [vmem:[%s5793_s10 + $0x10] sm:$0xff]  ;;  %v943_v12 = vld [vmem:[%s5792_s9] sm:$0xff]  ;;  %v984_v13 = vld [vmem:[%s5793_s10 + $0x8] sm:$0xff] }
   0xe   :  { %3470 = vmatmul.mubr.msk.f32.gmra.mxu0 %vm127_vm0, %v100_v20  ;;  %3474 = vmatmul.mubr.msk.f32.gmra.mxu1 %vm127_vm0, %v100_v20  ;;  %v983_v14 = vld [vmem:[%s5793_s10] sm:$0xff] }
   0xf   :  { %216 = vmatprep.mubr.f32.mxu0 %v3757_v3  ;;  %305 = vmatprep.mubr.f32.mxu1 %v3757_v3 }
  0x11   :  { %109 = vperm.xlu1 %3756, %v103_v22   ;;  %119 = vperm.xlu0 %3755, %v105_v23  }
  0x12   :  { %3471 = vmatmul.mubr.msk.f32.gmra.mxu0 %vm127_vm0, %v101_v24  ;;  %3475 = vmatmul.mubr.msk.f32.gmra.mxu1 %vm127_vm0, %v101_v24 }
  0x13   :  { %222 = vmatprep.mubr.f32.mxu0 %v3757_v3  ;;  %311 = vmatprep.mubr.f32.mxu1 %v3757_v3 }
  0x16   :  { %3472 = vmatmul.mubr.msk.f32.gmra.mxu0 %vm127_vm0, %v102_v25  ;;  %3476 = vmatmul.mubr.msk.f32.gmra.mxu1 %vm127_vm0, %v102_v25 }
  0x17   :  { %563 = vmatprep.mubr.f32.mxu0 %v3757_v3  ;;  %652 = vmatprep.mubr.f32.mxu1 %v3757_v3 }
  0x88   :  { %v115_v26 = vpop.permute.xlu1 %114  ;;  %v125_v37 = vpop.permute.xlu0 %124 }
  0x8c   :  { %v110_v27 = vpop.permute.xlu1 %109  ;;  %v120_v45 = vpop.permute.xlu0 %119 }
  0xca   :  { %v206_v28 = vpop.f32.mrf.mxu0  ;;  %v295_v29 = vpop.f32.mrf.mxu1 }
  0xcb   :  { %v3927_v30 = vadd.f32 %v206_v28, %v110_v27  ;;  %v3933_v35 = vadd.f32 %v295_v29, %v110_v27 }
  0xcc   :  { %v208_v31 = vpop.f32.mrf.mxu0  ;;  %v297_v33 = vpop.f32.mrf.mxu1 }
  0xcd   :  { %v3929_v32 = vadd.f32 %v208_v31, %v110_v27  ;;  %393 = vrot.lane.b32.xlu0 %v3927_v30, %s3759_s20  ;;  %v3937_v36 = vadd.f32 %v297_v33, %v110_v27 }
  0xce   :  { %v212_v34 = vpop.f32.mrf.mxu0  ;;  %v301_v38 = vpop.f32.mrf.mxu1 }
  0xcf   :  { %401 = vrot.lane.b32.xlu1 %v3929_v32, %s3759_s20  ;;  %v3941_v40 = vadd.f32 %v212_v34, %v115_v26  ;;  %v3949_v43 = vadd.f32 %v301_v38, %v115_v26 }
  0xd0   :  { %v214_v39 = vpop.f32.mrf.mxu0  ;;  %v303_v42 = vpop.f32.mrf.mxu1 }
  0xd1   :  { %409 = vrot.lane.b32.xlu0 %v3933_v35, %s3759_s20  ;;  %v3945_v41 = vadd.f32 %v214_v39, %v115_v26  ;;  %v3953_v46 = vadd.f32 %v303_v42, %v115_v26  ;;  %v62_v26 = vlaneseq }
  0xd2   :  { %v218_v44 = vpop.f32.mrf.mxu0  ;;  %v307_v48 = vpop.f32.mrf.mxu1 }
  0xd3   :  { %417 = vrot.lane.b32.xlu1 %v3937_v36, %s3759_s20  ;;  %v3959_v47 = vadd.f32 %v218_v44, %v120_v45  ;;  %v3967_v51 = vadd.f32 %v307_v48, %v120_v45  ;;  %v4077_v28 = vshrl.u32 %v62_v26, 7  ;;  %v4098_v48 = vand.u32 127, %v62_v26 }
  0xd4   :  { %v220_v49 = vpop.f32.mrf.mxu0  ;;  %v309_v52 = vpop.f32.mrf.mxu1 }
  0xd5   :  { %395 = vrot.lane.b32.xlu0 %v3941_v40, %s3759_s20  ;;  %v3963_v50 = vadd.f32 %v220_v49, %v120_v45  ;;  %v3971_v53 = vadd.f32 %v309_v52, %v120_v45  ;;  %v68_v33 = vsub.s32 1, %v4077_v28  ;;  %v64_v38 = vsub.s32 0, %v4077_v28 }
  0xd6   :  { %v224_v54 = vpop.f32.mrf.mxu0  ;;  %v313_v55 = vpop.f32.mrf.mxu1  ;;  %v76_v39 = vsub.s32 3, %v4077_v28  ;;  %v5801_v44 = vsub.s32 2, %v4077_v28  ;;  %vm425_vm2 = vcmp.lt.s32.totalorder %v4098_v48, 127  ;;  %vm356_vm7 = vcmp.lt.s32.totalorder %v4098_v48, 1 }
  0xd7   :  { %403 = vrot.lane.b32.xlu1 %v3945_v41, %s3759_s20  ;;  %v3981_v57 = vadd.f32 %v224_v54, %v125_v37  ;;  %v3989_v60 = vadd.f32 %v313_v55, %v125_v37  ;;  %vm1160_vm13 = vcmp.lt.s32.totalorder %v4098_v48, 126 }
  0xd8   :  { %v226_v56 = vpop.f32.mrf.mxu0  ;;  %v315_v59 = vpop.f32.mrf.mxu1 }
  0xd9   :  { %411 = vrot.lane.b32.xlu0 %v3949_v43, %s3759_s20  ;;  %v3985_v58 = vadd.f32 %v226_v56, %v125_v37  ;;  %v3993_v61 = vadd.f32 %v315_v59, %v125_v37  ;;  %v61_v37 = vld [vmem:[%s5794_s2] sm:$0xf] }
  0xda   :  { %v4096_v45 = vrot.slane %v61_v37, %v68_v33  ;;  %v4102_v52 = vrot.slane %v61_v37, %v64_v38  ;;  %v4106_v54 = vrot.slane %v61_v37, %v76_v39  ;;  %v4110_v56 = vrot.slane %v61_v37, %v5801_v44 }
  0xdb   :  { %419 = vrot.lane.b32.xlu1 %v3953_v46, %s3759_s20 }
  0xdc   :  { %vm390_vm1 = vcmp.lt.s32.totalorder %v4096_v45, 255  ;;  %vm389_vm3 = vcmp.lt.s32.totalorder %v4102_v52, 255  ;;  %vm392_vm4 = vcmp.lt.s32.totalorder %v4106_v54, 255  ;;  %vm391_vm5 = vcmp.lt.s32.totalorder %v4110_v56, 255 }
  0xdd   :  { %397 = vrot.lane.b32.xlu0 %v3959_v47, %s3759_s20  ;;  %vm319_vm6 = vcmp.ge.s32.totalorder %v4096_v45, 1  ;;  %vm318_vm8 = vcmp.ge.s32.totalorder %v4102_v52, 1  ;;  %vm321_vm9 = vcmp.ge.s32.totalorder %v4106_v54, 1  ;;  %vm320_vm10 = vcmp.ge.s32.totalorder %v4110_v56, 1 }
  0xde   :  { %vm1125_vm12 = vcmp.lt.s32.totalorder %v4096_v45, 254  ;;  %vm1124_vm14 = vcmp.lt.s32.totalorder %v4102_v52, 254  ;;  %vm1127_vm15 = vcmp.lt.s32.totalorder %v4106_v54, 254 }
  0xdf   :  { %405 = vrot.lane.b32.xlu1 %v3963_v50, %s3759_s20 }
  0xe1   :  { %413 = vrot.lane.b32.xlu0 %v3967_v51, %s3759_s20 }
  0xe3   :  { %421 = vrot.lane.b32.xlu1 %v3971_v53, %s3759_s20 }
  0xe5   :  { %326 = vrot.lane.b32.xlu0 %v3959_v47, %s3760_s3 }
  0xe7   :  { %334 = vrot.lane.b32.xlu1 %v3963_v50, %s3760_s3 }
  0xe9   :  { %342 = vrot.lane.b32.xlu0 %v3967_v51, %s3760_s3 }
  0xeb   :  { %350 = vrot.lane.b32.xlu1 %v3971_v53, %s3760_s3 }
  0xed   :  { %399 = vrot.lane.b32.xlu0 %v3981_v57, %s3759_s20 }
  0xef   :  { %407 = vrot.lane.b32.xlu1 %v3985_v58, %s3759_s20 }
  0xf1   :  { %415 = vrot.lane.b32.xlu0 %v3989_v60, %s3759_s20 }
  0xf3   :  { %423 = vrot.lane.b32.xlu1 %v3993_v61, %s3759_s20 }
  0xf5   :  { %324 = vrot.lane.b32.xlu0 %v3941_v40, %s3760_s3 }
  0xf7   :  { %332 = vrot.lane.b32.xlu1 %v3945_v41, %s3760_s3 }
  0xf9   :  { %328 = vrot.lane.b32.xlu0 %v3981_v57, %s3760_s3 }
  0xfb   :  { %348 = vrot.lane.b32.xlu1 %v3953_v46, %s3760_s3 }
  0xfd   :  { %344 = vrot.lane.b32.xlu0 %v3989_v60, %s3760_s3 }
  0xff   :  { %336 = vrot.lane.b32.xlu1 %v3985_v58, %s3760_s3 }
 0x101   :  { %340 = vrot.lane.b32.xlu0 %v3949_v43, %s3760_s3 }
 0x103   :  { %352 = vrot.lane.b32.xlu1 %v3993_v61, %s3760_s3 }
 0x105   :  { %322 = vrot.lane.b32.xlu0 %v3927_v30, %s3760_s3 }
 0x107   :  { %330 = vrot.lane.b32.xlu1 %v3929_v32, %s3760_s3 }
 0x109   :  { %338 = vrot.lane.b32.xlu0 %v3933_v35, %s3760_s3 }
 0x10b   :  { %346 = vrot.lane.b32.xlu1 %v3937_v36, %s3760_s3 }
 0x10d   :  { %483 = vperm.xlu0 %3755, %v465_v62  }
 0x10f   :  { %478 = vperm.xlu1 %3756, %v464_v63  }
 0x111   :  { %473 = vperm.xlu0 %3755, %v463_v0  }
 0x113   :  { %468 = vperm.xlu1 %3756, %v462_v1  }
 0x115   :  { %718 = vperm.xlu0 %3755, %v700_v2  }
 0x117   :  { %713 = vperm.xlu1 %3756, %v699_v4  }
 0x119   :  { %708 = vperm.xlu0 %3755, %v698_v5  }
 0x11b   :  { %703 = vperm.xlu1 %3756, %v697_v6  }
 0x11d   :  { %964 = vperm.xlu0 %3755, %v946_v7  }
 0x11f   :  { %959 = vperm.xlu1 %3756, %v945_v8  }
 0x121   :  { %1004 = vperm.xlu0 %3755, %v986_v9  }
 0x123   :  { %954 = vperm.xlu1 %3756, %v944_v10  }
 0x125   :  { %999 = vperm.xlu0 %3755, %v985_v11  }
 0x127   :  { %949 = vperm.xlu1 %3756, %v943_v12  }
 0x129   :  { %994 = vperm.xlu0 %3755, %v984_v13  }
 0x12b   :  { %989 = vperm.xlu1 %3756, %v983_v14  }
 0x13f   :  { %v4071_v15 = vpop.permute.xlu0 %393 }
 0x141   :  { %v402_v16 = vpop.permute.xlu1 %401 }
 0x142   :  { %v434_v14 = vsel %vm425_vm2, %v4071_v15, %v402_v16 }
 0x143   :  { %v4073_v17 = vpop.permute.xlu0 %409 }
 0x144   :  { %v430_v12 = vsel %vm425_vm2, %v402_v16, %v4073_v17 }
 0x145   :  { %v4075_v18 = vpop.permute.xlu1 %417 }
 0x146   :  { %v438_v16 = vsel %vm425_vm2, %v4075_v18, %v4071_v15 }
 0x147   :  { %v396_v19 = vpop.permute.xlu0 %395 }
 0x149   :  { %v404_v20 = vpop.permute.xlu1 %403 }
 0x14a   :  { %v435_v9 = vsel %vm425_vm2, %v396_v19, %v404_v20 }
 0x14b   :  { %v412_v21 = vpop.permute.xlu0 %411 }
 0x14c   :  { %v431_v7 = vsel %vm425_vm2, %v404_v20, %v412_v21 }
 0x14d   :  { %v420_v22 = vpop.permute.xlu1 %419 }
 0x14e   :  { %v439_v13 = vsel %vm425_vm2, %v420_v22, %v396_v19  ;;  %v427_v20 = vsel %vm425_vm2, %v412_v21, %v420_v22  ;;  %v426_v19 = vsel %vm425_vm2, %v4073_v17, %v4075_v18 }
 0x14f   :  { %v398_v23 = vpop.permute.xlu0 %397 }
 0x151   :  { %v406_v24 = vpop.permute.xlu1 %405 }
 0x152   :  { %v436_v5 = vsel %vm425_vm2, %v398_v23, %v406_v24 }
 0x153   :  { %v414_v25 = vpop.permute.xlu0 %413 }
 0x154   :  { %v432_v2 = vsel %vm425_vm2, %v406_v24, %v414_v25 }
 0x155   :  { %v422_v27 = vpop.permute.xlu1 %421 }
 0x156   :  { %v440_v8 = vsel %vm425_vm2, %v422_v27, %v398_v23  ;;  %v428_v10 = vsel %vm425_vm2, %v414_v25, %v422_v27 }
 0x157   :  { %v4079_v29 = vpop.permute.xlu0 %326 }
 0x159   :  { %v4081_v31 = vpop.permute.xlu1 %334 }
 0x15b   :  { %v4084_v34 = vpop.permute.xlu0 %342 }
 0x15d   :  { %v4091_v42 = vpop.permute.xlu1 %350 }
 0x15f   :  { %v400_v49 = vpop.permute.xlu0 %399 }
 0x161   :  { %v408_v55 = vpop.permute.xlu1 %407 }
 0x162   :  { %v437_v63 = vsel %vm425_vm2, %v400_v49, %v408_v55 }
 0x163   :  { %v416_v59 = vpop.permute.xlu0 %415 }
 0x164   :  { %v433_v62 = vsel %vm425_vm2, %v408_v55, %v416_v59  ;;  %v371_v55 = vsel %vm356_vm7, %v4091_v42, %v4079_v29 }
 0x165   :  { %v424_v0 = vpop.permute.xlu1 %423  ;;  %3477 = vmatprep.subr.msk.mxu0 %vm390_vm1, %v433_v62  ;;  %v363_v62 = vsel %vm356_vm7, %v4081_v31, %v4084_v34 }
 0x166   :  { %v429_v1 = vsel %vm425_vm2, %v416_v59, %v424_v0  ;;  %3478 = vmatpush1.msk.msra.mxu0 %vm389_vm3, %v437_v63  ;;  %v441_v4 = vsel %vm425_vm2, %v424_v0, %v400_v49  ;;  %v367_v49 = vsel %vm356_vm7, %v4079_v29, %v4081_v31  ;;  %v359_v59 = vsel %vm356_vm7, %v4084_v34, %v4091_v42 }
 0x167   :  { %3479 = vmatprep.subr.msk.mxu0 %vm390_vm1, %v432_v2  ;;  %3497 = vmatprep.subr.msk.mxu1 %vm392_vm4, %v441_v4  ;;  %v4137_v6 = vpop.permute.xlu0 %324  ;;  %v458_v4 = vld [vmem:[%s5795_s5] sm:$0xff]  ;;  %vm1056_vm2 = vcmp.ge.s32.totalorder %v4096_v45, 2 }
 0x168   :  { %3480 = vmatpush1.msk.msra.mxu0 %vm389_vm3, %v436_v5  ;;  %3498 = vmatpush1.msk.msra.mxu1 %vm391_vm5, %v429_v1 }
 0x169   :  { %v4151_v11 = vpop.permute.xlu1 %332  ;;  %3481 = vmatprep.subr.msk.mxu0 %vm390_vm1, %v431_v7  ;;  %3499 = vmatprep.subr.msk.mxu1 %vm392_vm4, %v440_v8  ;;  %v459_v8 = vld [vmem:[%s5795_s5 + $0x8] sm:$0xff] }
 0x16a   :  { %3482 = vmatpush1.msk.msra.mxu0 %vm389_vm3, %v435_v9  ;;  %3500 = vmatpush1.msk.msra.mxu1 %vm391_vm5, %v428_v10  ;;  %v366_v29 = vsel %vm356_vm7, %v4137_v6, %v4151_v11  ;;  %v460_v9 = vld [vmem:[%s5795_s5 + $0x10] sm:$0xff]  ;;  %v461_v10 = vld [vmem:[%s5795_s5 + $0x18] sm:$0xff] }
 0x16b   :  { %3483 = vmatprep.subr.msk.mxu0 %vm390_vm1, %v430_v12  ;;  %3501 = vmatprep.subr.msk.mxu1 %vm392_vm4, %v439_v13  ;;  %v329_v23 = vpop.permute.xlu0 %328  ;;  %vm1126_vm1 = vcmp.lt.s32.totalorder %v4110_v56, 254 }
 0x16c   :  { %3484 = vmatpush1.msk.msra.mxu0 %vm389_vm3, %v434_v14  ;;  %3502 = vmatpush1.msk.msra.mxu1 %vm391_vm5, %v427_v20  ;;  %vm1091_vm3 = vcmp.lt.s32.totalorder %v4098_v48, 2 }
 0x16d   :  { %v349_v21 = vpop.permute.xlu1 %348  ;;  %515 = vmatprep.subr.mxu0 %v3985_v58  ;;  %3503 = vmatprep.subr.msk.mxu1 %vm392_vm4, %v438_v16  ;;  %vm1055_vm4 = vcmp.ge.s32.totalorder %v4102_v52, 2 }
 0x16e   :  { %516 = vmatpush1.msra.mxu0 %v3981_v57  ;;  %3504 = vmatpush1.msk.msra.mxu1 %vm391_vm5, %v426_v19  ;;  %v370_v42 = vsel %vm356_vm7, %v349_v21, %v4137_v6  ;;  %vm1058_vm5 = vcmp.ge.s32.totalorder %v4106_v54, 2 }
 0x16f   :  { %517 = vmatprep.subr.mxu0 %v3963_v50  ;;  %604 = vmatprep.subr.mxu1 %v3993_v61  ;;  %v345_v15 = vpop.permute.xlu0 %344 }
 0x170   :  { %518 = vmatpush1.msra.mxu0 %v3959_v47  ;;  %605 = vmatpush1.msra.mxu1 %v3989_v60 }
 0x171   :  { %v337_v17 = vpop.permute.xlu1 %336  ;;  %519 = vmatprep.subr.mxu0 %v3945_v41  ;;  %606 = vmatprep.subr.mxu1 %v3971_v53 }
 0x172   :  { %520 = vmatpush1.msra.mxu0 %v3941_v40  ;;  %607 = vmatpush1.msra.mxu1 %v3967_v51  ;;  %v368_v22 = vsel %vm356_vm7, %v329_v23, %v337_v17  ;;  %v364_v27 = vsel %vm356_vm7, %v337_v17, %v345_v15 }
 0x173   :  { %521 = vmatprep.subr.mxu0 %v3929_v32  ;;  %608 = vmatprep.subr.mxu1 %v3953_v46  ;;  %v341_v18 = vpop.permute.xlu0 %340 }
 0x174   :  { %522 = vmatpush1.msra.mxu0 %v3927_v30  ;;  %609 = vmatpush1.msra.mxu1 %v3949_v43  ;;  %v358_v31 = vsel %vm356_vm7, %v341_v18, %v349_v21  ;;  %v362_v0 = vsel %vm356_vm7, %v4151_v11, %v341_v18 }
 0x175   :  { %v353_v24 = vpop.permute.xlu1 %352  ;;  %3485 = vmatprep.subr.msk.mxu0 %vm319_vm6, %v368_v22  ;;  %610 = vmatprep.subr.mxu1 %v3937_v36 }
 0x176   :  { %v372_v25 = vsel %vm356_vm7, %v353_v24, %v329_v23  ;;  %611 = vmatpush1.msra.mxu1 %v3933_v35  ;;  %v360_v26 = vsel %vm356_vm7, %v345_v15, %v353_v24 }
 0x177   :  { %3486 = vmatpush1.msk.msra.mxu0 %vm318_vm8, %v372_v25  ;;  %3505 = vmatprep.subr.msk.mxu1 %vm321_vm9, %v360_v26  ;;  %v323_v37 = vpop.permute.xlu0 %322 }
 0x178   :  { %3487 = vmatprep.subr.msk.mxu0 %vm319_vm6, %v367_v49  ;;  %3506 = vmatpush1.msk.msra.mxu1 %vm320_vm10, %v364_v27 }
 0x179   :  { %v331_v63 = vpop.permute.xlu1 %330  ;;  %3488 = vmatpush1.msk.msra.mxu0 %vm318_vm8, %v371_v55  ;;  %3507 = vmatprep.subr.msk.mxu1 %vm321_vm9, %v359_v59 }
 0x17a   :  { %3489 = vmatprep.subr.msk.mxu0 %vm319_vm6, %v366_v29  ;;  %3508 = vmatpush1.msk.msra.mxu1 %vm320_vm10, %v363_v62  ;;  %v365_v34 = vsel %vm356_vm7, %v323_v37, %v331_v63 }
 0x17b   :  { %3490 = vmatpush1.msk.msra.mxu0 %vm318_vm8, %v370_v42  ;;  %3509 = vmatprep.subr.msk.mxu1 %vm321_vm9, %v358_v31  ;;  %v339_v1 = vpop.permute.xlu0 %338 }
 0x17c   :  { %3491 = vmatprep.subr.msk.mxu0 %vm319_vm6, %v365_v34  ;;  %3510 = vmatpush1.msk.msra.mxu1 %vm320_vm10, %v362_v0  ;;  %v361_v7 = vsel %vm356_vm7, %v331_v63, %v339_v1  ;;  %vm1057_vm6 = vcmp.ge.s32.totalorder %v4110_v56, 2 }
 0x17d   :  { %v347_v2 = vpop.permute.xlu1 %346 }
 0x17e   :  { %v369_v5 = vsel %vm356_vm7, %v347_v2, %v323_v37  ;;  %v357_v6 = vsel %vm356_vm7, %v339_v1, %v347_v2  ;;  %vm1865_vm7 = vcmp.lt.s32.totalorder %v4096_v45, 252 }
 0x17f   :  { %3492 = vmatpush1.msk.msra.mxu0 %vm318_vm8, %v369_v5  ;;  %3511 = vmatprep.subr.msk.mxu1 %vm321_vm9, %v357_v6  ;;  %vm1900_vm8 = vcmp.lt.s32.totalorder %v4098_v48, 124  ;;  %vm1864_vm9 = vcmp.lt.s32.totalorder %v4102_v52, 252 }
 0x180   :  { %3493 = vmatmul.mubr.msk.f32.vlgmr.msra.gmra.mxu0 %vm486_vm11, %v458_v4  ;;  %3512 = vmatpush1.msk.msra.mxu1 %vm320_vm10, %v361_v7  ;;  %vm1867_vm10 = vcmp.lt.s32.totalorder %v4106_v54, 252 }
 0x181   :  { %3513 = vmatmul.mubr.msk.f32.vlgmr.msra.gmra.mxu1 %vm486_vm11, %v458_v4  ;;  %569 = vmatprep.mubr.f32.mxu0 %v3757_v3 }
 0x182   :  { %658 = vmatprep.mubr.f32.mxu1 %v3757_v3 }
 0x184   :  { %3494 = vmatmul.mubr.msk.f32.gmra.mxu0 %vm486_vm11, %v459_v8 }
 0x185   :  { %3514 = vmatmul.mubr.msk.f32.gmra.mxu1 %vm486_vm11, %v459_v8  ;;  %575 = vmatprep.mubr.f32.mxu0 %v3757_v3 }
 0x186   :  { %664 = vmatprep.mubr.f32.mxu1 %v3757_v3 }
 0x188   :  { %3495 = vmatmul.mubr.msk.f32.gmra.mxu0 %vm486_vm11, %v460_v9  ;;  %v484_v17 = vpop.permute.xlu0 %483 }
 0x189   :  { %3515 = vmatmul.mubr.msk.f32.gmra.mxu1 %vm486_vm11, %v460_v9  ;;  %581 = vmatprep.mubr.f32.mxu0 %v3757_v3 }
 0x18a   :  { %670 = vmatprep.mubr.f32.mxu1 %v3757_v3  ;;  %v479_v24 = vpop.permute.xlu1 %478 }
 0x18c   :  { %3496 = vmatmul.mubr.msk.f32.gmra.mxu0 %vm486_vm11, %v461_v10  ;;  %v474_v63 = vpop.permute.xlu0 %473 }
 0x18d   :  { %3516 = vmatmul.mubr.msk.f32.gmra.mxu1 %vm486_vm11, %v461_v10  ;;  %797 = vmatprep.mubr.f32.mxu0 %v3757_v3 }
 0x18e   :  { %886 = vmatprep.mubr.f32.mxu1 %v3757_v3  ;;  %v469_v2 = vpop.permute.xlu1 %468 }
 0x240   :  { %v565_v11 = vpop.f32.mrf.mxu0 }
 0x241   :  { %v654_v12 = vpop.f32.mrf.mxu1 }
 0x242   :  { %v567_v13 = vpop.f32.mrf.mxu0 }
 0x243   :  { %v656_v14 = vpop.f32.mrf.mxu1  ;;  %v568_v8 = vadd.f32 %v567_v13, %v469_v2 }
 0x244   :  { %v571_v20 = vpop.f32.mrf.mxu0 }
 0x245   :  { %v660_v23 = vpop.f32.mrf.mxu1  ;;  %v572_v4 = vadd.f32 %v571_v20, %v474_v63  ;;  %v678_v13 = vmax.f32 %v568_v8, 0.0 }
 0x246   :  { %v573_v16 = vpop.f32.mrf.mxu0  ;;  %v661_v9 = vadd.f32 %v660_v23, %v474_v63 }
 0x247   :  { %v662_v19 = vpop.f32.mrf.mxu1  ;;  %v574_v34 = vadd.f32 %v573_v16, %v474_v63  ;;  %v681_v20 = vmax.f32 %v572_v4, 0.0 }
 0x248   :  { %v577_v21 = vpop.f32.mrf.mxu0  ;;  %v663_v5 = vadd.f32 %v662_v19, %v474_v63  ;;  %v683_v23 = vmax.f32 %v661_v9, 0.0 }
 0x249   :  { %v666_v15 = vpop.f32.mrf.mxu1  ;;  %v578_v29 = vadd.f32 %v577_v21, %v479_v24  ;;  %v655_v21 = vadd.f32 %v654_v12, %v469_v2  ;;  %v682_v16 = vmax.f32 %v574_v34, 0.0  ;;  %v693_v12 = vld [vmem:[%s5796_s7] sm:$0xff] }
 0x24a   :  { %v579_v18 = vpop.f32.mrf.mxu0  ;;  %v667_v0 = vadd.f32 %v666_v15, %v479_v24  ;;  %v684_v19 = vmax.f32 %v663_v5, 0.0 }
 0x24b   :  { %v668_v22 = vpop.f32.mrf.mxu1  ;;  %v580_v49 = vadd.f32 %v579_v18, %v479_v24  ;;  %v566_v18 = vadd.f32 %v565_v11, %v469_v2 }
 0x24c   :  { %v583_v25 = vpop.f32.mrf.mxu0  ;;  %v669_v42 = vadd.f32 %v668_v22, %v479_v24  ;;  %v687_v15 = vmax.f32 %v667_v0, 0.0  ;;  %v695_v22 = vld [vmem:[%s5796_s7 + $0x10] sm:$0xff]  ;;  %v696_v24 = vld [vmem:[%s5796_s7 + $0x18] sm:$0xff] }
 0x24d   :  { %v672_v26 = vpop.f32.mrf.mxu1  ;;  %v584_v27 = vadd.f32 %v583_v25, %v484_v17  ;;  %v686_v10 = vmax.f32 %v580_v49, 0.0 }
 0x24e   :  { %v585_v37 = vpop.f32.mrf.mxu0  ;;  %v673_v55 = vadd.f32 %v672_v26, %v484_v17  ;;  %v657_v26 = vadd.f32 %v656_v14, %v469_v2  ;;  %v688_v44 = vmax.f32 %v669_v42, 0.0  ;;  %v679_v14 = vmax.f32 %v655_v21, 0.0 }
 0x24f   :  { %v586_v59 = vadd.f32 %v585_v37, %v484_v17  ;;  %v674_v62 = vpop.f32.mrf.mxu1  ;;  %v689_v6 = vmax.f32 %v584_v27, 0.0  ;;  %v685_v37 = vmax.f32 %v578_v29, 0.0  ;;  %v4344_v27 = vpop.permute.xlu1 %713 }
 0x250   :  { %v675_v31 = vadd.f32 %v674_v62, %v484_v17  ;;  %v691_v25 = vmax.f32 %v673_v55, 0.0  ;;  %v677_v17 = vmax.f32 %v566_v18, 0.0  ;;  %v680_v11 = vmax.f32 %v657_v26, 0.0  ;;  %v4346_v55 = vpop.permute.xlu0 %718 }
 0x251   :  { %v690_v1 = vmax.f32 %v586_v59, 0.0 }
 0x252   :  { %v692_v7 = vmax.f32 %v675_v31, 0.0 }
 0x253   :  { %757 = vmatprep.subr.mxu0 %v690_v1  ;;  %v704_v49 = vpop.permute.xlu1 %703 }
 0x254   :  { %758 = vmatpush1.msra.mxu0 %v689_v6  ;;  %846 = vmatprep.subr.mxu1 %v692_v7  ;;  %v709_v62 = vpop.permute.xlu0 %708 }
 0x255   :  { %759 = vmatprep.subr.mxu0 %v686_v10  ;;  %847 = vmatpush1.msra.mxu1 %v691_v25 }
 0x256   :  { %760 = vmatpush1.msra.mxu0 %v685_v37  ;;  %848 = vmatprep.subr.mxu1 %v688_v44  ;;  %v694_v44 = vld [vmem:[%s5796_s7 + $0x8] sm:$0xff] }
 0x257   :  { %761 = vmatprep.subr.mxu0 %v682_v16  ;;  %849 = vmatpush1.msra.mxu1 %v687_v15  ;;  %v4348_v59 = vpop.permute.xlu1 %959 }
 0x258   :  { %762 = vmatpush1.msra.mxu0 %v681_v20  ;;  %850 = vmatprep.subr.mxu1 %v684_v19  ;;  %v4352_v6 = vpop.permute.xlu0 %964 }
 0x259   :  { %763 = vmatprep.subr.mxu0 %v678_v13  ;;  %851 = vmatpush1.msra.mxu1 %v683_v23 }
 0x25a   :  { %764 = vmatpush1.msra.mxu0 %v677_v17  ;;  %852 = vmatprep.subr.mxu1 %v680_v11 }
 0x25b   :  { %3517 = vmatmul.mubr.msk.f32.vlgmr.msra.gmra.mxu0 %vm127_vm0, %v693_v12  ;;  %853 = vmatpush1.msra.mxu1 %v679_v14  ;;  %v4350_v1 = vpop.permute.xlu1 %954 }
 0x25c   :  { %3521 = vmatmul.mubr.msk.f32.vlgmr.msra.gmra.mxu1 %vm127_vm0, %v693_v12  ;;  %803 = vmatprep.mubr.f32.mxu0 %v3757_v3  ;;  %v4354_v19 = vpop.permute.xlu0 %1004 }
 0x25d   :  { %892 = vmatprep.mubr.f32.mxu1 %v3757_v3 }
 0x25f   :  { %3518 = vmatmul.mubr.msk.f32.gmra.mxu0 %vm127_vm0, %v694_v44  ;;  %v950_v21 = vpop.permute.xlu1 %949 }
 0x260   :  { %3522 = vmatmul.mubr.msk.f32.gmra.mxu1 %vm127_vm0, %v694_v44  ;;  %809 = vmatprep.mubr.f32.mxu0 %v3757_v3 }
 0x261   :  { %898 = vmatprep.mubr.f32.mxu1 %v3757_v3 }
 0x263   :  { %3519 = vmatmul.mubr.msk.f32.gmra.mxu0 %vm127_vm0, %v695_v22 }
 0x264   :  { %3523 = vmatmul.mubr.msk.f32.gmra.mxu1 %vm127_vm0, %v695_v22  ;;  %815 = vmatprep.mubr.f32.mxu0 %v3757_v3 }
 0x265   :  { %904 = vmatprep.mubr.f32.mxu1 %v3757_v3 }
 0x267   :  { %3520 = vmatmul.mubr.msk.f32.gmra.mxu0 %vm127_vm0, %v696_v24 }
 0x268   :  { %3524 = vmatmul.mubr.msk.f32.gmra.mxu1 %vm127_vm0, %v696_v24  ;;  %1299 = vmatprep.mubr.f32.mxu0 %v3757_v3 }
 0x269   :  { %1388 = vmatprep.mubr.f32.mxu1 %v3757_v3 }
 0x31b   :  { %v799_v63 = vpop.f32.mrf.mxu0 }
 0x31c   :  { %v800_v29 = vadd.f32 %v799_v63, %v704_v49  ;;  %v888_v42 = vpop.f32.mrf.mxu1 }
 0x31d   :  { %v801_v31 = vpop.f32.mrf.mxu0  ;;  %v889_v2 = vadd.f32 %v888_v42, %v704_v49  ;;  %v990_v42 = vpop.permute.xlu1 %989 }
 0x31e   :  { %v802_v34 = vadd.f32 %v801_v31, %v704_v49  ;;  %v890_v0 = vpop.f32.mrf.mxu1  ;;  %v911_v7 = vmul.f32 0.2, %v800_v29 }
 0x31f   :  { %v891_v4 = vadd.f32 %v890_v0, %v704_v49  ;;  %v805_v5 = vpop.f32.mrf.mxu0  ;;  %v913_v25 = vmul.f32 0.2, %v889_v2 }
 0x320   :  { %v912_v8 = vmul.f32 0.2, %v802_v34  ;;  %v894_v9 = vpop.f32.mrf.mxu1  ;;  %v806_v26 = vadd.f32 %v805_v5, %v709_v62  ;;  %v927_v37 = vmax.f32 %v800_v29, %v911_v7  ;;  %v60_v29 = vld [vmem:[%s5797_s1] sm:$0xf]  ;;  %v4359_v7 = vpop.permute.xlu0 %999  ;;  %s3761_s1 = smov 126  }
 0x321   :  { %v807_v10 = vpop.f32.mrf.mxu0  ;;  %v914_v18 = vmul.f32 0.2, %v891_v4  ;;  %v929_v23 = vmax.f32 %v889_v2, %v913_v25  ;;  %v895_v12 = vadd.f32 %v894_v9, %v709_v62  ;;  %v4365_v25 = vrot.slane %v60_v29, %v68_v33 }
 0x322   :  { %v928_v16 = vmax.f32 %v802_v34, %v912_v8  ;;  %v808_v15 = vadd.f32 %v807_v10, %v709_v62  ;;  %v896_v20 = vpop.f32.mrf.mxu1  ;;  %v915_v11 = vmul.f32 0.2, %v806_v26  ;;  %v967_v14 = vmul.f32 %v950_v21, %v927_v37 }
 0x323   :  { %v811_v13 = vpop.f32.mrf.mxu0  ;;  %v930_v17 = vmax.f32 %v891_v4, %v914_v18  ;;  %v897_v44 = vadd.f32 %v896_v20, %v709_v62  ;;  %v969_v31 = vmul.f32 %v950_v21, %v929_v23  ;;  %v917_v5 = vmul.f32 0.2, %v895_v12 }
 0x324   :  { %v968_v22 = vmul.f32 %v950_v21, %v928_v16  ;;  %v916_v24 = vmul.f32 0.2, %v808_v15  ;;  %v900_v49 = vpop.f32.mrf.mxu1  ;;  %v931_v0 = vmax.f32 %v806_v26, %v915_v11  ;;  %v1007_v2 = vadd.f32 %v990_v42, %v967_v14 }
 0x325   :  { %v813_v63 = vpop.f32.mrf.mxu0  ;;  %v970_v34 = vmul.f32 %v950_v21, %v930_v17  ;;  %v918_v4 = vmul.f32 0.2, %v897_v44  ;;  %v812_v8 = vadd.f32 %v811_v13, %v4344_v27  ;;  %v4369_v18 = vrot.slane %v60_v29, %v64_v38 }
 0x326   :  { %v1008_v62 = vadd.f32 %v990_v42, %v968_v22  ;;  %v932_v9 = vmax.f32 %v808_v15, %v916_v24  ;;  %v814_v10 = vadd.f32 %v813_v63, %v4344_v27  ;;  %v902_v26 = vpop.f32.mrf.mxu1  ;;  %v1009_v37 = vadd.f32 %v990_v42, %v969_v31 }
 0x327   :  { %v1010_v21 = vadd.f32 %v990_v42, %v970_v34  ;;  %v971_v16 = vmul.f32 %v4350_v1, %v931_v0  ;;  %v933_v20 = vmax.f32 %v895_v12, %v917_v5  ;;  %v1023_v13 = vadd.f32 %v1007_v2, %v3927_v30  ;;  %v995_v30 = vpop.permute.xlu0 %994  ;;  %v817_v5 = vpop.f32.mrf.mxu0 }
 0x328   :  { %v934_v23 = vmax.f32 %v897_v44, %v918_v4  ;;  %v919_v15 = vmul.f32 0.2, %v812_v8  ;;  %v901_v17 = vadd.f32 %v900_v49, %v4344_v27  ;;  %v1024_v11 = vadd.f32 %v1008_v62, %v3929_v32 }
 0x329   :  { %v972_v33 = vmul.f32 %v4350_v1, %v932_v9  ;;  %v920_v14 = vmul.f32 0.2, %v814_v10  ;;  %v903_v38 = vadd.f32 %v902_v26, %v4344_v27  ;;  %v4379_v22 = vrot.slane %v60_v29, %v76_v39  ;;  %v906_v26 = vpop.f32.mrf.mxu1 }
 0x32a   :  { %v5802_v24 = vsub.s32 2, %v4077_v28  ;;  %v1025_v44 = vadd.f32 %v1009_v37, %v3933_v35  ;;  %v1026_v49 = vadd.f32 %v1010_v21, %v3937_v36  ;;  %v1011_v63 = vadd.f32 %v995_v30, %v971_v16 }
 0x32b   :  { %v973_v32 = vmul.f32 %v4350_v1, %v933_v20  ;;  %v974_v42 = vmul.f32 %v4350_v1, %v934_v23  ;;  %v935_v31 = vmax.f32 %v812_v8, %v919_v15  ;;  %v921_v27 = vmul.f32 0.2, %v901_v17 }
 0x32c   :  { %v4383_v12 = vrot.slane %v60_v29, %v5802_v24  ;;  %v4390_v34 = vmul.f32 %v1023_v13, %v4369_v18  ;;  %v1012_v39 = vadd.f32 %v995_v30, %v972_v33  ;;  %v936_v0 = vmax.f32 %v814_v10, %v920_v14 }
 0x32d   :  { %v922_v28 = vmul.f32 0.2, %v903_v38  ;;  %v4393_v29 = vmul.f32 %v1024_v11, %v4365_v25  ;;  %v1027_v35 = vadd.f32 %v1011_v63, %v3941_v40  ;;  %v1013_v36 = vadd.f32 %v995_v30, %v973_v32  ;;  %v819_v40 = vpop.f32.mrf.mxu0  ;;  %v908_v11 = vpop.f32.mrf.mxu1 }
 0x32e   :  { %1128 = vrot.lane.b32.xlu0 %v4390_v34, %s3761_s1  ;;  %v1014_v1 = vadd.f32 %v995_v30, %v974_v42  ;;  %v975_v2 = vmul.f32 %v4348_v59, %v935_v31  ;;  %v937_v4 = vmax.f32 %v901_v17, %v921_v27  ;;  %v4402_v8 = vmul.f32 %v1025_v44, %v4383_v12 }
 0x32f   :  { %1136 = vrot.lane.b32.xlu1 %v4393_v29, %s3761_s1  ;;  %v1028_v62 = vadd.f32 %v1012_v39, %v3945_v41  ;;  %v976_v9 = vmul.f32 %v4348_v59, %v936_v0  ;;  %v938_v10 = vmax.f32 %v903_v38, %v922_v28  ;;  %v4407_v37 = vmul.f32 %v1026_v49, %v4379_v22 }
 0x330   :  { %v1029_v21 = vadd.f32 %v1013_v36, %v3949_v43  ;;  %v818_v16 = vadd.f32 %v817_v5, %v4346_v55  ;;  %v1030_v41 = vadd.f32 %v1014_v1, %v3953_v46  ;;  %v1015_v20 = vadd.f32 %v4359_v7, %v975_v2 }
 0x331   :  { %v977_v13 = vmul.f32 %v4348_v59, %v937_v4  ;;  %v4419_v23 = vmul.f32 %v1027_v35, %v4369_v18  ;;  %v1016_v15 = vadd.f32 %v4359_v7, %v976_v9  ;;  %v978_v17 = vmul.f32 %v4348_v59, %v938_v10 }
 0x332   :  { %1144 = vrot.lane.b32.xlu0 %v4402_v8, %s3761_s1  ;;  %v820_v43 = vadd.f32 %v819_v40, %v4346_v55  ;;  %v4425_v33 = vmul.f32 %v1028_v62, %v4365_v25  ;;  %v923_v46 = vmul.f32 0.2, %v818_v16  ;;  %v907_v14 = vadd.f32 %v906_v26, %v4346_v55 }
 0x333   :  { %1152 = vrot.lane.b32.xlu1 %v4407_v37, %s3761_s1  ;;  %v1031_v38 = vadd.f32 %v1015_v20, %v3959_v47  ;;  %v1017_v24 = vadd.f32 %v4359_v7, %v977_v13  ;;  %v909_v59 = vadd.f32 %v908_v11, %v4346_v55  ;;  %v4436_v30 = vmul.f32 %v1029_v21, %v4383_v12  ;;  %v3580_v20 = vld [vmem:[%s5791_s8 + $0x38] sm:$0xff]  ;;  %v3579_v13 = vld [vmem:[%s5791_s8 + $0x30] sm:$0xff] }
 0x334   :  { %v1032_v44 = vadd.f32 %v1016_v15, %v3963_v50  ;;  %v1018_v49 = vadd.f32 %v4359_v7, %v978_v17  ;;  %v924_v63 = vmul.f32 0.2, %v820_v43  ;;  %v4441_v32 = vmul.f32 %v1030_v41, %v4379_v22  ;;  %v3529_v41 = vld [vmem:[%s5790_s6 + $0x20] sm:$0xff]  ;;  %v3578_v15 = vld [vmem:[%s5791_s8 + $0x28] sm:$0xff]  ;;  %v3591_v11 = vld [vmem:[%s5792_s9 + $0x30] sm:$0xff] }
 0x335   :  { %v1033_v47 = vadd.f32 %v1017_v24, %v3967_v51  ;;  %v939_v55 = vmax.f32 %v818_v16, %v923_v46  ;;  %v925_v42 = vmul.f32 0.2, %v907_v14  ;;  %v4449_v31 = vmul.f32 %v1031_v38, %v4369_v18  ;;  %v3577_v17 = vld [vmem:[%s5791_s8 + $0x20] sm:$0xff]  ;;  %v3596_v46 = vld [vmem:[%s5793_s10 + $0x38] sm:$0xff]  ;;  %v3595_v38 = vld [vmem:[%s5793_s10 + $0x30] sm:$0xff] }
 0x336   :  { %1130 = vrot.lane.b32.xlu0 %v4419_v23, %s3761_s1  ;;  %v1034_v50 = vadd.f32 %v1018_v49, %v3971_v53  ;;  %v940_v7 = vmax.f32 %v820_v43, %v924_v63  ;;  %v926_v27 = vmul.f32 0.2, %v909_v59  ;;  %v4453_v39 = vmul.f32 %v1032_v44, %v4365_v25  ;;  %v3592_v43 = vld [vmem:[%s5792_s9 + $0x38] sm:$0xff]  ;;  %v3589_v24 = vld [vmem:[%s5792_s9 + $0x20] sm:$0xff] }
 0x337   :  { %1138 = vrot.lane.b32.xlu1 %v4425_v33, %s3761_s1  ;;  %v979_v51 = vmul.f32 %v4352_v6, %v939_v55  ;;  %v941_v0 = vmax.f32 %v907_v14, %v925_v42  ;;  %v4461_v28 = vmul.f32 %v1033_v47, %v4383_v12  ;;  %v3590_v14 = vld [vmem:[%s5792_s9 + $0x28] sm:$0xff]  ;;  %v3593_v44 = vld [vmem:[%s5793_s10 + $0x20] sm:$0xff] }
 0x338   :  { %v980_v5 = vmul.f32 %v4352_v6, %v940_v7  ;;  %v942_v53 = vmax.f32 %v909_v59, %v926_v27  ;;  %v4465_v35 = vmul.f32 %v1034_v50, %v4379_v22  ;;  %v3594_v59 = vld [vmem:[%s5793_s10 + $0x28] sm:$0xff] }
 0x339   :  { %v1019_v36 = vadd.f32 %v4354_v19, %v979_v51  ;;  %v981_v1 = vmul.f32 %v4352_v6, %v941_v0 }
 0x33a   :  { %1146 = vrot.lane.b32.xlu0 %v4436_v30, %s3761_s1  ;;  %v1020_v2 = vadd.f32 %v4354_v19, %v980_v5  ;;  %v982_v4 = vmul.f32 %v4352_v6, %v942_v53 }
 0x33b   :  { %1154 = vrot.lane.b32.xlu1 %v4441_v32, %s3761_s1  ;;  %v1035_v62 = vadd.f32 %v1019_v36, %v3981_v57  ;;  %v1021_v9 = vadd.f32 %v4354_v19, %v981_v1 }
 0x33c   :  { %v1036_v10 = vadd.f32 %v1020_v2, %v3985_v58  ;;  %v1022_v26 = vadd.f32 %v4354_v19, %v982_v4  ;;  %v3530_v19 = vld [vmem:[%s5790_s6 + $0x28] sm:$0xff] }
 0x33d   :  { %v1037_v40 = vadd.f32 %v1021_v9, %v3989_v60  ;;  %v4485_v6 = vmul.f32 %v1035_v62, %v4369_v18  ;;  %v3532_v60 = vld [vmem:[%s5790_s6 + $0x38] sm:$0xff] }
 0x33e   :  { %1132 = vrot.lane.b32.xlu0 %v4449_v31, %s3761_s1  ;;  %v1038_v21 = vadd.f32 %v1022_v26, %v3993_v61  ;;  %v4489_v16 = vmul.f32 %v1036_v10, %v4365_v25  ;;  %v3531_v61 = vld [vmem:[%s5790_s6 + $0x30] sm:$0xff] }
 0x33f   :  { %1140 = vrot.lane.b32.xlu1 %v4453_v39, %s3761_s1  ;;  %v4496_v57 = vmul.f32 %v1037_v40, %v4383_v12 }
 0x340   :  { %v4499_v58 = vmul.f32 %v1038_v21, %v4379_v22 }
 0x342   :  { %1148 = vrot.lane.b32.xlu0 %v4461_v28, %s3761_s1 }
 0x343   :  { %1156 = vrot.lane.b32.xlu1 %v4465_v35, %s3761_s1 }
 0x346   :  { %1063 = vrot.lane.b32.xlu0 %v4449_v31, %s3762_s14 }
 0x347   :  { %1071 = vrot.lane.b32.xlu1 %v4453_v39, %s3762_s14 }
 0x34a   :  { %1079 = vrot.lane.b32.xlu0 %v4461_v28, %s3762_s14 }
 0x34b   :  { %1087 = vrot.lane.b32.xlu1 %v4465_v35, %s3762_s14 }
 0x34e   :  { %1134 = vrot.lane.b32.xlu0 %v4485_v6, %s3761_s1 }
 0x34f   :  { %1142 = vrot.lane.b32.xlu1 %v4489_v16, %s3761_s1 }
 0x352   :  { %1150 = vrot.lane.b32.xlu0 %v4496_v57, %s3761_s1 }
 0x353   :  { %1158 = vrot.lane.b32.xlu1 %v4499_v58, %s3761_s1 }
 0x356   :  { %1061 = vrot.lane.b32.xlu0 %v4419_v23, %s3762_s14 }
 0x357   :  { %1069 = vrot.lane.b32.xlu1 %v4425_v33, %s3762_s14 }
 0x35a   :  { %1065 = vrot.lane.b32.xlu0 %v4485_v6, %s3762_s14 }
 0x35b   :  { %1085 = vrot.lane.b32.xlu1 %v4441_v32, %s3762_s14 }
 0x35e   :  { %1081 = vrot.lane.b32.xlu0 %v4496_v57, %s3762_s14 }
 0x35f   :  { %1073 = vrot.lane.b32.xlu1 %v4489_v16, %s3762_s14 }
 0x362   :  { %1077 = vrot.lane.b32.xlu0 %v4436_v30, %s3762_s14 }
 0x363   :  { %1089 = vrot.lane.b32.xlu1 %v4499_v58, %s3762_s14 }
 0x366   :  { %1059 = vrot.lane.b32.xlu0 %v4390_v34, %s3762_s14 }
 0x367   :  { %1067 = vrot.lane.b32.xlu1 %v4393_v29, %s3762_s14 }
 0x36a   :  { %1075 = vrot.lane.b32.xlu0 %v4402_v8, %s3762_s14 }
 0x36b   :  { %1083 = vrot.lane.b32.xlu1 %v4407_v37, %s3762_s14 }
 0x36e   :  { %1220 = vperm.xlu0 %3755, %v3532_v60  }
 0x36f   :  { %1215 = vperm.xlu1 %3756, %v3531_v61  }
 0x372   :  { %1210 = vperm.xlu0 %3755, %v3530_v19  }
 0x373   :  { %1205 = vperm.xlu1 %3756, %v3529_v41  }
 0x376   :  { %1456 = vperm.xlu0 %3755, %v3580_v20  }
 0x377   :  { %1451 = vperm.xlu1 %3756, %v3579_v13  }
 0x37a   :  { %1446 = vperm.xlu0 %3755, %v3578_v15  }
 0x37b   :  { %1441 = vperm.xlu1 %3756, %v3577_v17  }
 0x37e   :  { %1703 = vperm.xlu0 %3755, %v3592_v43  }
 0x37f   :  { %1698 = vperm.xlu1 %3756, %v3591_v11  }
 0x382   :  { %1744 = vperm.xlu0 %3755, %v3596_v46  }
 0x383   :  { %1693 = vperm.xlu1 %3756, %v3590_v14  }
 0x386   :  { %1739 = vperm.xlu0 %3755, %v3595_v38  }
 0x387   :  { %1688 = vperm.xlu1 %3756, %v3589_v24  }
 0x38a   :  { %1734 = vperm.xlu0 %3755, %v3594_v59  }
 0x38b   :  { %1729 = vperm.xlu1 %3756, %v3593_v44  }
 0x3a0   :  { %v1129_v49 = vpop.permute.xlu0 %1128 }
 0x3a1   :  { %v1137_v63 = vpop.permute.xlu1 %1136 }
 0x3a2   :  { %v1169_v24 = vsel %vm1160_vm13, %v1129_v49, %v1137_v63 }
 0x3a4   :  { %v1145_v47 = vpop.permute.xlu0 %1144 }
 0x3a5   :  { %v1153_v55 = vpop.permute.xlu1 %1152  ;;  %v1165_v38 = vsel %vm1160_vm13, %v1137_v63, %v1145_v47 }
 0x3a6   :  { %v1173_v44 = vsel %vm1160_vm13, %v1153_v55, %v1129_v49 }
 0x3a8   :  { %v1131_v42 = vpop.permute.xlu0 %1130 }
 0x3a9   :  { %v1139_v50 = vpop.permute.xlu1 %1138 }
 0x3aa   :  { %v1170_v11 = vsel %vm1160_vm13, %v1131_v42, %v1139_v50 }
 0x3ac   :  { %v1147_v7 = vpop.permute.xlu0 %1146 }
 0x3ad   :  { %v1155_v27 = vpop.permute.xlu1 %1154  ;;  %v1166_v43 = vsel %vm1160_vm13, %v1139_v50, %v1147_v7 }
 0x3ae   :  { %v1174_v46 = vsel %vm1160_vm13, %v1155_v27, %v1131_v42  ;;  %v1162_v14 = vsel %vm1160_vm13, %v1147_v7, %v1155_v27  ;;  %v1161_v42 = vsel %vm1160_vm13, %v1145_v47, %v1153_v55 }
 0x3b0   :  { %v1133_v51 = vpop.permute.xlu0 %1132 }
 0x3b1   :  { %v1141_v0 = vpop.permute.xlu1 %1140 }
 0x3b2   :  { %v1171_v41 = vsel %vm1160_vm13, %v1133_v51, %v1141_v0 }
 0x3b4   :  { %v1149_v5 = vpop.permute.xlu0 %1148 }
 0x3b5   :  { %v1157_v53 = vpop.permute.xlu1 %1156  ;;  %v1167_v19 = vsel %vm1160_vm13, %v1141_v0, %v1149_v5 }
 0x3b6   :  { %v1175_v13 = vsel %vm1160_vm13, %v1157_v53, %v1133_v51  ;;  %v1163_v15 = vsel %vm1160_vm13, %v1149_v5, %v1157_v53 }
 0x3b8   :  { %v4565_v36 = vpop.permute.xlu0 %1063 }
 0x3b9   :  { %v4567_v1 = vpop.permute.xlu1 %1071 }
 0x3ba   :  { %v1102_v5 = vsel %vm1091_vm3, %v4565_v36, %v4567_v1 }
 0x3bc   :  { %v4569_v2 = vpop.permute.xlu0 %1079 }
 0x3bd   :  { %v4571_v4 = vpop.permute.xlu1 %1087 }
 0x3be   :  { %v1106_v53 = vsel %vm1091_vm3, %v4571_v4, %v4565_v36 }
 0x3c0   :  { %v1135_v62 = vpop.permute.xlu0 %1134 }
 0x3c1   :  { %v1143_v9 = vpop.permute.xlu1 %1142 }
 0x3c2   :  { %v1172_v21 = vsel %vm1160_vm13, %v1135_v62, %v1143_v9 }
 0x3c4   :  { %v1151_v10 = vpop.permute.xlu0 %1150 }
 0x3c5   :  { %v1159_v26 = vpop.permute.xlu1 %1158  ;;  %v1168_v40 = vsel %vm1160_vm13, %v1143_v9, %v1151_v10  ;;  %v1094_v9 = vsel %vm1091_vm3, %v4569_v2, %v4571_v4 }
 0x3c6   :  { %v1164_v60 = vsel %vm1160_vm13, %v1151_v10, %v1159_v26  ;;  %3533 = vmatprep.subr.msk.mxu0 %vm1125_vm12, %v1168_v40  ;;  %v1176_v61 = vsel %vm1160_vm13, %v1159_v26, %v1135_v62  ;;  %v1098_v10 = vsel %vm1091_vm3, %v4567_v1, %v4569_v2  ;;  %vm1796_vm13 = vcmp.ge.s32.totalorder %v4096_v45, 4 }
 0x3c7   :  { %3534 = vmatpush1.msk.msra.mxu0 %vm1124_vm14, %v1172_v21  ;;  %3553 = vmatprep.subr.msk.mxu1 %vm1127_vm15, %v1176_v61  ;;  %v3525_v61 = vld [vmem:[%s5795_s5 + $0x20] sm:$0xff] }
 0x3c8   :  { %3535 = vmatprep.subr.msk.mxu0 %vm1125_vm12, %v1167_v19  ;;  %v4598_v20 = vpop.permute.xlu0 %1061  ;;  %3554 = vmatpush1.msk.msra.mxu1 %vm1126_vm1, %v1164_v60 }
 0x3c9   :  { %3536 = vmatpush1.msk.msra.mxu0 %vm1124_vm14, %v1171_v41  ;;  %v4608_v17 = vpop.permute.xlu1 %1069  ;;  %3555 = vmatprep.subr.msk.mxu1 %vm1127_vm15, %v1175_v13  ;;  %v3526_v13 = vld [vmem:[%s5795_s5 + $0x28] sm:$0xff] }
 0x3ca   :  { %3537 = vmatprep.subr.msk.mxu0 %vm1125_vm12, %v1166_v43  ;;  %3556 = vmatpush1.msk.msra.mxu1 %vm1126_vm1, %v1163_v15  ;;  %v1101_v36 = vsel %vm1091_vm3, %v4598_v20, %v4608_v17  ;;  %v3527_v15 = vld [vmem:[%s5795_s5 + $0x30] sm:$0xff] }
 0x3cb   :  { %3538 = vmatpush1.msk.msra.mxu0 %vm1124_vm14, %v1170_v11  ;;  %3557 = vmatprep.subr.msk.mxu1 %vm1127_vm15, %v1174_v46 }
 0x3cc   :  { %3539 = vmatprep.subr.msk.mxu0 %vm1125_vm12, %v1165_v38  ;;  %v1066_v59 = vpop.permute.xlu0 %1065  ;;  %3558 = vmatpush1.msk.msra.mxu1 %vm1126_vm1, %v1162_v14  ;;  %vm1866_vm12 = vcmp.lt.s32.totalorder %v4110_v56, 252 }
 0x3cd   :  { %3540 = vmatpush1.msk.msra.mxu0 %vm1124_vm14, %v1169_v24  ;;  %v1086_v50 = vpop.permute.xlu1 %1085  ;;  %3559 = vmatprep.subr.msk.mxu1 %vm1127_vm15, %v1173_v44  ;;  %vm1831_vm14 = vcmp.lt.s32.totalorder %v4098_v48, 4  ;;  %vm1795_vm15 = vcmp.ge.s32.totalorder %v4102_v52, 4 }
 0x3ce   :  { %1251 = vmatprep.subr.mxu0 %v4489_v16  ;;  %3560 = vmatpush1.msk.msra.mxu1 %vm1126_vm1, %v1161_v42  ;;  %v1105_v4 = vsel %vm1091_vm3, %v1086_v50, %v4598_v20  ;;  %vm1798_vm1 = vcmp.ge.s32.totalorder %v4106_v54, 4 }
 0x3cf   :  { %1252 = vmatpush1.msra.mxu0 %v4485_v6  ;;  %1340 = vmatprep.subr.mxu1 %v4499_v58 }
 0x3d0   :  { %1253 = vmatprep.subr.mxu0 %v4453_v39  ;;  %v1082_v49 = vpop.permute.xlu0 %1081  ;;  %1341 = vmatpush1.msra.mxu1 %v4496_v57 }
 0x3d1   :  { %1254 = vmatpush1.msra.mxu0 %v4449_v31  ;;  %v1074_v63 = vpop.permute.xlu1 %1073  ;;  %1342 = vmatprep.subr.mxu1 %v4465_v35 }
 0x3d2   :  { %1255 = vmatprep.subr.mxu0 %v4425_v33  ;;  %1343 = vmatpush1.msra.mxu1 %v4461_v28  ;;  %v1103_v7 = vsel %vm1091_vm3, %v1066_v59, %v1074_v63  ;;  %v1099_v0 = vsel %vm1091_vm3, %v1074_v63, %v1082_v49 }
 0x3d3   :  { %1256 = vmatpush1.msra.mxu0 %v4419_v23  ;;  %1344 = vmatprep.subr.mxu1 %v4441_v32 }
 0x3d4   :  { %1257 = vmatprep.subr.mxu0 %v4393_v29  ;;  %v1078_v47 = vpop.permute.xlu0 %1077  ;;  %1345 = vmatpush1.msra.mxu1 %v4436_v30 }
 0x3d5   :  { %1258 = vmatpush1.msra.mxu0 %v4390_v34  ;;  %v1090_v55 = vpop.permute.xlu1 %1089  ;;  %1346 = vmatprep.subr.mxu1 %v4407_v37  ;;  %v1093_v1 = vsel %vm1091_vm3, %v1078_v47, %v1086_v50  ;;  %v1097_v40 = vsel %vm1091_vm3, %v4608_v17, %v1078_v47  ;;  %v3528_v17 = vld [vmem:[%s5795_s5 + $0x38] sm:$0xff] }
 0x3d6   :  { %v1107_v27 = vsel %vm1091_vm3, %v1090_v55, %v1066_v59  ;;  %3541 = vmatprep.subr.msk.mxu0 %vm1056_vm2, %v1103_v7  ;;  %1347 = vmatpush1.msra.mxu1 %v4402_v8  ;;  %v1095_v51 = vsel %vm1091_vm3, %v1082_v49, %v1090_v55 }
 0x3d7   :  { %3542 = vmatpush1.msk.msra.mxu0 %vm1055_vm4, %v1107_v27  ;;  %3561 = vmatprep.subr.msk.mxu1 %vm1058_vm5, %v1095_v51 }
 0x3d8   :  { %v1060_v62 = vpop.permute.xlu0 %1059  ;;  %3543 = vmatprep.subr.msk.mxu0 %vm1056_vm2, %v1102_v5  ;;  %3562 = vmatpush1.msk.msra.mxu1 %vm1057_vm6, %v1099_v0 }
 0x3d9   :  { %v1068_v26 = vpop.permute.xlu1 %1067  ;;  %3544 = vmatpush1.msk.msra.mxu0 %vm1055_vm4, %v1106_v53  ;;  %3563 = vmatprep.subr.msk.mxu1 %vm1058_vm5, %v1094_v9 }
 0x3da   :  { %3545 = vmatprep.subr.msk.mxu0 %vm1056_vm2, %v1101_v36  ;;  %3564 = vmatpush1.msk.msra.mxu1 %vm1057_vm6, %v1098_v10  ;;  %v1100_v2 = vsel %vm1091_vm3, %v1060_v62, %v1068_v26 }
 0x3db   :  { %3546 = vmatpush1.msk.msra.mxu0 %vm1055_vm4, %v1105_v4  ;;  %3565 = vmatprep.subr.msk.mxu1 %vm1058_vm5, %v1093_v1 }
 0x3dc   :  { %v1076_v21 = vpop.permute.xlu0 %1075  ;;  %3547 = vmatprep.subr.msk.mxu0 %vm1056_vm2, %v1100_v2  ;;  %3566 = vmatpush1.msk.msra.mxu1 %vm1057_vm6, %v1097_v40  ;;  %vm1797_vm2 = vcmp.ge.s32.totalorder %v4110_v56, 4 }
 0x3dd   :  { %v1084_v60 = vpop.permute.xlu1 %1083  ;;  %v1096_v20 = vsel %vm1091_vm3, %v1068_v26, %v1076_v21 }
 0x3de   :  { %v1104_v19 = vsel %vm1091_vm3, %v1084_v60, %v1060_v62  ;;  %v1092_v41 = vsel %vm1091_vm3, %v1076_v21, %v1084_v60  ;;  %vm2605_vm3 = vcmp.lt.s32.totalorder %v4096_v45, 248 }
 0x3df   :  { %3548 = vmatpush1.msk.msra.mxu0 %vm1055_vm4, %v1104_v19  ;;  %3567 = vmatprep.subr.msk.mxu1 %vm1058_vm5, %v1092_v41  ;;  %vm2640_vm4 = vcmp.lt.s32.totalorder %v4098_v48, 120  ;;  %vm2604_vm5 = vcmp.lt.s32.totalorder %v4102_v52, 248 }
 0x3e0   :  { %3549 = vmatmul.mubr.msk.f32.vlgmr.msra.gmra.mxu0 %vm486_vm11, %v3525_v61  ;;  %3568 = vmatpush1.msk.msra.mxu1 %vm1057_vm6, %v1096_v20  ;;  %vm2607_vm6 = vcmp.lt.s32.totalorder %v4106_v54, 248 }
 0x3e1   :  { %3569 = vmatmul.mubr.msk.f32.vlgmr.msra.gmra.mxu1 %vm486_vm11, %v3525_v61  ;;  %1305 = vmatprep.mubr.f32.mxu0 %v3757_v3 }
 0x3e2   :  { %1394 = vmatprep.mubr.f32.mxu1 %v3757_v3 }
 0x3e4   :  { %3550 = vmatmul.mubr.msk.f32.gmra.mxu0 %vm486_vm11, %v3526_v13 }
 0x3e5   :  { %3570 = vmatmul.mubr.msk.f32.gmra.mxu1 %vm486_vm11, %v3526_v13  ;;  %1311 = vmatprep.mubr.f32.mxu0 %v3757_v3 }
 0x3e6   :  { %1400 = vmatprep.mubr.f32.mxu1 %v3757_v3 }
 0x3e8   :  { %3551 = vmatmul.mubr.msk.f32.gmra.mxu0 %vm486_vm11, %v3527_v15 }
 0x3e9   :  { %3571 = vmatmul.mubr.msk.f32.gmra.mxu1 %vm486_vm11, %v3527_v15  ;;  %1317 = vmatprep.mubr.f32.mxu0 %v3757_v3  ;;  %v1221_v49 = vpop.permute.xlu0 %1220 }
 0x3ea   :  { %1406 = vmatprep.mubr.f32.mxu1 %v3757_v3  ;;  %v1216_v55 = vpop.permute.xlu1 %1215 }
 0x3ec   :  { %3552 = vmatmul.mubr.msk.f32.gmra.mxu0 %vm486_vm11, %v3528_v17 }
 0x3ed   :  { %3572 = vmatmul.mubr.msk.f32.gmra.mxu1 %vm486_vm11, %v3528_v17  ;;  %1535 = vmatprep.mubr.f32.mxu0 %v3757_v3  ;;  %v1211_v10 = vpop.permute.xlu0 %1210 }
 0x3ee   :  { %1624 = vmatprep.mubr.f32.mxu1 %v3757_v3  ;;  %v1206_v21 = vpop.permute.xlu1 %1205 }
 0x4a0   :  { %v1301_v43 = vpop.f32.mrf.mxu0 }
 0x4a1   :  { %v1390_v11 = vpop.f32.mrf.mxu1 }
 0x4a2   :  { %v1303_v46 = vpop.f32.mrf.mxu0 }
 0x4a3   :  { %v1392_v14 = vpop.f32.mrf.mxu1  ;;  %v1304_v20 = vadd.f32 %v1303_v46, %v1206_v21 }
 0x4a4   :  { %v1307_v38 = vpop.f32.mrf.mxu0 }
 0x4a5   :  { %v1396_v24 = vpop.f32.mrf.mxu1  ;;  %v1308_v60 = vadd.f32 %v1307_v38, %v1211_v10  ;;  %v1414_v46 = vmax.f32 %v1304_v20, 0.0 }
 0x4a6   :  { %v1309_v59 = vpop.f32.mrf.mxu0  ;;  %v1397_v13 = vadd.f32 %v1396_v24, %v1211_v10 }
 0x4a7   :  { %v1398_v44 = vpop.f32.mrf.mxu1  ;;  %v1310_v1 = vadd.f32 %v1309_v59, %v1211_v10  ;;  %v1417_v38 = vmax.f32 %v1308_v60, 0.0 }
 0x4a8   :  { %v1313_v42 = vpop.f32.mrf.mxu0  ;;  %v1399_v61 = vadd.f32 %v1398_v44, %v1211_v10  ;;  %v1419_v24 = vmax.f32 %v1397_v13, 0.0 }
 0x4a9   :  { %v1402_v50 = vpop.f32.mrf.mxu1  ;;  %v1314_v26 = vadd.f32 %v1313_v42, %v1216_v55  ;;  %v1391_v42 = vadd.f32 %v1390_v11, %v1206_v21  ;;  %v1418_v59 = vmax.f32 %v1310_v1, 0.0  ;;  %v3573_v11 = vld [vmem:[%s5796_s7 + $0x20] sm:$0xff] }
 0x4aa   :  { %v1315_v63 = vpop.f32.mrf.mxu0  ;;  %v1403_v2 = vadd.f32 %v1402_v50, %v1216_v55  ;;  %v1420_v44 = vmax.f32 %v1399_v61, 0.0 }
 0x4ab   :  { %v1404_v47 = vpop.f32.mrf.mxu1  ;;  %v1316_v5 = vadd.f32 %v1315_v63, %v1216_v55  ;;  %v1302_v63 = vadd.f32 %v1301_v43, %v1206_v21 }
 0x4ac   :  { %v1319_v7 = vpop.f32.mrf.mxu0  ;;  %v1405_v36 = vadd.f32 %v1404_v47, %v1216_v55  ;;  %v1423_v50 = vmax.f32 %v1403_v2, 0.0  ;;  %v3574_v47 = vld [vmem:[%s5796_s7 + $0x28] sm:$0xff]  ;;  %v3575_v55 = vld [vmem:[%s5796_s7 + $0x30] sm:$0xff] }
 0x4ad   :  { %v1408_v27 = vpop.f32.mrf.mxu1  ;;  %v1320_v51 = vadd.f32 %v1319_v7, %v1221_v49  ;;  %v1422_v15 = vmax.f32 %v1316_v5, 0.0  ;;  %v1393_v7 = vadd.f32 %v1392_v14, %v1206_v21  ;;  %v1415_v14 = vmax.f32 %v1391_v42, 0.0  ;;  %v4799_v5 = vpop.permute.xlu1 %1451 }
 0x4ae   :  { %v1321_v0 = vpop.f32.mrf.mxu0  ;;  %v1409_v53 = vadd.f32 %v1408_v27, %v1221_v49  ;;  %v1421_v27 = vmax.f32 %v1314_v26, 0.0 }
 0x4af   :  { %v1322_v62 = vadd.f32 %v1321_v0, %v1221_v49  ;;  %v1410_v9 = vpop.f32.mrf.mxu1  ;;  %v1425_v19 = vmax.f32 %v1320_v51, 0.0  ;;  %v1424_v0 = vmax.f32 %v1405_v36, 0.0  ;;  %v1416_v43 = vmax.f32 %v1393_v7, 0.0  ;;  %v3576_v51 = vld [vmem:[%s5796_s7 + $0x38] sm:$0xff] }
 0x4b0   :  { %v1411_v4 = vadd.f32 %v1410_v9, %v1221_v49  ;;  %v1427_v17 = vmax.f32 %v1409_v53, 0.0  ;;  %v1413_v49 = vmax.f32 %v1302_v63, 0.0 }
 0x4b1   :  { %v1426_v40 = vmax.f32 %v1322_v62, 0.0  ;;  %v1442_v53 = vpop.permute.xlu1 %1441  ;;  %v4801_v62 = vpop.permute.xlu0 %1456 }
 0x4b2   :  { %v1428_v41 = vmax.f32 %v1411_v4, 0.0 }
 0x4b3   :  { %1495 = vmatprep.subr.mxu0 %v1426_v40 }
 0x4b4   :  { %1496 = vmatpush1.msra.mxu0 %v1425_v19  ;;  %1584 = vmatprep.subr.mxu1 %v1428_v41 }
 0x4b5   :  { %1497 = vmatprep.subr.mxu0 %v1422_v15  ;;  %1585 = vmatpush1.msra.mxu1 %v1427_v17  ;;  %v4803_v9 = vpop.permute.xlu1 %1698  ;;  %v1447_v10 = vpop.permute.xlu0 %1446 }
 0x4b6   :  { %1498 = vmatpush1.msra.mxu0 %v1421_v27  ;;  %1586 = vmatprep.subr.mxu1 %v1424_v0 }
 0x4b7   :  { %1499 = vmatprep.subr.mxu0 %v1418_v59  ;;  %1587 = vmatpush1.msra.mxu1 %v1423_v50 }
 0x4b8   :  { %1500 = vmatpush1.msra.mxu0 %v1417_v38  ;;  %1588 = vmatprep.subr.mxu1 %v1420_v44 }
 0x4b9   :  { %1501 = vmatprep.subr.mxu0 %v1414_v46  ;;  %1589 = vmatpush1.msra.mxu1 %v1419_v24  ;;  %v1694_v21 = vpop.permute.xlu1 %1693  ;;  %v4805_v41 = vpop.permute.xlu0 %1703 }
 0x4ba   :  { %1502 = vmatpush1.msra.mxu0 %v1413_v49  ;;  %1590 = vmatprep.subr.mxu1 %v1416_v43 }
 0x4bb   :  { %3581 = vmatmul.mubr.msk.f32.vlgmr.msra.gmra.mxu0 %vm127_vm0, %v3573_v11  ;;  %1591 = vmatpush1.msra.mxu1 %v1415_v14 }
 0x4bc   :  { %3585 = vmatmul.mubr.msk.f32.vlgmr.msra.gmra.mxu1 %vm127_vm0, %v3573_v11  ;;  %1541 = vmatprep.mubr.f32.mxu0 %v3757_v3 }
 0x4bd   :  { %1630 = vmatprep.mubr.f32.mxu1 %v3757_v3  ;;  %v1689_v42 = vpop.permute.xlu1 %1688  ;;  %v4807_v44 = vpop.permute.xlu0 %1744 }
 0x4bf   :  { %3582 = vmatmul.mubr.msk.f32.gmra.mxu0 %vm127_vm0, %v3574_v47 }
 0x4c0   :  { %3586 = vmatmul.mubr.msk.f32.gmra.mxu1 %vm127_vm0, %v3574_v47  ;;  %1547 = vmatprep.mubr.f32.mxu0 %v3757_v3 }
 0x4c1   :  { %1636 = vmatprep.mubr.f32.mxu1 %v3757_v3 }
 0x4c3   :  { %3583 = vmatmul.mubr.msk.f32.gmra.mxu0 %vm127_vm0, %v3575_v55 }
 0x4c4   :  { %3587 = vmatmul.mubr.msk.f32.gmra.mxu1 %vm127_vm0, %v3575_v55  ;;  %1553 = vmatprep.mubr.f32.mxu0 %v3757_v3 }
 0x4c5   :  { %1642 = vmatprep.mubr.f32.mxu1 %v3757_v3 }
 0x4c7   :  { %3584 = vmatmul.mubr.msk.f32.gmra.mxu0 %vm127_vm0, %v3576_v51 }
 0x4c8   :  { %3588 = vmatmul.mubr.msk.f32.gmra.mxu1 %vm127_vm0, %v3576_v51  ;;  %2039 = vmatprep.mubr.f32.mxu0 %v3757_v3 }
 0x4c9   :  { %2128 = vmatprep.mubr.f32.mxu1 %v3757_v3 }
 0x57b   :  { %v1537_v26 = vpop.f32.mrf.mxu0 }
 0x57c   :  { %v1538_v36 = vadd.f32 %v1537_v26, %v1442_v53  ;;  %v1626_v4 = vpop.f32.mrf.mxu1 }
 0x57d   :  { %v1539_v1 = vpop.f32.mrf.mxu0  ;;  %v1627_v60 = vadd.f32 %v1626_v4, %v1442_v53  ;;  %v1730_v4 = vpop.permute.xlu1 %1729 }
 0x57e   :  { %v1540_v2 = vadd.f32 %v1539_v1, %v1442_v53  ;;  %v1628_v40 = vpop.f32.mrf.mxu1  ;;  %v1649_v20 = vmul.f32 0.2, %v1538_v36 }
 0x57f   :  { %v1629_v61 = vadd.f32 %v1628_v40, %v1442_v53  ;;  %v1543_v19 = vpop.f32.mrf.mxu0  ;;  %v1651_v63 = vmul.f32 0.2, %v1627_v60 }
 0x580   :  { %v1650_v13 = vmul.f32 0.2, %v1540_v2  ;;  %v1632_v15 = vpop.f32.mrf.mxu1  ;;  %v1544_v27 = vadd.f32 %v1543_v19, %v1447_v10  ;;  %v1665_v0 = vmax.f32 %v1538_v36, %v1649_v20  ;;  %v4809_v19 = vpop.permute.xlu0 %1739 }
 0x581   :  { %v1545_v17 = vpop.f32.mrf.mxu0  ;;  %v1652_v7 = vmul.f32 0.2, %v1629_v61  ;;  %v1667_v24 = vmax.f32 %v1627_v60, %v1651_v63  ;;  %v1633_v11 = vadd.f32 %v1632_v15, %v1447_v10 }
 0x582   :  { %v1666_v59 = vmax.f32 %v1540_v2, %v1650_v13  ;;  %v1546_v50 = vadd.f32 %v1545_v17, %v1447_v10  ;;  %v1634_v38 = vpop.f32.mrf.mxu1  ;;  %v1653_v43 = vmul.f32 0.2, %v1544_v27  ;;  %v1706_v14 = vmul.f32 %v1689_v42, %v1665_v0 }
 0x583   :  { %v1549_v46 = vpop.f32.mrf.mxu0  ;;  %v1668_v49 = vmax.f32 %v1629_v61, %v1652_v7  ;;  %v1635_v47 = vadd.f32 %v1634_v38, %v1447_v10  ;;  %v1708_v1 = vmul.f32 %v1689_v42, %v1667_v24  ;;  %v1655_v2 = vmul.f32 0.2, %v1633_v11 }
 0x584   :  { %v1707_v55 = vmul.f32 %v1689_v42, %v1666_v59  ;;  %v1654_v51 = vmul.f32 0.2, %v1546_v50  ;;  %v1638_v53 = vpop.f32.mrf.mxu1  ;;  %v1669_v40 = vmax.f32 %v1544_v27, %v1653_v43  ;;  %v1747_v20 = vadd.f32 %v1730_v4, %v1706_v14 }
 0x585   :  { %v1551_v26 = vpop.f32.mrf.mxu0  ;;  %v1709_v36 = vmul.f32 %v1689_v42, %v1668_v49  ;;  %v1656_v13 = vmul.f32 0.2, %v1635_v47  ;;  %v1550_v60 = vadd.f32 %v1549_v46, %v4799_v5  ;;  %v1749_v63 = vadd.f32 %v1730_v4, %v1708_v1 }
 0x586   :  { %v1748_v61 = vadd.f32 %v1730_v4, %v1707_v55  ;;  %v1670_v17 = vmax.f32 %v1546_v50, %v1654_v51  ;;  %v1552_v15 = vadd.f32 %v1551_v26, %v4799_v5  ;;  %v1640_v10 = vpop.f32.mrf.mxu1  ;;  %v1710_v0 = vmul.f32 %v1694_v21, %v1669_v40  ;;  %v1735_v50 = vpop.permute.xlu0 %1734 }
 0x587   :  { %v1750_v7 = vadd.f32 %v1730_v4, %v1709_v36  ;;  %v1671_v59 = vmax.f32 %v1633_v11, %v1655_v2  ;;  %v1763_v38 = vadd.f32 %v1747_v20, %v4390_v34  ;;  %v1672_v42 = vmax.f32 %v1635_v47, %v1656_v13 }
 0x588   :  { %v1657_v27 = vmul.f32 0.2, %v1550_v60  ;;  %v1639_v24 = vadd.f32 %v1638_v53, %v4799_v5  ;;  %v1764_v49 = vadd.f32 %v1748_v61, %v4393_v29  ;;  %v1711_v43 = vmul.f32 %v1694_v21, %v1670_v17 }
 0x589   :  { %v1658_v14 = vmul.f32 0.2, %v1552_v15  ;;  %v1641_v46 = vadd.f32 %v1640_v10, %v4799_v5  ;;  %v1765_v55 = vadd.f32 %v1749_v63, %v4402_v8  ;;  %v1766_v51 = vadd.f32 %v1750_v7, %v4407_v37  ;;  %v1555_v5 = vpop.f32.mrf.mxu0 }
 0x58a   :  { %v1751_v26 = vadd.f32 %v1735_v50, %v1710_v0  ;;  %v1712_v4 = vmul.f32 %v1694_v21, %v1671_v59  ;;  %v1713_v11 = vmul.f32 %v1694_v21, %v1672_v42  ;;  %v1673_v1 = vmax.f32 %v1550_v60, %v1657_v27 }
 0x58b   :  { %v1659_v34 = vmul.f32 0.2, %v1639_v24  ;;  %v4820_v47 = vmul.f32 %v1763_v38, %v4369_v18  ;;  %v1752_v53 = vadd.f32 %v1735_v50, %v1711_v43  ;;  %v1674_v36 = vmax.f32 %v1552_v15, %v1658_v14  ;;  %v1644_v15 = vpop.f32.mrf.mxu1 }
 0x58c   :  { %v1660_v29 = vmul.f32 0.2, %v1641_v46  ;;  %v4823_v40 = vmul.f32 %v1764_v49, %v4365_v25  ;;  %v1767_v8 = vadd.f32 %v1751_v26, %v4419_v23  ;;  %v1753_v37 = vadd.f32 %v1735_v50, %v1712_v4  ;;  %v1557_v23 = vpop.f32.mrf.mxu0 }
 0x58d   :  { %1868 = vrot.lane.b32.xlu0 %v4820_v47, %s3763_s18  ;;  %v1754_v21 = vadd.f32 %v1735_v50, %v1713_v11  ;;  %v1714_v2 = vmul.f32 %v4803_v9, %v1673_v1  ;;  %v1675_v20 = vmax.f32 %v1639_v24, %v1659_v34  ;;  %v4832_v13 = vmul.f32 %v1765_v55, %v4383_v12  ;;  %v1646_v24 = vpop.f32.mrf.mxu1 }
 0x58e   :  { %1876 = vrot.lane.b32.xlu1 %v4823_v40, %s3763_s18  ;;  %v1768_v60 = vadd.f32 %v1752_v53, %v4425_v33  ;;  %v1715_v61 = vmul.f32 %v4803_v9, %v1674_v36  ;;  %v1676_v17 = vmax.f32 %v1641_v46, %v1660_v29  ;;  %v4837_v10 = vmul.f32 %v1766_v51, %v4379_v22 }
 0x58f   :  { %v1769_v63 = vadd.f32 %v1753_v37, %v4436_v30  ;;  %v1556_v7 = vadd.f32 %v1555_v5, %v4801_v62  ;;  %v1770_v33 = vadd.f32 %v1754_v21, %v4441_v32  ;;  %v1755_v0 = vadd.f32 %v4809_v19, %v1714_v2 }
 0x590   :  { %v1716_v59 = vmul.f32 %v4803_v9, %v1675_v20  ;;  %v4849_v38 = vmul.f32 %v1767_v8, %v4369_v18  ;;  %v1756_v42 = vadd.f32 %v4809_v19, %v1715_v61  ;;  %v1717_v27 = vmul.f32 %v4803_v9, %v1676_v17 }
 0x591   :  { %1884 = vrot.lane.b32.xlu0 %v4832_v13, %s3763_s18  ;;  %v1558_v30 = vadd.f32 %v1557_v23, %v4801_v62  ;;  %v4855_v49 = vmul.f32 %v1768_v60, %v4365_v25  ;;  %v1661_v32 = vmul.f32 0.2, %v1556_v7  ;;  %v1645_v43 = vadd.f32 %v1644_v15, %v4801_v62 }
 0x592   :  { %1892 = vrot.lane.b32.xlu1 %v4837_v10, %s3763_s18  ;;  %v1771_v14 = vadd.f32 %v1755_v0, %v4449_v31  ;;  %v1757_v46 = vadd.f32 %v4809_v19, %v1716_v59  ;;  %v1647_v9 = vadd.f32 %v1646_v24, %v4801_v62  ;;  %v4866_v50 = vmul.f32 %v1769_v63, %v4383_v12  ;;  %v3652_v0 = vld [vmem:[%s5791_s8 + $0x58] sm:$0xff]  ;;  %v3651_v59 = vld [vmem:[%s5791_s8 + $0x50] sm:$0xff] }
 0x593   :  { %v1772_v55 = vadd.f32 %v1756_v42, %v4453_v39  ;;  %v1758_v51 = vadd.f32 %v4809_v19, %v1717_v27  ;;  %v1662_v26 = vmul.f32 0.2, %v1558_v30  ;;  %v4871_v4 = vmul.f32 %v1770_v33, %v4379_v22  ;;  %v3601_v33 = vld [vmem:[%s5790_s6 + $0x40] sm:$0xff]  ;;  %v3650_v42 = vld [vmem:[%s5791_s8 + $0x48] sm:$0xff]  ;;  %v3663_v24 = vld [vmem:[%s5792_s9 + $0x50] sm:$0xff] }
 0x594   :  { %v1773_v31 = vadd.f32 %v1757_v46, %v4461_v28  ;;  %v1677_v62 = vmax.f32 %v1556_v7, %v1661_v32  ;;  %v1663_v11 = vmul.f32 0.2, %v1645_v43  ;;  %v4879_v1 = vmul.f32 %v1771_v14, %v4369_v18  ;;  %v3649_v27 = vld [vmem:[%s5791_s8 + $0x40] sm:$0xff]  ;;  %v3668_v32 = vld [vmem:[%s5793_s10 + $0x58] sm:$0xff]  ;;  %v3667_v14 = vld [vmem:[%s5793_s10 + $0x50] sm:$0xff] }
 0x595   :  { %1870 = vrot.lane.b32.xlu0 %v4849_v38, %s3763_s18  ;;  %v1774_v39 = vadd.f32 %v1758_v51, %v4465_v35  ;;  %v1678_v19 = vmax.f32 %v1558_v30, %v1662_v26  ;;  %v1664_v34 = vmul.f32 0.2, %v1647_v9  ;;  %v4883_v53 = vmul.f32 %v1772_v55, %v4365_v25  ;;  %v3664_v30 = vld [vmem:[%s5792_s9 + $0x58] sm:$0xff]  ;;  %v3661_v46 = vld [vmem:[%s5792_s9 + $0x40] sm:$0xff] }
 0x596   :  { %1878 = vrot.lane.b32.xlu1 %v4855_v49, %s3763_s18  ;;  %v1718_v28 = vmul.f32 %v4805_v41, %v1677_v62  ;;  %v1679_v36 = vmax.f32 %v1645_v43, %v1663_v11  ;;  %v4891_v29 = vmul.f32 %v1773_v31, %v4383_v12  ;;  %v3662_v43 = vld [vmem:[%s5792_s9 + $0x48] sm:$0xff]  ;;  %v3665_v55 = vld [vmem:[%s5793_s10 + $0x40] sm:$0xff] }
 0x597   :  { %v1719_v5 = vmul.f32 %v4805_v41, %v1678_v19  ;;  %v1680_v35 = vmax.f32 %v1647_v9, %v1664_v34  ;;  %v4895_v8 = vmul.f32 %v1774_v39, %v4379_v22  ;;  %v3666_v9 = vld [vmem:[%s5793_s10 + $0x48] sm:$0xff] }
 0x598   :  { %v1759_v37 = vadd.f32 %v4807_v44, %v1718_v28  ;;  %v1720_v21 = vmul.f32 %v4805_v41, %v1679_v36 }
 0x599   :  { %1886 = vrot.lane.b32.xlu0 %v4866_v50, %s3763_s18  ;;  %v1760_v2 = vadd.f32 %v4807_v44, %v1719_v5  ;;  %v1721_v20 = vmul.f32 %v4805_v41, %v1680_v35 }
 0x59a   :  { %1894 = vrot.lane.b32.xlu1 %v4871_v4, %s3763_s18  ;;  %v1775_v60 = vadd.f32 %v1759_v37, %v4485_v6  ;;  %v1761_v61 = vadd.f32 %v4807_v44, %v1720_v21 }
 0x59b   :  { %v1776_v17 = vadd.f32 %v1760_v2, %v4489_v16  ;;  %v1762_v15 = vadd.f32 %v4807_v44, %v1721_v20  ;;  %v3602_v44 = vld [vmem:[%s5790_s6 + $0x48] sm:$0xff] }
 0x59c   :  { %v1777_v23 = vadd.f32 %v1761_v61, %v4496_v57  ;;  %v4915_v41 = vmul.f32 %v1775_v60, %v4369_v18  ;;  %v3604_v57 = vld [vmem:[%s5790_s6 + $0x58] sm:$0xff] }
 0x59d   :  { %1872 = vrot.lane.b32.xlu0 %v4879_v1, %s3763_s18  ;;  %v1778_v63 = vadd.f32 %v1762_v15, %v4499_v58  ;;  %v4919_v7 = vmul.f32 %v1776_v17, %v4365_v25  ;;  %v3603_v58 = vld [vmem:[%s5790_s6 + $0x50] sm:$0xff] }
 0x59e   :  { %1880 = vrot.lane.b32.xlu1 %v4883_v53, %s3763_s18  ;;  %v4926_v6 = vmul.f32 %v1777_v23, %v4383_v12 }
 0x59f   :  { %v4929_v16 = vmul.f32 %v1778_v63, %v4379_v22 }
 0x5a1   :  { %1888 = vrot.lane.b32.xlu0 %v4891_v29, %s3763_s18 }
 0x5a2   :  { %1896 = vrot.lane.b32.xlu1 %v4895_v8, %s3763_s18 }
 0x5a5   :  { %1803 = vrot.lane.b32.xlu0 %v4879_v1, %s3764_s19 }
 0x5a6   :  { %1811 = vrot.lane.b32.xlu1 %v4883_v53, %s3764_s19 }
 0x5a9   :  { %1819 = vrot.lane.b32.xlu0 %v4891_v29, %s3764_s19 }
 0x5aa   :  { %1827 = vrot.lane.b32.xlu1 %v4895_v8, %s3764_s19 }
 0x5ad   :  { %1874 = vrot.lane.b32.xlu0 %v4915_v41, %s3763_s18 }
 0x5ae   :  { %1882 = vrot.lane.b32.xlu1 %v4919_v7, %s3763_s18 }
 0x5b1   :  { %1890 = vrot.lane.b32.xlu0 %v4926_v6, %s3763_s18 }
 0x5b2   :  { %1898 = vrot.lane.b32.xlu1 %v4929_v16, %s3763_s18 }
 0x5b5   :  { %1801 = vrot.lane.b32.xlu0 %v4849_v38, %s3764_s19 }
 0x5b6   :  { %1809 = vrot.lane.b32.xlu1 %v4855_v49, %s3764_s19 }
 0x5b9   :  { %1805 = vrot.lane.b32.xlu0 %v4915_v41, %s3764_s19 }
 0x5ba   :  { %1825 = vrot.lane.b32.xlu1 %v4871_v4, %s3764_s19 }
 0x5bd   :  { %1821 = vrot.lane.b32.xlu0 %v4926_v6, %s3764_s19 }
 0x5be   :  { %1813 = vrot.lane.b32.xlu1 %v4919_v7, %s3764_s19 }
 0x5c1   :  { %1817 = vrot.lane.b32.xlu0 %v4866_v50, %s3764_s19 }
 0x5c2   :  { %1829 = vrot.lane.b32.xlu1 %v4929_v16, %s3764_s19 }
 0x5c5   :  { %1799 = vrot.lane.b32.xlu0 %v4820_v47, %s3764_s19 }
 0x5c6   :  { %1807 = vrot.lane.b32.xlu1 %v4823_v40, %s3764_s19 }
 0x5c9   :  { %1815 = vrot.lane.b32.xlu0 %v4832_v13, %s3764_s19 }
 0x5ca   :  { %1823 = vrot.lane.b32.xlu1 %v4837_v10, %s3764_s19 }
 0x5cd   :  { %1960 = vperm.xlu0 %3755, %v3604_v57  }
 0x5ce   :  { %1955 = vperm.xlu1 %3756, %v3603_v58  }
 0x5d1   :  { %1950 = vperm.xlu0 %3755, %v3602_v44  }
 0x5d2   :  { %1945 = vperm.xlu1 %3756, %v3601_v33  }
 0x5d5   :  { %2196 = vperm.xlu0 %3755, %v3652_v0  }
 0x5d6   :  { %2191 = vperm.xlu1 %3756, %v3651_v59  }
 0x5d9   :  { %2186 = vperm.xlu0 %3755, %v3650_v42  }
 0x5da   :  { %2181 = vperm.xlu1 %3756, %v3649_v27  }
 0x5dd   :  { %2443 = vperm.xlu0 %3755, %v3664_v30  }
 0x5de   :  { %2438 = vperm.xlu1 %3756, %v3663_v24  }
 0x5e1   :  { %2484 = vperm.xlu0 %3755, %v3668_v32  }
 0x5e2   :  { %2433 = vperm.xlu1 %3756, %v3662_v43  }
 0x5e5   :  { %2479 = vperm.xlu0 %3755, %v3667_v14  }
 0x5e6   :  { %2428 = vperm.xlu1 %3756, %v3661_v46  }
 0x5e9   :  { %2474 = vperm.xlu0 %3755, %v3666_v9  }
 0x5ea   :  { %2469 = vperm.xlu1 %3756, %v3665_v55  }
 0x5ff   :  { %v1869_v51 = vpop.permute.xlu0 %1868 }
 0x600   :  { %v1877_v26 = vpop.permute.xlu1 %1876 }
 0x601   :  { %v1909_v46 = vsel %vm1900_vm8, %v1869_v51, %v1877_v26 }
 0x603   :  { %v1885_v31 = vpop.permute.xlu0 %1884 }
 0x604   :  { %v1893_v62 = vpop.permute.xlu1 %1892  ;;  %v1905_v43 = vsel %vm1900_vm8, %v1877_v26, %v1885_v31 }
 0x605   :  { %v1913_v9 = vsel %vm1900_vm8, %v1893_v62, %v1869_v51 }
 0x607   :  { %v1871_v11 = vpop.permute.xlu0 %1870 }
 0x608   :  { %v1879_v39 = vpop.permute.xlu1 %1878 }
 0x609   :  { %v1910_v24 = vsel %vm1900_vm8, %v1871_v11, %v1879_v39 }
 0x60b   :  { %v1887_v19 = vpop.permute.xlu0 %1886 }
 0x60c   :  { %v1895_v34 = vpop.permute.xlu1 %1894  ;;  %v1906_v42 = vsel %vm1900_vm8, %v1879_v39, %v1887_v19 }
 0x60d   :  { %v1914_v32 = vsel %vm1900_vm8, %v1895_v34, %v1871_v11  ;;  %v1902_v14 = vsel %vm1900_vm8, %v1887_v19, %v1895_v34  ;;  %v1901_v11 = vsel %vm1900_vm8, %v1885_v31, %v1893_v62 }
 0x60f   :  { %v1873_v28 = vpop.permute.xlu0 %1872 }
 0x610   :  { %v1881_v36 = vpop.permute.xlu1 %1880 }
 0x611   :  { %v1911_v33 = vsel %vm1900_vm8, %v1873_v28, %v1881_v36 }
 0x613   :  { %v1889_v5 = vpop.permute.xlu0 %1888 }
 0x614   :  { %v1897_v35 = vpop.permute.xlu1 %1896  ;;  %v1907_v44 = vsel %vm1900_vm8, %v1881_v36, %v1889_v5 }
 0x615   :  { %v1915_v0 = vsel %vm1900_vm8, %v1897_v35, %v1873_v28  ;;  %v1903_v27 = vsel %vm1900_vm8, %v1889_v5, %v1897_v35 }
 0x617   :  { %v4995_v37 = vpop.permute.xlu0 %1803 }
 0x618   :  { %v4997_v21 = vpop.permute.xlu1 %1811 }
 0x619   :  { %v1842_v36 = vsel %vm1831_vm14, %v4995_v37, %v4997_v21 }
 0x61b   :  { %v4999_v2 = vpop.permute.xlu0 %1819 }
 0x61c   :  { %v5001_v20 = vpop.permute.xlu1 %1827 }
 0x61d   :  { %v1834_v35 = vsel %vm1831_vm14, %v4999_v2, %v5001_v20 }
 0x61f   :  { %v1875_v60 = vpop.permute.xlu0 %1874 }
 0x620   :  { %v1883_v61 = vpop.permute.xlu1 %1882 }
 0x621   :  { %v1912_v63 = vsel %vm1900_vm8, %v1875_v60, %v1883_v61 }
 0x623   :  { %v1891_v17 = vpop.permute.xlu0 %1890 }
 0x624   :  { %v1908_v15 = vsel %vm1900_vm8, %v1883_v61, %v1891_v17  ;;  %v1899_v23 = vpop.permute.xlu1 %1898 }
 0x625   :  { %v1904_v57 = vsel %vm1900_vm8, %v1891_v17, %v1899_v23  ;;  %v1916_v58 = vsel %vm1900_vm8, %v1899_v23, %v1875_v60  ;;  %3605 = vmatprep.subr.msk.mxu0 %vm1865_vm7, %v1908_v15  ;;  %v1846_v60 = vsel %vm1831_vm14, %v5001_v20, %v4995_v37  ;;  %v1838_v17 = vsel %vm1831_vm14, %v4997_v21, %v4999_v2 }
 0x626   :  { %3606 = vmatpush1.msk.msra.mxu0 %vm1864_vm9, %v1912_v63  ;;  %3625 = vmatprep.subr.msk.mxu1 %vm1867_vm10, %v1916_v58  ;;  %v3597_v58 = vld [vmem:[%s5795_s5 + $0x40] sm:$0xff]  ;;  %vm2536_vm8 = vcmp.ge.s32.totalorder %v4096_v45, 8  ;;  %v3670_v45 = vld [vmem:[%s5795_s5 + $0x68] sm:$0xff] }
 0x627   :  { %3607 = vmatprep.subr.msk.mxu0 %vm1865_vm7, %v1907_v44  ;;  %v5030_v59 = vpop.permute.xlu0 %1801  ;;  %3626 = vmatpush1.msk.msra.mxu1 %vm1866_vm12, %v1904_v57 }
 0x628   :  { %3608 = vmatpush1.msk.msra.mxu0 %vm1864_vm9, %v1911_v33  ;;  %v5040_v30 = vpop.permute.xlu1 %1809  ;;  %3627 = vmatprep.subr.msk.mxu1 %vm1867_vm10, %v1915_v0 }
 0x629   :  { %3609 = vmatprep.subr.msk.mxu0 %vm1865_vm7, %v1906_v42  ;;  %3628 = vmatpush1.msk.msra.mxu1 %vm1866_vm12, %v1903_v27  ;;  %v1841_v15 = vsel %vm1831_vm14, %v5030_v59, %v5040_v30  ;;  %v3599_v42 = vld [vmem:[%s5795_s5 + $0x50] sm:$0xff]  ;;  %v3600_v27 = vld [vmem:[%s5795_s5 + $0x58] sm:$0xff] }
 0x62a   :  { %3610 = vmatpush1.msk.msra.mxu0 %vm1864_vm9, %v1910_v24  ;;  %3629 = vmatprep.subr.msk.mxu1 %vm1867_vm10, %v1914_v32 }
 0x62b   :  { %3611 = vmatprep.subr.msk.mxu0 %vm1865_vm7, %v1905_v43  ;;  %v1806_v55 = vpop.permute.xlu0 %1805  ;;  %3630 = vmatpush1.msk.msra.mxu1 %vm1866_vm12, %v1902_v14  ;;  %vm2606_vm7 = vcmp.lt.s32.totalorder %v4110_v56, 248 }
 0x62c   :  { %3612 = vmatpush1.msk.msra.mxu0 %vm1864_vm9, %v1909_v46  ;;  %v1826_v39 = vpop.permute.xlu1 %1825  ;;  %3631 = vmatprep.subr.msk.mxu1 %vm1867_vm10, %v1913_v9  ;;  %vm2571_vm9 = vcmp.lt.s32.totalorder %v4098_v48, 8  ;;  %vm2535_vm10 = vcmp.ge.s32.totalorder %v4102_v52, 8  ;;  %v3671_v48 = vld [vmem:[%s5795_s5 + $0x70] sm:$0xff]  ;;  %v3672_v52 = vld [vmem:[%s5795_s5 + $0x78] sm:$0xff] }
 0x62d   :  { %1991 = vmatprep.subr.mxu0 %v4919_v7  ;;  %3632 = vmatpush1.msk.msra.mxu1 %vm1866_vm12, %v1901_v11  ;;  %v1845_v37 = vsel %vm1831_vm14, %v1826_v39, %v5030_v59  ;;  %v3598_v59 = vld [vmem:[%s5795_s5 + $0x48] sm:$0xff]  ;;  %vm2538_vm12 = vcmp.ge.s32.totalorder %v4106_v54, 8 }
 0x62e   :  { %1992 = vmatpush1.msra.mxu0 %v4915_v41  ;;  %2080 = vmatprep.subr.mxu1 %v4929_v16 }
 0x62f   :  { %1993 = vmatprep.subr.mxu0 %v4883_v53  ;;  %v1822_v51 = vpop.permute.xlu0 %1821  ;;  %2081 = vmatpush1.msra.mxu1 %v4926_v6 }
 0x630   :  { %1994 = vmatpush1.msra.mxu0 %v4879_v1  ;;  %v1814_v26 = vpop.permute.xlu1 %1813  ;;  %2082 = vmatprep.subr.mxu1 %v4895_v8 }
 0x631   :  { %1995 = vmatprep.subr.mxu0 %v4855_v49  ;;  %2083 = vmatpush1.msra.mxu1 %v4891_v29  ;;  %v1843_v62 = vsel %vm1831_vm14, %v1806_v55, %v1814_v26  ;;  %v1839_v5 = vsel %vm1831_vm14, %v1814_v26, %v1822_v51 }
 0x632   :  { %1996 = vmatpush1.msra.mxu0 %v4849_v38  ;;  %2084 = vmatprep.subr.mxu1 %v4871_v4 }
 0x633   :  { %1997 = vmatprep.subr.mxu0 %v4823_v40  ;;  %v1818_v31 = vpop.permute.xlu0 %1817  ;;  %2085 = vmatpush1.msra.mxu1 %v4866_v50 }
 0x634   :  { %1998 = vmatpush1.msra.mxu0 %v4820_v47  ;;  %v1830_v19 = vpop.permute.xlu1 %1829  ;;  %2086 = vmatprep.subr.mxu1 %v4837_v10  ;;  %v1833_v20 = vsel %vm1831_vm14, %v1818_v31, %v1826_v39  ;;  %v1837_v2 = vsel %vm1831_vm14, %v5040_v30, %v1818_v31 }
 0x635   :  { %v1835_v34 = vsel %vm1831_vm14, %v1822_v51, %v1830_v19  ;;  %v1847_v28 = vsel %vm1831_vm14, %v1830_v19, %v1806_v55  ;;  %3613 = vmatprep.subr.msk.mxu0 %vm1796_vm13, %v1843_v62  ;;  %2087 = vmatpush1.msra.mxu1 %v4832_v13 }
 0x636   :  { %3614 = vmatpush1.msk.msra.mxu0 %vm1795_vm15, %v1847_v28  ;;  %3633 = vmatprep.subr.msk.mxu1 %vm1798_vm1, %v1835_v34 }
 0x637   :  { %v1800_v61 = vpop.permute.xlu0 %1799  ;;  %3615 = vmatprep.subr.msk.mxu0 %vm1796_vm13, %v1842_v36  ;;  %3634 = vmatpush1.msk.msra.mxu1 %vm1797_vm2, %v1839_v5 }
 0x638   :  { %v1808_v23 = vpop.permute.xlu1 %1807  ;;  %3616 = vmatpush1.msk.msra.mxu0 %vm1795_vm15, %v1846_v60  ;;  %3635 = vmatprep.subr.msk.mxu1 %vm1798_vm1, %v1834_v35 }
 0x639   :  { %v1840_v21 = vsel %vm1831_vm14, %v1800_v61, %v1808_v23  ;;  %3617 = vmatprep.subr.msk.mxu0 %vm1796_vm13, %v1841_v15  ;;  %3636 = vmatpush1.msk.msra.mxu1 %vm1797_vm2, %v1838_v17 }
 0x63a   :  { %3618 = vmatpush1.msk.msra.mxu0 %vm1795_vm15, %v1845_v37  ;;  %3637 = vmatprep.subr.msk.mxu1 %vm1798_vm1, %v1833_v20 }
 0x63b   :  { %v1816_v63 = vpop.permute.xlu0 %1815  ;;  %3619 = vmatprep.subr.msk.mxu0 %vm1796_vm13, %v1840_v21  ;;  %3638 = vmatpush1.msk.msra.mxu1 %vm1797_vm2, %v1837_v2  ;;  %vm2537_vm13 = vcmp.ge.s32.totalorder %v4110_v56, 8 }
 0x63c   :  { %v1824_v57 = vpop.permute.xlu1 %1823  ;;  %v1836_v0 = vsel %vm1831_vm14, %v1808_v23, %v1816_v63 }
 0x63d   :  { %v1832_v44 = vsel %vm1831_vm14, %v1816_v63, %v1824_v57  ;;  %v1844_v33 = vsel %vm1831_vm14, %v1824_v57, %v1800_v61 }
 0x63e   :  { %3620 = vmatpush1.msk.msra.mxu0 %vm1795_vm15, %v1844_v33  ;;  %3639 = vmatprep.subr.msk.mxu1 %vm1798_vm1, %v1832_v44 }
 0x63f   :  { %3621 = vmatmul.mubr.msk.f32.vlgmr.msra.gmra.mxu0 %vm486_vm11, %v3597_v58  ;;  %3640 = vmatpush1.msk.msra.mxu1 %vm1797_vm2, %v1836_v0 }
 0x640   :  { %3641 = vmatmul.mubr.msk.f32.vlgmr.msra.gmra.mxu1 %vm486_vm11, %v3597_v58  ;;  %2045 = vmatprep.mubr.f32.mxu0 %v3757_v3 }
 0x641   :  { %2134 = vmatprep.mubr.f32.mxu1 %v3757_v3 }
 0x643   :  { %3622 = vmatmul.mubr.msk.f32.gmra.mxu0 %vm486_vm11, %v3598_v59 }
 0x644   :  { %3642 = vmatmul.mubr.msk.f32.gmra.mxu1 %vm486_vm11, %v3598_v59  ;;  %2051 = vmatprep.mubr.f32.mxu0 %v3757_v3 }
 0x645   :  { %2140 = vmatprep.mubr.f32.mxu1 %v3757_v3 }
 0x647   :  { %3623 = vmatmul.mubr.msk.f32.gmra.mxu0 %vm486_vm11, %v3599_v42 }
 0x648   :  { %3643 = vmatmul.mubr.msk.f32.gmra.mxu1 %vm486_vm11, %v3599_v42  ;;  %2057 = vmatprep.mubr.f32.mxu0 %v3757_v3  ;;  %v1961_v51 = vpop.permute.xlu0 %1960 }
 0x649   :  { %2146 = vmatprep.mubr.f32.mxu1 %v3757_v3  ;;  %v1956_v62 = vpop.permute.xlu1 %1955 }
 0x64b   :  { %3624 = vmatmul.mubr.msk.f32.gmra.mxu0 %vm486_vm11, %v3600_v27 }
 0x64c   :  { %3644 = vmatmul.mubr.msk.f32.gmra.mxu1 %vm486_vm11, %v3600_v27  ;;  %2275 = vmatprep.mubr.f32.mxu0 %v3757_v3  ;;  %v1951_v17 = vpop.permute.xlu0 %1950 }
 0x64d   :  { %2364 = vmatprep.mubr.f32.mxu1 %v3757_v3  ;;  %v1946_v63 = vpop.permute.xlu1 %1945 }
 0x6ff   :  { %v2041_v30 = vpop.f32.mrf.mxu0 }
 0x700   :  { %v2130_v24 = vpop.f32.mrf.mxu1 }
 0x701   :  { %v2043_v32 = vpop.f32.mrf.mxu0 }
 0x702   :  { %v2132_v43 = vpop.f32.mrf.mxu1  ;;  %v2044_v0 = vadd.f32 %v2043_v32, %v1946_v63 }
 0x703   :  { %v2047_v14 = vpop.f32.mrf.mxu0 }
 0x704   :  { %v2136_v46 = vpop.f32.mrf.mxu1  ;;  %v2048_v57 = vadd.f32 %v2047_v14, %v1951_v17  ;;  %v2154_v32 = vmax.f32 %v2044_v0, 0.0 }
 0x705   :  { %v2049_v9 = vpop.f32.mrf.mxu0  ;;  %v2137_v59 = vadd.f32 %v2136_v46, %v1951_v17 }
 0x706   :  { %v2138_v55 = vpop.f32.mrf.mxu1  ;;  %v2050_v20 = vadd.f32 %v2049_v9, %v1951_v17  ;;  %v2157_v14 = vmax.f32 %v2048_v57, 0.0 }
 0x707   :  { %v2053_v11 = vpop.f32.mrf.mxu0  ;;  %v2139_v58 = vadd.f32 %v2138_v55, %v1951_v17  ;;  %v2159_v46 = vmax.f32 %v2137_v59, 0.0 }
 0x708   :  { %v2142_v39 = vpop.f32.mrf.mxu1  ;;  %v2054_v15 = vadd.f32 %v2053_v11, %v1956_v62  ;;  %v2131_v11 = vadd.f32 %v2130_v24, %v1946_v63  ;;  %v2158_v9 = vmax.f32 %v2050_v20, 0.0  ;;  %v3645_v24 = vld [vmem:[%s5796_s7 + $0x40] sm:$0xff] }
 0x709   :  { %v2055_v26 = vpop.f32.mrf.mxu0  ;;  %v2143_v21 = vadd.f32 %v2142_v39, %v1956_v62  ;;  %v2160_v55 = vmax.f32 %v2139_v58, 0.0 }
 0x70a   :  { %v2144_v31 = vpop.f32.mrf.mxu1  ;;  %v2056_v5 = vadd.f32 %v2055_v26, %v1956_v62  ;;  %v2042_v26 = vadd.f32 %v2041_v30, %v1946_v63 }
 0x70b   :  { %v2059_v19 = vpop.f32.mrf.mxu0  ;;  %v2145_v23 = vadd.f32 %v2144_v31, %v1956_v62  ;;  %v2163_v39 = vmax.f32 %v2143_v21, 0.0  ;;  %v3646_v31 = vld [vmem:[%s5796_s7 + $0x48] sm:$0xff]  ;;  %v3647_v62 = vld [vmem:[%s5796_s7 + $0x50] sm:$0xff] }
 0x70c   :  { %v2148_v34 = vpop.f32.mrf.mxu1  ;;  %v2060_v28 = vadd.f32 %v2059_v19, %v1961_v51  ;;  %v2162_v42 = vmax.f32 %v2056_v5, 0.0  ;;  %v2133_v19 = vadd.f32 %v2132_v43, %v1946_v63  ;;  %v2155_v43 = vmax.f32 %v2131_v11, 0.0  ;;  %v5229_v5 = vpop.permute.xlu1 %2191 }
 0x70d   :  { %v2061_v36 = vpop.f32.mrf.mxu0  ;;  %v2149_v35 = vadd.f32 %v2148_v34, %v1961_v51  ;;  %v2161_v34 = vmax.f32 %v2054_v15, 0.0 }
 0x70e   :  { %v2062_v60 = vadd.f32 %v2061_v36, %v1961_v51  ;;  %v2150_v61 = vpop.f32.mrf.mxu1  ;;  %v2165_v44 = vmax.f32 %v2060_v28, 0.0  ;;  %v2164_v36 = vmax.f32 %v2145_v23, 0.0  ;;  %v2156_v30 = vmax.f32 %v2133_v19, 0.0  ;;  %v3648_v28 = vld [vmem:[%s5796_s7 + $0x58] sm:$0xff] }
 0x70f   :  { %v2151_v37 = vadd.f32 %v2150_v61, %v1961_v51  ;;  %v2167_v27 = vmax.f32 %v2149_v35, 0.0  ;;  %v2153_v51 = vmax.f32 %v2042_v26, 0.0 }
 0x710   :  { %v2166_v2 = vmax.f32 %v2062_v60, 0.0  ;;  %v2182_v35 = vpop.permute.xlu1 %2181  ;;  %v5231_v60 = vpop.permute.xlu0 %2196 }
 0x711   :  { %v2168_v33 = vmax.f32 %v2151_v37, 0.0 }
 0x712   :  { %2235 = vmatprep.subr.mxu0 %v2166_v2 }
 0x713   :  { %2236 = vmatpush1.msra.mxu0 %v2165_v44  ;;  %2324 = vmatprep.subr.mxu1 %v2168_v33 }
 0x714   :  { %2237 = vmatprep.subr.mxu0 %v2162_v42  ;;  %2325 = vmatpush1.msra.mxu1 %v2167_v27  ;;  %v5233_v61 = vpop.permute.xlu1 %2438  ;;  %v2187_v17 = vpop.permute.xlu0 %2186 }
 0x715   :  { %2238 = vmatpush1.msra.mxu0 %v2161_v34  ;;  %2326 = vmatprep.subr.mxu1 %v2164_v36 }
 0x716   :  { %2239 = vmatprep.subr.mxu0 %v2158_v9  ;;  %2327 = vmatpush1.msra.mxu1 %v2163_v39 }
 0x717   :  { %2240 = vmatpush1.msra.mxu0 %v2157_v14  ;;  %2328 = vmatprep.subr.mxu1 %v2160_v55 }
 0x718   :  { %2241 = vmatprep.subr.mxu0 %v2154_v32  ;;  %2329 = vmatpush1.msra.mxu1 %v2159_v46  ;;  %v2434_v63 = vpop.permute.xlu1 %2433  ;;  %v5235_v33 = vpop.permute.xlu0 %2443 }
 0x719   :  { %2242 = vmatpush1.msra.mxu0 %v2153_v51  ;;  %2330 = vmatprep.subr.mxu1 %v2156_v30 }
 0x71a   :  { %3653 = vmatmul.mubr.msk.f32.vlgmr.msra.gmra.mxu0 %vm127_vm0, %v3645_v24  ;;  %2331 = vmatpush1.msra.mxu1 %v2155_v43 }
 0x71b   :  { %3657 = vmatmul.mubr.msk.f32.vlgmr.msra.gmra.mxu1 %vm127_vm0, %v3645_v24  ;;  %2281 = vmatprep.mubr.f32.mxu0 %v3757_v3 }
 0x71c   :  { %2370 = vmatprep.mubr.f32.mxu1 %v3757_v3  ;;  %v2429_v11 = vpop.permute.xlu1 %2428  ;;  %v5237_v55 = vpop.permute.xlu0 %2484 }
 0x71e   :  { %3654 = vmatmul.mubr.msk.f32.gmra.mxu0 %vm127_vm0, %v3646_v31 }
 0x71f   :  { %3658 = vmatmul.mubr.msk.f32.gmra.mxu1 %vm127_vm0, %v3646_v31  ;;  %2287 = vmatprep.mubr.f32.mxu0 %v3757_v3 }
 0x720   :  { %2376 = vmatprep.mubr.f32.mxu1 %v3757_v3 }
 0x722   :  { %3655 = vmatmul.mubr.msk.f32.gmra.mxu0 %vm127_vm0, %v3647_v62 }
 0x723   :  { %3659 = vmatmul.mubr.msk.f32.gmra.mxu1 %vm127_vm0, %v3647_v62  ;;  %2293 = vmatprep.mubr.f32.mxu0 %v3757_v3 }
 0x724   :  { %2382 = vmatprep.mubr.f32.mxu1 %v3757_v3 }
 0x726   :  { %3656 = vmatmul.mubr.msk.f32.gmra.mxu0 %vm127_vm0, %v3648_v28 }
 0x727   :  { %3660 = vmatmul.mubr.msk.f32.gmra.mxu1 %vm127_vm0, %v3648_v28  ;;  %2779 = vmatprep.mubr.f32.mxu0 %v3757_v3 }
 0x728   :  { %2868 = vmatprep.mubr.f32.mxu1 %v3757_v3 }
 0x7da   :  { %v2277_v15 = vpop.f32.mrf.mxu0 }
 0x7db   :  { %v2278_v23 = vadd.f32 %v2277_v15, %v2182_v35  ;;  %v2366_v37 = vpop.f32.mrf.mxu1 }
 0x7dc   :  { %v2279_v20 = vpop.f32.mrf.mxu0  ;;  %v2367_v57 = vadd.f32 %v2366_v37, %v2182_v35  ;;  %v2470_v37 = vpop.permute.xlu1 %2469 }
 0x7dd   :  { %v2280_v21 = vadd.f32 %v2279_v20, %v2182_v35  ;;  %v2368_v2 = vpop.f32.mrf.mxu1  ;;  %v2389_v0 = vmul.f32 0.2, %v2278_v23 }
 0x7de   :  { %v2369_v58 = vadd.f32 %v2368_v2, %v2182_v35  ;;  %v2283_v44 = vpop.f32.mrf.mxu0  ;;  %v2391_v26 = vmul.f32 0.2, %v2367_v57 }
 0x7df   :  { %v2390_v59 = vmul.f32 0.2, %v2280_v21  ;;  %v2372_v42 = vpop.f32.mrf.mxu1  ;;  %v2284_v34 = vadd.f32 %v2283_v44, %v2187_v17  ;;  %v2405_v36 = vmax.f32 %v2278_v23, %v2389_v0  ;;  %v5239_v44 = vpop.permute.xlu0 %2479 }
 0x7e0   :  { %v2285_v27 = vpop.f32.mrf.mxu0  ;;  %v2392_v19 = vmul.f32 0.2, %v2369_v58  ;;  %v2407_v46 = vmax.f32 %v2367_v57, %v2391_v26  ;;  %v2373_v24 = vadd.f32 %v2372_v42, %v2187_v17 }
 0x7e1   :  { %v2406_v9 = vmax.f32 %v2280_v21, %v2390_v59  ;;  %v2286_v39 = vadd.f32 %v2285_v27, %v2187_v17  ;;  %v2374_v14 = vpop.f32.mrf.mxu1  ;;  %v2393_v30 = vmul.f32 0.2, %v2284_v34  ;;  %v2446_v43 = vmul.f32 %v2429_v11, %v2405_v36 }
 0x7e2   :  { %v2289_v32 = vpop.f32.mrf.mxu0  ;;  %v2408_v51 = vmax.f32 %v2369_v58, %v2392_v19  ;;  %v2375_v31 = vadd.f32 %v2374_v14, %v2187_v17  ;;  %v2448_v20 = vmul.f32 %v2429_v11, %v2407_v46  ;;  %v2395_v21 = vmul.f32 0.2, %v2373_v24 }
 0x7e3   :  { %v2447_v62 = vmul.f32 %v2429_v11, %v2406_v9  ;;  %v2394_v28 = vmul.f32 0.2, %v2286_v39  ;;  %v2378_v35 = vpop.f32.mrf.mxu1  ;;  %v2409_v2 = vmax.f32 %v2284_v34, %v2393_v30  ;;  %v2487_v0 = vadd.f32 %v2470_v37, %v2446_v43 }
 0x7e4   :  { %v2291_v15 = vpop.f32.mrf.mxu0  ;;  %v2449_v23 = vmul.f32 %v2429_v11, %v2408_v51  ;;  %v2396_v59 = vmul.f32 0.2, %v2375_v31  ;;  %v2290_v57 = vadd.f32 %v2289_v32, %v5229_v5  ;;  %v2489_v26 = vadd.f32 %v2470_v37, %v2448_v20 }
 0x7e5   :  { %v2488_v58 = vadd.f32 %v2470_v37, %v2447_v62  ;;  %v2410_v27 = vmax.f32 %v2286_v39, %v2394_v28  ;;  %v2292_v42 = vadd.f32 %v2291_v15, %v5229_v5  ;;  %v2380_v17 = vpop.f32.mrf.mxu1  ;;  %v2450_v36 = vmul.f32 %v2434_v63, %v2409_v2  ;;  %v2475_v39 = vpop.permute.xlu0 %2474 }
 0x7e6   :  { %v2490_v19 = vadd.f32 %v2470_v37, %v2449_v23  ;;  %v2411_v9 = vmax.f32 %v2373_v24, %v2395_v21  ;;  %v2503_v14 = vadd.f32 %v2487_v0, %v4820_v47  ;;  %v2412_v11 = vmax.f32 %v2375_v31, %v2396_v59 }
 0x7e7   :  { %v2397_v34 = vmul.f32 0.2, %v2290_v57  ;;  %v2379_v46 = vadd.f32 %v2378_v35, %v5229_v5  ;;  %v2504_v51 = vadd.f32 %v2488_v58, %v4823_v40  ;;  %v2451_v30 = vmul.f32 %v2434_v63, %v2410_v27 }
 0x7e8   :  { %v2398_v43 = vmul.f32 0.2, %v2292_v42  ;;  %v2381_v32 = vadd.f32 %v2380_v17, %v5229_v5  ;;  %v2505_v62 = vadd.f32 %v2489_v26, %v4832_v13  ;;  %v2506_v28 = vadd.f32 %v2490_v19, %v4837_v10  ;;  %v2295_v5 = vpop.f32.mrf.mxu0 }
 0x7e9   :  { %v2491_v15 = vadd.f32 %v2475_v39, %v2450_v36  ;;  %v2452_v37 = vmul.f32 %v2434_v63, %v2411_v9  ;;  %v2453_v24 = vmul.f32 %v2434_v63, %v2412_v11  ;;  %v2413_v20 = vmax.f32 %v2290_v57, %v2397_v34 }
 0x7ea   :  { %v2399_v47 = vmul.f32 0.2, %v2379_v46  ;;  %v5250_v31 = vmul.f32 %v2503_v14, %v4369_v18  ;;  %v2492_v35 = vadd.f32 %v2475_v39, %v2451_v30  ;;  %v2414_v23 = vmax.f32 %v2292_v42, %v2398_v43  ;;  %v2384_v42 = vpop.f32.mrf.mxu1 }
 0x7eb   :  { %v2400_v40 = vmul.f32 0.2, %v2381_v32  ;;  %v5253_v2 = vmul.f32 %v2504_v51, %v4365_v25  ;;  %v2507_v13 = vadd.f32 %v2491_v15, %v4849_v38  ;;  %v2493_v10 = vadd.f32 %v2475_v39, %v2452_v37  ;;  %v2297_v38 = vpop.f32.mrf.mxu0 }
 0x7ec   :  { %2608 = vrot.lane.b32.xlu0 %v5250_v31, %s3765_s22  ;;  %v2494_v63 = vadd.f32 %v2475_v39, %v2453_v24  ;;  %v2454_v21 = vmul.f32 %v5233_v61, %v2413_v20  ;;  %v2415_v0 = vmax.f32 %v2379_v46, %v2399_v47  ;;  %v5262_v59 = vmul.f32 %v2505_v62, %v4383_v12  ;;  %v2386_v46 = vpop.f32.mrf.mxu1 }
 0x7ed   :  { %2616 = vrot.lane.b32.xlu1 %v5253_v2, %s3765_s22  ;;  %v2508_v57 = vadd.f32 %v2492_v35, %v4855_v49  ;;  %v2455_v58 = vmul.f32 %v5233_v61, %v2414_v23  ;;  %v2416_v27 = vmax.f32 %v2381_v32, %v2400_v40  ;;  %v5267_v17 = vmul.f32 %v2506_v28, %v4379_v22 }
 0x7ee   :  { %v2509_v26 = vadd.f32 %v2493_v10, %v4866_v50  ;;  %v2296_v19 = vadd.f32 %v2295_v5, %v5231_v60  ;;  %v2510_v49 = vadd.f32 %v2494_v63, %v4871_v4  ;;  %v2495_v36 = vadd.f32 %v5239_v44, %v2454_v21 }
 0x7ef   :  { %v2456_v9 = vmul.f32 %v5233_v61, %v2415_v0  ;;  %v5279_v14 = vmul.f32 %v2507_v13, %v4369_v18  ;;  %v2496_v11 = vadd.f32 %v5239_v44, %v2455_v58  ;;  %v2457_v34 = vmul.f32 %v5233_v61, %v2416_v27 }
 0x7f0   :  { %2624 = vrot.lane.b32.xlu0 %v5262_v59, %s3765_s22  ;;  %v2298_v50 = vadd.f32 %v2297_v38, %v5231_v60  ;;  %v5285_v51 = vmul.f32 %v2508_v57, %v4365_v25  ;;  %v2401_v4 = vmul.f32 0.2, %v2296_v19  ;;  %v2385_v30 = vadd.f32 %v2384_v42, %v5231_v60 }
 0x7f1   :  { %2632 = vrot.lane.b32.xlu1 %v5267_v17, %s3765_s22  ;;  %v2511_v43 = vadd.f32 %v2495_v36, %v4879_v1  ;;  %v2497_v32 = vadd.f32 %v5239_v44, %v2456_v9  ;;  %v2387_v61 = vadd.f32 %v2386_v46, %v5231_v60  ;;  %v5296_v39 = vmul.f32 %v2509_v26, %v4383_v12  ;;  %v3724_v36 = vld [vmem:[%s5791_s8 + $0x78] sm:$0xff]  ;;  %v3723_v9 = vld [vmem:[%s5791_s8 + $0x70] sm:$0xff] }
 0x7f2   :  { %v2512_v62 = vadd.f32 %v2496_v11, %v4883_v53  ;;  %v2498_v28 = vadd.f32 %v5239_v44, %v2457_v34  ;;  %v2402_v15 = vmul.f32 0.2, %v2298_v50  ;;  %v5301_v37 = vmul.f32 %v2510_v49, %v4379_v22  ;;  %v3673_v49 = vld [vmem:[%s5790_s6 + $0x60] sm:$0xff]  ;;  %v3722_v11 = vld [vmem:[%s5791_s8 + $0x68] sm:$0xff]  ;;  %v3735_v46 = vld [vmem:[%s5792_s9 + $0x70] sm:$0xff] }
 0x7f3   :  { %v2513_v1 = vadd.f32 %v2497_v32, %v4891_v29  ;;  %v2417_v60 = vmax.f32 %v2296_v19, %v2401_v4  ;;  %v2403_v24 = vmul.f32 0.2, %v2385_v30  ;;  %v5309_v20 = vmul.f32 %v2511_v43, %v4369_v18  ;;  %v3721_v34 = vld [vmem:[%s5791_s8 + $0x60] sm:$0xff]  ;;  %v3740_v4 = vld [vmem:[%s5793_s10 + $0x78] sm:$0xff]  ;;  %v3739_v43 = vld [vmem:[%s5793_s10 + $0x70] sm:$0xff] }
 0x7f4   :  { %2610 = vrot.lane.b32.xlu0 %v5279_v14, %s3765_s22  ;;  %v2514_v53 = vadd.f32 %v2498_v28, %v4895_v8  ;;  %v2418_v44 = vmax.f32 %v2298_v50, %v2402_v15  ;;  %v2404_v47 = vmul.f32 0.2, %v2387_v61  ;;  %v5313_v35 = vmul.f32 %v2512_v62, %v4365_v25  ;;  %v3736_v50 = vld [vmem:[%s5792_s9 + $0x78] sm:$0xff]  ;;  %v3733_v32 = vld [vmem:[%s5792_s9 + $0x60] sm:$0xff]  ;;  %v3278_v15 = vld [vmem:[%s5798_s12 + $0x8] sm:$0xff] }
 0x7f5   :  { %2618 = vrot.lane.b32.xlu1 %v5285_v51, %s3765_s22  ;;  %v2458_v29 = vmul.f32 %v5235_v33, %v2417_v60  ;;  %v2419_v23 = vmax.f32 %v2385_v30, %v2403_v24  ;;  %v5321_v40 = vmul.f32 %v2513_v1, %v4383_v12  ;;  %v3734_v30 = vld [vmem:[%s5792_s9 + $0x68] sm:$0xff]  ;;  %v3737_v62 = vld [vmem:[%s5793_s10 + $0x60] sm:$0xff] }
 0x7f6   :  { %v2459_v5 = vmul.f32 %v5235_v33, %v2418_v44  ;;  %v2420_v8 = vmax.f32 %v2387_v61, %v2404_v47  ;;  %v5325_v13 = vmul.f32 %v2514_v53, %v4379_v22  ;;  %v3738_v61 = vld [vmem:[%s5793_s10 + $0x68] sm:$0xff]  ;;  %v3277_v28 = vld [vmem:[%s5798_s12] sm:$0xff] }
 0x7f7   :  { %v2499_v10 = vadd.f32 %v5237_v55, %v2458_v29  ;;  %v2460_v63 = vmul.f32 %v5235_v33, %v2419_v23 }
 0x7f8   :  { %2626 = vrot.lane.b32.xlu0 %v5296_v39, %s3765_s22  ;;  %v2500_v21 = vadd.f32 %v5237_v55, %v2459_v5  ;;  %v2461_v0 = vmul.f32 %v5235_v33, %v2420_v8 }
 0x7f9   :  { %2634 = vrot.lane.b32.xlu1 %v5301_v37, %s3765_s22  ;;  %v2515_v57 = vadd.f32 %v2499_v10, %v4915_v41  ;;  %v2501_v58 = vadd.f32 %v5237_v55, %v2460_v63 }
 0x7fa   :  { %v2516_v27 = vadd.f32 %v2500_v21, %v4919_v7  ;;  %v2502_v42 = vadd.f32 %v5237_v55, %v2461_v0  ;;  %v3674_v55 = vld [vmem:[%s5790_s6 + $0x68] sm:$0xff] }
 0x7fb   :  { %v2517_v38 = vadd.f32 %v2501_v58, %v4926_v6  ;;  %v5345_v33 = vmul.f32 %v2515_v57, %v4369_v18  ;;  %v3676_v6 = vld [vmem:[%s5790_s6 + $0x78] sm:$0xff] }
 0x7fc   :  { %2612 = vrot.lane.b32.xlu0 %v5309_v20, %s3765_s22  ;;  %v2518_v26 = vadd.f32 %v2502_v42, %v4929_v16  ;;  %v5349_v19 = vmul.f32 %v2516_v27, %v4365_v25  ;;  %v3675_v16 = vld [vmem:[%s5790_s6 + $0x70] sm:$0xff] }
 0x7fd   :  { %2620 = vrot.lane.b32.xlu1 %v5313_v35, %s3765_s22  ;;  %v5356_v41 = vmul.f32 %v2517_v38, %v4383_v12 }
 0x7fe   :  { %v5359_v7 = vmul.f32 %v2518_v26, %v4379_v22 }
 0x800   :  { %2628 = vrot.lane.b32.xlu0 %v5321_v40, %s3765_s22 }
 0x801   :  { %2636 = vrot.lane.b32.xlu1 %v5325_v13, %s3765_s22 }
 0x804   :  { %2543 = vrot.lane.b32.xlu0 %v5309_v20, %s3766_s23 }
 0x805   :  { %2551 = vrot.lane.b32.xlu1 %v5313_v35, %s3766_s23 }
 0x808   :  { %2559 = vrot.lane.b32.xlu0 %v5321_v40, %s3766_s23 }
 0x809   :  { %2567 = vrot.lane.b32.xlu1 %v5325_v13, %s3766_s23 }
 0x80c   :  { %2614 = vrot.lane.b32.xlu0 %v5345_v33, %s3765_s22 }
 0x80d   :  { %2622 = vrot.lane.b32.xlu1 %v5349_v19, %s3765_s22 }
 0x810   :  { %2630 = vrot.lane.b32.xlu0 %v5356_v41, %s3765_s22 }
 0x811   :  { %2638 = vrot.lane.b32.xlu1 %v5359_v7, %s3765_s22 }
 0x814   :  { %2541 = vrot.lane.b32.xlu0 %v5279_v14, %s3766_s23 }
 0x815   :  { %2549 = vrot.lane.b32.xlu1 %v5285_v51, %s3766_s23 }
 0x818   :  { %2545 = vrot.lane.b32.xlu0 %v5345_v33, %s3766_s23 }
 0x819   :  { %2565 = vrot.lane.b32.xlu1 %v5301_v37, %s3766_s23 }
 0x81c   :  { %2561 = vrot.lane.b32.xlu0 %v5356_v41, %s3766_s23 }
 0x81d   :  { %2553 = vrot.lane.b32.xlu1 %v5349_v19, %s3766_s23 }
 0x820   :  { %2557 = vrot.lane.b32.xlu0 %v5296_v39, %s3766_s23 }
 0x821   :  { %2569 = vrot.lane.b32.xlu1 %v5359_v7, %s3766_s23 }
 0x824   :  { %2539 = vrot.lane.b32.xlu0 %v5250_v31, %s3766_s23 }
 0x825   :  { %2547 = vrot.lane.b32.xlu1 %v5253_v2, %s3766_s23 }
 0x828   :  { %2555 = vrot.lane.b32.xlu0 %v5262_v59, %s3766_s23 }
 0x829   :  { %2563 = vrot.lane.b32.xlu1 %v5267_v17, %s3766_s23 }
 0x82c   :  { %2700 = vperm.xlu0 %3755, %v3676_v6  }
 0x82d   :  { %2695 = vperm.xlu1 %3756, %v3675_v16  }
 0x830   :  { %2690 = vperm.xlu0 %3755, %v3674_v55  }
 0x831   :  { %2685 = vperm.xlu1 %3756, %v3673_v49  }
 0x834   :  { %2936 = vperm.xlu0 %3755, %v3724_v36  }
 0x835   :  { %2931 = vperm.xlu1 %3756, %v3723_v9  }
 0x838   :  { %2926 = vperm.xlu0 %3755, %v3722_v11  }
 0x839   :  { %2921 = vperm.xlu1 %3756, %v3721_v34  }
 0x83c   :  { %3183 = vperm.xlu0 %3755, %v3736_v50  }
 0x83d   :  { %3178 = vperm.xlu1 %3756, %v3735_v46  }
 0x840   :  { %3224 = vperm.xlu0 %3755, %v3740_v4  }
 0x841   :  { %3173 = vperm.xlu1 %3756, %v3734_v30  }
 0x844   :  { %3219 = vperm.xlu0 %3755, %v3739_v43  }
 0x845   :  { %3168 = vperm.xlu1 %3756, %v3733_v32  }
 0x848   :  { %3214 = vperm.xlu0 %3755, %v3738_v61  }
 0x849   :  { %3209 = vperm.xlu1 %3756, %v3737_v62  }
 0x84c   :  { %3281 = vperm.xlu0 %3755, %v3277_v28  }
 0x84d   :  { %3286 = vperm.xlu1 %3756, %v3278_v15  }
 0x85e   :  { %v2609_v1 = vpop.permute.xlu0 %2608 }
 0x85f   :  { %v2617_v60 = vpop.permute.xlu1 %2616 }
 0x860   :  { %v2649_v62 = vsel %vm2640_vm4, %v2609_v1, %v2617_v60 }
 0x862   :  { %v2625_v24 = vpop.permute.xlu0 %2624 }
 0x863   :  { %v2633_v53 = vpop.permute.xlu1 %2632  ;;  %v2645_v32 = vsel %vm2640_vm4, %v2617_v60, %v2625_v24 }
 0x864   :  { %v2653_v28 = vsel %vm2640_vm4, %v2633_v53, %v2609_v1 }
 0x866   :  { %v2611_v44 = vpop.permute.xlu0 %2610 }
 0x867   :  { %v2619_v47 = vpop.permute.xlu1 %2618 }
 0x868   :  { %v2650_v30 = vsel %vm2640_vm4, %v2611_v44, %v2619_v47 }
 0x86a   :  { %v2627_v29 = vpop.permute.xlu0 %2626 }
 0x86b   :  { %v2635_v23 = vpop.permute.xlu1 %2634  ;;  %v2646_v50 = vsel %vm2640_vm4, %v2619_v47, %v2627_v29 }
 0x86c   :  { %v2654_v43 = vsel %vm2640_vm4, %v2635_v23, %v2611_v44  ;;  %v2642_v61 = vsel %vm2640_vm4, %v2627_v29, %v2635_v23  ;;  %v2641_v44 = vsel %vm2640_vm4, %v2625_v24, %v2633_v53 }
 0x86e   :  { %v2613_v5 = vpop.permute.xlu0 %2612 }
 0x86f   :  { %v2621_v8 = vpop.permute.xlu1 %2620 }
 0x870   :  { %v2651_v9 = vsel %vm2640_vm4, %v2613_v5, %v2621_v8 }
 0x872   :  { %v2629_v10 = vpop.permute.xlu0 %2628 }
 0x873   :  { %v2637_v63 = vpop.permute.xlu1 %2636  ;;  %v2647_v36 = vsel %vm2640_vm4, %v2621_v8, %v2629_v10 }
 0x874   :  { %v2655_v11 = vsel %vm2640_vm4, %v2637_v63, %v2613_v5  ;;  %v2643_v46 = vsel %vm2640_vm4, %v2629_v10, %v2637_v63 }
 0x876   :  { %v5431_v21 = vpop.permute.xlu0 %2543 }
 0x877   :  { %v5433_v0 = vpop.permute.xlu1 %2551 }
 0x878   :  { %v2582_v8 = vsel %vm2571_vm9, %v5431_v21, %v5433_v0 }
 0x87a   :  { %v5435_v57 = vpop.permute.xlu0 %2559 }
 0x87b   :  { %v5437_v58 = vpop.permute.xlu1 %2567 }
 0x87c   :  { %v2574_v63 = vsel %vm2571_vm9, %v5435_v57, %v5437_v58 }
 0x87e   :  { %v2615_v27 = vpop.permute.xlu0 %2614 }
 0x87f   :  { %v2623_v42 = vpop.permute.xlu1 %2622 }
 0x880   :  { %v2652_v16 = vsel %vm2640_vm4, %v2615_v27, %v2623_v42 }
 0x882   :  { %v2631_v38 = vpop.permute.xlu0 %2630 }
 0x883   :  { %v2648_v26 = vsel %vm2640_vm4, %v2623_v42, %v2631_v38  ;;  %v2639_v6 = vpop.permute.xlu1 %2638 }
 0x884   :  { %v2644_v55 = vsel %vm2640_vm4, %v2631_v38, %v2639_v6  ;;  %v2656_v49 = vsel %vm2640_vm4, %v2639_v6, %v2615_v27  ;;  %3677 = vmatprep.subr.msk.mxu0 %vm2605_vm3, %v2648_v26  ;;  %v2586_v27 = vsel %vm2571_vm9, %v5437_v58, %v5431_v21  ;;  %v2578_v38 = vsel %vm2571_vm9, %v5433_v0, %v5435_v57 }
 0x885   :  { %3678 = vmatpush1.msk.msra.mxu0 %vm2604_vm5, %v2652_v16  ;;  %3697 = vmatprep.subr.msk.mxu1 %vm2607_vm6, %v2656_v49  ;;  %v3669_v49 = vld [vmem:[%s5795_s5 + $0x60] sm:$0xff] }
 0x886   :  { %3679 = vmatprep.subr.msk.mxu0 %vm2605_vm3, %v2647_v36  ;;  %v5466_v34 = vpop.permute.xlu0 %2541  ;;  %3698 = vmatpush1.msk.msra.mxu1 %vm2606_vm7, %v2644_v55 }
 0x887   :  { %3680 = vmatpush1.msk.msra.mxu0 %vm2604_vm5, %v2651_v9  ;;  %v5476_v4 = vpop.permute.xlu1 %2549  ;;  %3699 = vmatprep.subr.msk.mxu1 %vm2607_vm6, %v2655_v11 }
 0x888   :  { %3681 = vmatprep.subr.msk.mxu0 %vm2605_vm3, %v2646_v50  ;;  %3700 = vmatpush1.msk.msra.mxu1 %vm2606_vm7, %v2643_v46  ;;  %v2581_v26 = vsel %vm2571_vm9, %v5466_v34, %v5476_v4 }
 0x889   :  { %3682 = vmatpush1.msk.msra.mxu0 %vm2604_vm5, %v2650_v30  ;;  %3701 = vmatprep.subr.msk.mxu1 %vm2607_vm6, %v2654_v43 }
 0x88a   :  { %3683 = vmatprep.subr.msk.mxu0 %vm2605_vm3, %v2645_v32  ;;  %v2546_v15 = vpop.permute.xlu0 %2545  ;;  %3702 = vmatpush1.msk.msra.mxu1 %vm2606_vm7, %v2642_v61 }
 0x88b   :  { %3684 = vmatpush1.msk.msra.mxu0 %vm2604_vm5, %v2649_v62  ;;  %v2566_v47 = vpop.permute.xlu1 %2565  ;;  %3703 = vmatprep.subr.msk.mxu1 %vm2607_vm6, %v2653_v28 }
 0x88c   :  { %2731 = vmatprep.subr.mxu0 %v5349_v19  ;;  %3704 = vmatpush1.msk.msra.mxu1 %vm2606_vm7, %v2641_v44  ;;  %v2585_v21 = vsel %vm2571_vm9, %v2566_v47, %v5466_v34 }
 0x88d   :  { %2732 = vmatpush1.msra.mxu0 %v5345_v33  ;;  %2820 = vmatprep.subr.mxu1 %v5359_v7 }
 0x88e   :  { %2733 = vmatprep.subr.mxu0 %v5313_v35  ;;  %v2562_v1 = vpop.permute.xlu0 %2561  ;;  %2821 = vmatpush1.msra.mxu1 %v5356_v41 }
 0x88f   :  { %2734 = vmatpush1.msra.mxu0 %v5309_v20  ;;  %v2554_v60 = vpop.permute.xlu1 %2553  ;;  %2822 = vmatprep.subr.mxu1 %v5325_v13 }
 0x890   :  { %2735 = vmatprep.subr.mxu0 %v5285_v51  ;;  %2823 = vmatpush1.msra.mxu1 %v5321_v40  ;;  %v2583_v53 = vsel %vm2571_vm9, %v2546_v15, %v2554_v60  ;;  %v2579_v10 = vsel %vm2571_vm9, %v2554_v60, %v2562_v1 }
 0x891   :  { %2736 = vmatpush1.msra.mxu0 %v5279_v14  ;;  %2824 = vmatprep.subr.mxu1 %v5301_v37 }
 0x892   :  { %2737 = vmatprep.subr.mxu0 %v5253_v2  ;;  %v2558_v24 = vpop.permute.xlu0 %2557  ;;  %2825 = vmatpush1.msra.mxu1 %v5296_v39 }
 0x893   :  { %2738 = vmatpush1.msra.mxu0 %v5250_v31  ;;  %v2570_v29 = vpop.permute.xlu1 %2569  ;;  %2826 = vmatprep.subr.mxu1 %v5267_v17  ;;  %v2573_v58 = vsel %vm2571_vm9, %v2558_v24, %v2566_v47  ;;  %v2577_v57 = vsel %vm2571_vm9, %v5476_v4, %v2558_v24 }
 0x894   :  { %v2575_v23 = vsel %vm2571_vm9, %v2562_v1, %v2570_v29  ;;  %v2587_v5 = vsel %vm2571_vm9, %v2570_v29, %v2546_v15  ;;  %3685 = vmatprep.subr.msk.mxu0 %vm2536_vm8, %v2583_v53  ;;  %2827 = vmatpush1.msra.mxu1 %v5262_v59 }
 0x895   :  { %3686 = vmatpush1.msk.msra.mxu0 %vm2535_vm10, %v2587_v5  ;;  %3705 = vmatprep.subr.msk.mxu1 %vm2538_vm12, %v2575_v23 }
 0x896   :  { %v2540_v42 = vpop.permute.xlu0 %2539  ;;  %3687 = vmatprep.subr.msk.mxu0 %vm2536_vm8, %v2582_v8  ;;  %3706 = vmatpush1.msk.msra.mxu1 %vm2537_vm13, %v2579_v10 }
 0x897   :  { %v2548_v6 = vpop.permute.xlu1 %2547  ;;  %3688 = vmatpush1.msk.msra.mxu0 %vm2535_vm10, %v2586_v27  ;;  %3707 = vmatprep.subr.msk.mxu1 %vm2538_vm12, %v2574_v63 }
 0x898   :  { %v2580_v0 = vsel %vm2571_vm9, %v2540_v42, %v2548_v6  ;;  %3689 = vmatprep.subr.msk.mxu0 %vm2536_vm8, %v2581_v26  ;;  %3708 = vmatpush1.msk.msra.mxu1 %vm2537_vm13, %v2578_v38 }
 0x899   :  { %3690 = vmatpush1.msk.msra.mxu0 %vm2535_vm10, %v2585_v21  ;;  %3709 = vmatprep.subr.msk.mxu1 %vm2538_vm12, %v2573_v58 }
 0x89a   :  { %v2556_v16 = vpop.permute.xlu0 %2555  ;;  %3691 = vmatprep.subr.msk.mxu0 %vm2536_vm8, %v2580_v0  ;;  %3710 = vmatpush1.msk.msra.mxu1 %vm2537_vm13, %v2577_v57 }
 0x89b   :  { %v2564_v55 = vpop.permute.xlu1 %2563  ;;  %v2576_v11 = vsel %vm2571_vm9, %v2548_v6, %v2556_v16 }
 0x89c   :  { %v2572_v36 = vsel %vm2571_vm9, %v2556_v16, %v2564_v55  ;;  %v2584_v9 = vsel %vm2571_vm9, %v2564_v55, %v2540_v42 }
 0x89d   :  { %3692 = vmatpush1.msk.msra.mxu0 %vm2535_vm10, %v2584_v9  ;;  %3711 = vmatprep.subr.msk.mxu1 %vm2538_vm12, %v2572_v36 }
 0x89e   :  { %3693 = vmatmul.mubr.msk.f32.vlgmr.msra.gmra.mxu0 %vm486_vm11, %v3669_v49  ;;  %3712 = vmatpush1.msk.msra.mxu1 %vm2537_vm13, %v2576_v11 }
 0x89f   :  { %3713 = vmatmul.mubr.msk.f32.vlgmr.msra.gmra.mxu1 %vm486_vm11, %v3669_v49  ;;  %2785 = vmatprep.mubr.f32.mxu0 %v3757_v3 }
 0x8a0   :  { %2874 = vmatprep.mubr.f32.mxu1 %v3757_v3 }
 0x8a2   :  { %3694 = vmatmul.mubr.msk.f32.gmra.mxu0 %vm486_vm11, %v3670_v45 }
 0x8a3   :  { %3714 = vmatmul.mubr.msk.f32.gmra.mxu1 %vm486_vm11, %v3670_v45  ;;  %2791 = vmatprep.mubr.f32.mxu0 %v3757_v3 }
 0x8a4   :  { %2880 = vmatprep.mubr.f32.mxu1 %v3757_v3 }
 0x8a6   :  { %3695 = vmatmul.mubr.msk.f32.gmra.mxu0 %vm486_vm11, %v3671_v48 }
 0x8a7   :  { %3715 = vmatmul.mubr.msk.f32.gmra.mxu1 %vm486_vm11, %v3671_v48  ;;  %2797 = vmatprep.mubr.f32.mxu0 %v3757_v3  ;;  %v2701_v62 = vpop.permute.xlu0 %2700 }
 0x8a8   :  { %2886 = vmatprep.mubr.f32.mxu1 %v3757_v3  ;;  %v2696_v44 = vpop.permute.xlu1 %2695 }
 0x8aa   :  { %3696 = vmatmul.mubr.msk.f32.gmra.mxu0 %vm486_vm11, %v3672_v52 }
 0x8ab   :  { %3716 = vmatmul.mubr.msk.f32.gmra.mxu1 %vm486_vm11, %v3672_v52  ;;  %3015 = vmatprep.mubr.f32.mxu0 %v3757_v3  ;;  %v2691_v8 = vpop.permute.xlu0 %2690 }
 0x8ac   :  { %3104 = vmatprep.mubr.f32.mxu1 %v3757_v3  ;;  %v2686_v6 = vpop.permute.xlu1 %2685 }
 0x95e   :  { %v2781_v54 = vpop.f32.mrf.mxu0 }
 0x95f   :  { %v2870_v56 = vpop.f32.mrf.mxu1  ;;  %v2782_v9 = vadd.f32 %v2781_v54, %v2686_v6 }
 0x960   :  { %v2783_v34 = vpop.f32.mrf.mxu0  ;;  %v2871_v52 = vadd.f32 %v2870_v56, %v2686_v6  ;;  %v3717_v56 = vld [vmem:[%s5796_s7 + $0x60] sm:$0xff] }
 0x961   :  { %v2872_v50 = vpop.f32.mrf.mxu1  ;;  %v2784_v16 = vadd.f32 %v2783_v34, %v2686_v6 }
 0x962   :  { %v2787_v46 = vpop.f32.mrf.mxu0  ;;  %v2873_v11 = vadd.f32 %v2872_v50, %v2686_v6  ;;  %v2895_v50 = vmax.f32 %v2871_v52, 0.0 }
 0x963   :  { %v2876_v4 = vpop.f32.mrf.mxu1  ;;  %v2788_v21 = vadd.f32 %v2787_v46, %v2691_v8  ;;  %v2894_v34 = vmax.f32 %v2784_v16, 0.0 }
 0x964   :  { %v2789_v30 = vpop.f32.mrf.mxu0  ;;  %v2877_v55 = vadd.f32 %v2876_v4, %v2691_v8  ;;  %v2896_v54 = vmax.f32 %v2873_v11, 0.0 }
 0x965   :  { %v2878_v43 = vpop.f32.mrf.mxu1  ;;  %v2790_v42 = vadd.f32 %v2789_v30, %v2691_v8  ;;  %v2897_v46 = vmax.f32 %v2788_v21, 0.0 }
 0x966   :  { %v2793_v32 = vpop.f32.mrf.mxu0  ;;  %v2879_v58 = vadd.f32 %v2878_v43, %v2691_v8  ;;  %v2899_v4 = vmax.f32 %v2877_v55, 0.0 }
 0x967   :  { %v2882_v61 = vpop.f32.mrf.mxu1  ;;  %v2794_v10 = vadd.f32 %v2793_v32, %v2696_v44  ;;  %v2898_v30 = vmax.f32 %v2790_v42, 0.0 }
 0x968   :  { %v2795_v28 = vpop.f32.mrf.mxu0  ;;  %v2883_v38 = vadd.f32 %v2882_v61, %v2696_v44  ;;  %v2900_v43 = vmax.f32 %v2879_v58, 0.0  ;;  %v2893_v61 = vmax.f32 %v2782_v9, 0.0 }
 0x969   :  { %v2884_v15 = vpop.f32.mrf.mxu1  ;;  %v2796_v53 = vadd.f32 %v2795_v28, %v2696_v44  ;;  %v2901_v45 = vmax.f32 %v2794_v10, 0.0  ;;  %v3719_v28 = vld [vmem:[%s5796_s7 + $0x70] sm:$0xff] }
 0x96a   :  { %v2799_v47 = vpop.f32.mrf.mxu0  ;;  %v2885_v63 = vadd.f32 %v2884_v15, %v2696_v44  ;;  %v2903_v32 = vmax.f32 %v2883_v38, 0.0  ;;  %v3720_v15 = vld [vmem:[%s5796_s7 + $0x78] sm:$0xff]  ;;  %v2932_v44 = vpop.permute.xlu1 %2931 }
 0x96b   :  { %v2888_v1 = vpop.f32.mrf.mxu1  ;;  %v2800_v60 = vadd.f32 %v2799_v47, %v2701_v62  ;;  %v2902_v49 = vmax.f32 %v2796_v53, 0.0 }
 0x96c   :  { %v2801_v24 = vpop.f32.mrf.mxu0  ;;  %v2889_v29 = vadd.f32 %v2888_v1, %v2701_v62  ;;  %v2904_v48 = vmax.f32 %v2885_v63, 0.0  ;;  %v5665_v1 = vpop.permute.xlu0 %2936 }
 0x96d   :  { %v2802_v23 = vadd.f32 %v2801_v24, %v2701_v62  ;;  %v2890_v5 = vpop.f32.mrf.mxu1  ;;  %v2905_v0 = vmax.f32 %v2800_v60, 0.0 }
 0x96e   :  { %v2891_v27 = vadd.f32 %v2890_v5, %v2701_v62  ;;  %v2907_v36 = vmax.f32 %v2889_v29, 0.0  ;;  %v3718_v62 = vld [vmem:[%s5796_s7 + $0x68] sm:$0xff]  ;;  %v2922_v47 = vpop.permute.xlu1 %2921 }
 0x96f   :  { %v2906_v26 = vmax.f32 %v2802_v23, 0.0 }
 0x970   :  { %v2908_v57 = vmax.f32 %v2891_v27, 0.0  ;;  %v2927_v24 = vpop.permute.xlu0 %2926 }
 0x971   :  { %2975 = vmatprep.subr.mxu0 %v2906_v26 }
 0x972   :  { %2976 = vmatpush1.msra.mxu0 %v2905_v0  ;;  %3064 = vmatprep.subr.mxu1 %v2908_v57  ;;  %v5667_v60 = vpop.permute.xlu1 %3178 }
 0x973   :  { %2977 = vmatprep.subr.mxu0 %v2902_v49  ;;  %3065 = vmatpush1.msra.mxu1 %v2907_v36 }
 0x974   :  { %2978 = vmatpush1.msra.mxu0 %v2901_v45  ;;  %3066 = vmatprep.subr.mxu1 %v2904_v48  ;;  %v5671_v21 = vpop.permute.xlu0 %3183 }
 0x975   :  { %2979 = vmatprep.subr.mxu0 %v2898_v30  ;;  %3067 = vmatpush1.msra.mxu1 %v2903_v32 }
 0x976   :  { %2980 = vmatpush1.msra.mxu0 %v2897_v46  ;;  %3068 = vmatprep.subr.mxu1 %v2900_v43  ;;  %v5669_v53 = vpop.permute.xlu1 %3173 }
 0x977   :  { %2981 = vmatprep.subr.mxu0 %v2894_v34  ;;  %3069 = vmatpush1.msra.mxu1 %v2899_v4 }
 0x978   :  { %2982 = vmatpush1.msra.mxu0 %v2893_v61  ;;  %3070 = vmatprep.subr.mxu1 %v2896_v54  ;;  %v5675_v54 = vpop.permute.xlu0 %3224 }
 0x979   :  { %3725 = vmatmul.mubr.msk.f32.vlgmr.msra.gmra.mxu0 %vm127_vm0, %v3717_v56  ;;  %3071 = vmatpush1.msra.mxu1 %v2895_v50 }
 0x97a   :  { %3729 = vmatmul.mubr.msk.f32.vlgmr.msra.gmra.mxu1 %vm127_vm0, %v3717_v56  ;;  %3021 = vmatprep.mubr.f32.mxu0 %v3757_v3  ;;  %v3169_v16 = vpop.permute.xlu1 %3168 }
 0x97b   :  { %3110 = vmatprep.mubr.f32.mxu1 %v3757_v3 }
 0x97d   :  { %3726 = vmatmul.mubr.msk.f32.gmra.mxu0 %vm127_vm0, %v3718_v62 }
 0x97e   :  { %3730 = vmatmul.mubr.msk.f32.gmra.mxu1 %vm127_vm0, %v3718_v62  ;;  %3027 = vmatprep.mubr.f32.mxu0 %v3757_v3 }
 0x97f   :  { %3116 = vmatprep.mubr.f32.mxu1 %v3757_v3 }
 0x981   :  { %3727 = vmatmul.mubr.msk.f32.gmra.mxu0 %vm127_vm0, %v3719_v28 }
 0x982   :  { %3731 = vmatmul.mubr.msk.f32.gmra.mxu1 %vm127_vm0, %v3719_v28  ;;  %3033 = vmatprep.mubr.f32.mxu0 %v3757_v3  ;;  %v5678_v28 = vpop.permute.xlu1 %3209 }
 0x983   :  { %3122 = vmatprep.mubr.f32.mxu1 %v3757_v3 }
 0x985   :  { %3728 = vmatmul.mubr.msk.f32.gmra.mxu0 %vm127_vm0, %v3720_v15 }
 0x986   :  { %3732 = vmatmul.mubr.msk.f32.gmra.mxu1 %vm127_vm0, %v3720_v15  ;;  %3359 = vmatprep.mubr.f32.mxu0 %v3757_v3 }
 0x987   :  { %3436 = vmatprep.mubr.f32.mxu1 %v3757_v3 }
 0xa39   :  { %v3017_v29 = vpop.f32.mrf.mxu0 }
 0xa3a   :  { %v3018_v23 = vadd.f32 %v3017_v29, %v2922_v47  ;;  %v3106_v5 = vpop.f32.mrf.mxu1 }
 0xa3b   :  { %v3107_v8 = vadd.f32 %v3106_v5, %v2922_v47  ;;  %v3019_v10 = vpop.f32.mrf.mxu0 }
 0xa3c   :  { %v3129_v63 = vmul.f32 0.2, %v3018_v23  ;;  %v3020_v27 = vadd.f32 %v3019_v10, %v2922_v47  ;;  %v3108_v42 = vpop.f32.mrf.mxu1 }
 0xa3d   :  { %v3131_v38 = vmul.f32 0.2, %v3107_v8  ;;  %v3109_v26 = vadd.f32 %v3108_v42, %v2922_v47  ;;  %v3023_v6 = vpop.f32.mrf.mxu0 }
 0xa3e   :  { %v3145_v58 = vmax.f32 %v3018_v23, %v3129_v63  ;;  %v3130_v0 = vmul.f32 0.2, %v3020_v27  ;;  %v3112_v57 = vpop.f32.mrf.mxu1  ;;  %v3024_v49 = vadd.f32 %v3023_v6, %v2927_v24 }
 0xa3f   :  { %v3147_v55 = vmax.f32 %v3107_v8, %v3131_v38  ;;  %v3025_v36 = vpop.f32.mrf.mxu0  ;;  %v3132_v9 = vmul.f32 0.2, %v3109_v26  ;;  %v5673_v11 = vadd.f32 %v3112_v57, %v2927_v24 }
 0xa40   :  { %v3114_v45 = vpop.f32.mrf.mxu1  ;;  %v3026_v48 = vadd.f32 %v3025_v36, %v2927_v24  ;;  %v3186_v32 = vmul.f32 %v3169_v16, %v3145_v58  ;;  %v3146_v46 = vmax.f32 %v3020_v27, %v3130_v0  ;;  %v3133_v4 = vmul.f32 0.2, %v3024_v49 }
 0xa41   :  { %v3115_v52 = vadd.f32 %v3114_v45, %v2927_v24  ;;  %v3029_v30 = vpop.f32.mrf.mxu0  ;;  %v3188_v34 = vmul.f32 %v3169_v16, %v3147_v55  ;;  %v3148_v56 = vmax.f32 %v3109_v26, %v3132_v9  ;;  %v3135_v50 = vmul.f32 0.2, %v5673_v11 }
 0xa42   :  { %v3118_v43 = vpop.f32.mrf.mxu1  ;;  %v3134_v15 = vmul.f32 0.2, %v3026_v48  ;;  %v5681_v24 = vadd.f32 %v5678_v28, %v3186_v32  ;;  %v3187_v23 = vmul.f32 %v3169_v16, %v3146_v46  ;;  %v3030_v5 = vadd.f32 %v3029_v30, %v2932_v44  ;;  %v3220_v30 = vpop.permute.xlu0 %3219 }
 0xa43   :  { %v3031_v61 = vpop.f32.mrf.mxu0  ;;  %v3136_v47 = vmul.f32 0.2, %v3115_v52  ;;  %v3119_v8 = vadd.f32 %v3118_v43, %v2932_v44  ;;  %v5684_v63 = vadd.f32 %v5678_v28, %v3188_v34  ;;  %v3149_v27 = vmax.f32 %v3024_v49, %v3133_v4 }
 0xa44   :  { %v3120_v62 = vpop.f32.mrf.mxu1  ;;  %v3032_v42 = vadd.f32 %v3031_v61, %v2932_v44  ;;  %v3189_v26 = vmul.f32 %v3169_v16, %v3148_v56  ;;  %v3151_v6 = vmax.f32 %v5673_v11, %v3135_v50  ;;  %v3137_v58 = vmul.f32 0.2, %v3030_v5 }
 0xa45   :  { %v3035_v29 = vpop.f32.mrf.mxu0  ;;  %v3121_v38 = vadd.f32 %v3120_v62, %v2932_v44  ;;  %v3139_v0 = vmul.f32 0.2, %v3119_v8  ;;  %v3150_v36 = vmax.f32 %v3026_v48, %v3134_v15  ;;  %v3152_v9 = vmax.f32 %v3115_v52, %v3136_v47 }
 0xa46   :  { %v3124_v10 = vpop.f32.mrf.mxu1  ;;  %v3138_v45 = vmul.f32 0.2, %v3032_v42  ;;  %v3153_v46 = vmax.f32 %v3030_v5, %v3137_v58  ;;  %v3036_v34 = vadd.f32 %v3035_v29, %v5665_v1  ;;  %v3228_v61 = vadd.f32 %v5678_v28, %v3187_v23 }
 0xa47   :  { %v3037_v57 = vpop.f32.mrf.mxu0  ;;  %v3140_v32 = vmul.f32 0.2, %v3121_v38  ;;  %v3155_v43 = vmax.f32 %v3119_v8, %v3139_v0  ;;  %v3125_v49 = vadd.f32 %v3124_v10, %v5665_v1  ;;  %v3190_v48 = vmul.f32 %v5669_v53, %v3149_v27 }
 0xa48   :  { %v3126_v55 = vpop.f32.mrf.mxu1  ;;  %v3154_v4 = vmax.f32 %v3032_v42, %v3138_v45  ;;  %v3038_v16 = vadd.f32 %v3037_v57, %v5665_v1  ;;  %v3141_v52 = vmul.f32 0.2, %v3036_v34  ;;  %v3194_v29 = vmul.f32 %v5667_v60, %v3153_v46 }
 0xa49   :  { %v3156_v44 = vmax.f32 %v3121_v38, %v3140_v32  ;;  %v3127_v11 = vadd.f32 %v3126_v55, %v5665_v1  ;;  %v3143_v56 = vmul.f32 0.2, %v3125_v49  ;;  %v3196_v5 = vmul.f32 %v5667_v60, %v3155_v43  ;;  %v3215_v38 = vpop.permute.xlu0 %3214 }
 0xa4a   :  { %v3195_v50 = vmul.f32 %v5667_v60, %v3154_v4  ;;  %v3142_v15 = vmul.f32 0.2, %v3038_v16  ;;  %v3157_v8 = vmax.f32 %v3036_v34, %v3141_v52  ;;  %v3191_v1 = vmul.f32 %v5669_v53, %v3150_v36 }
 0xa4b   :  { %v3197_v62 = vmul.f32 %v5667_v60, %v3156_v44  ;;  %v3144_v47 = vmul.f32 0.2, %v3127_v11  ;;  %v3159_v10 = vmax.f32 %v3125_v49, %v3143_v56  ;;  %v3193_v23 = vmul.f32 %v5669_v53, %v3152_v9 }
 0xa4c   :  { %v3158_v42 = vmax.f32 %v3038_v16, %v3142_v15  ;;  %v3192_v58 = vmul.f32 %v5669_v53, %v3151_v6  ;;  %v3236_v0 = vadd.f32 %v3220_v30, %v3195_v50  ;;  %v3198_v57 = vmul.f32 %v5671_v21, %v3157_v8 }
 0xa4d   :  { %v3160_v27 = vmax.f32 %v3127_v11, %v3144_v47  ;;  %v3200_v55 = vmul.f32 %v5671_v21, %v3159_v10  ;;  %v3231_v45 = vadd.f32 %v3215_v38, %v3190_v48  ;;  %v3238_v32 = vadd.f32 %v3220_v30, %v3197_v62  ;;  %v3275_v47 = vld [vmem:[%s5799_s11] sm:$0xff]  ;;  %v3282_v8 = vpop.permute.xlu0 %3281 }
 0xa4e   :  { %v3199_v60 = vmul.f32 %v5671_v21, %v3158_v42  ;;  %v3235_v43 = vadd.f32 %v3220_v30, %v3194_v29  ;;  %v3237_v36 = vadd.f32 %v3220_v30, %v3196_v5  ;;  %v3239_v9 = vadd.f32 %v5675_v54, %v3198_v57  ;;  %v3276_v5 = vld [vmem:[%s5799_s11 + $0x8] sm:$0xff] }
 0xa4f   :  { %v3201_v46 = vmul.f32 %v5671_v21, %v3160_v27  ;;  %v3241_v34 = vadd.f32 %v5675_v54, %v3200_v55  ;;  %v3232_v49 = vadd.f32 %v3215_v38, %v3191_v1  ;;  %v3234_v4 = vadd.f32 %v3215_v38, %v3193_v23 }
 0xa50   :  { %v3240_v53 = vadd.f32 %v5675_v54, %v3199_v60  ;;  %v3233_v44 = vadd.f32 %v3215_v38, %v3192_v58  ;;  %v3255_v16 = vadd.f32 %v3239_v9, %v5345_v33  ;;  %v3252_v48 = vadd.f32 %v3236_v0, %v5313_v35  ;;  %v3287_v58 = vpop.permute.xlu1 %3286 }
 0xa51   :  { %v3242_v6 = vadd.f32 %v5675_v54, %v3201_v46  ;;  %v3257_v11 = vadd.f32 %v3241_v34, %v5356_v41  ;;  %v3230_v21 = vadd.f32 %v5678_v28, %v3189_v26  ;;  %v3254_v56 = vadd.f32 %v3238_v32, %v5325_v13 }
 0xa52   :  { %v3256_v30 = vadd.f32 %v3240_v53, %v5349_v19  ;;  %v3243_v50 = vadd.f32 %v5681_v24, %v5250_v31  ;;  %v3247_v54 = vadd.f32 %v3231_v45, %v5279_v14  ;;  %v3251_v62 = vadd.f32 %v3235_v43, %v5309_v20 }
 0xa53   :  { %v3258_v52 = vadd.f32 %v3242_v6, %v5359_v7  ;;  %v3253_v33 = vadd.f32 %v3237_v36, %v5321_v40  ;;  %v3248_v28 = vadd.f32 %v3232_v49, %v5285_v51  ;;  %v3250_v19 = vadd.f32 %v3234_v4, %v5301_v37 }
 0xa54   :  { %v3272_v41 = vmul.f32 %v3256_v30, %v4365_v25  ;;  %v3249_v7 = vadd.f32 %v3233_v44, %v5296_v39  ;;  %v3271_v13 = vmul.f32 %v3255_v16, %v4369_v18  ;;  %v3268_v31 = vmul.f32 %v3252_v48, %v4365_v25 }
 0xa55   :  { %v3274_v35 = vmul.f32 %v3258_v52, %v4379_v22  ;;  %v3273_v14 = vmul.f32 %v3257_v11, %v4383_v12  ;;  %v3270_v20 = vmul.f32 %v3254_v56, %v4379_v22  ;;  %v3244_v40 = vadd.f32 %v3228_v61, %v5253_v2 }
 0xa56   :  { %3319 = vmatprep.subr.mxu0 %v3272_v41  ;;  %v3246_v24 = vadd.f32 %v3230_v21, %v5267_v17  ;;  %v3245_v51 = vadd.f32 %v5684_v63, %v5262_v59  ;;  %v3267_v39 = vmul.f32 %v3251_v62, %v4369_v18  ;;  %v3269_v37 = vmul.f32 %v3253_v33, %v4383_v12 }
 0xa57   :  { %3396 = vmatprep.subr.mxu1 %v3274_v35  ;;  %3320 = vmatpush1.msra.mxu0 %v3271_v13  ;;  %v3264_v26 = vmul.f32 %v3248_v28, %v4365_v25  ;;  %v3266_v15 = vmul.f32 %v3250_v19, %v4379_v22  ;;  %v3263_v2 = vmul.f32 %v3247_v54, %v4369_v18 }
 0xa58   :  { %3397 = vmatpush1.msra.mxu1 %v3273_v14  ;;  %3321 = vmatprep.subr.mxu0 %v3268_v31  ;;  %v3265_v17 = vmul.f32 %v3249_v7, %v4383_v12  ;;  %v3260_v59 = vmul.f32 %v3244_v40, %v4365_v25  ;;  %v3262_v63 = vmul.f32 %v3246_v24, %v4379_v22 }
 0xa59   :  { %3398 = vmatprep.subr.mxu1 %v3270_v20  ;;  %3322 = vmatpush1.msra.mxu0 %v3267_v39  ;;  %v3259_v61 = vmul.f32 %v3243_v50, %v4369_v18  ;;  %v3261_v29 = vmul.f32 %v3245_v51, %v4383_v12 }
 0xa5a   :  { %3399 = vmatpush1.msra.mxu1 %v3269_v37  ;;  %3323 = vmatprep.subr.mxu0 %v3264_v26 }
 0xa5b   :  { %3400 = vmatprep.subr.mxu1 %v3266_v15  ;;  %3324 = vmatpush1.msra.mxu0 %v3263_v2 }
 0xa5c   :  { %3401 = vmatpush1.msra.mxu1 %v3265_v17  ;;  %3325 = vmatprep.subr.mxu0 %v3260_v59 }
 0xa5d   :  { %3402 = vmatprep.subr.mxu1 %v3262_v63  ;;  %3326 = vmatpush1.msra.mxu0 %v3259_v61 }
 0xa5e   :  { %3403 = vmatpush1.msra.mxu1 %v3261_v29  ;;  %3741 = vmatmul.mubr.msk.f32.vlgmr.msra.gmra.mxu0 %vm127_vm0, %v3275_v47 }
 0xa5f   :  { %3743 = vmatmul.mubr.msk.f32.vlgmr.msra.gmra.mxu1 %vm127_vm0, %v3275_v47  ;;  %3365 = vmatprep.mubr.f32.mxu0 %v3757_v3 }
 0xa60   :  { %3442 = vmatprep.mubr.f32.mxu1 %v3757_v3 }
 0xa62   :  { %3742 = vmatmul.mubr.msk.f32.gmra.mxu0 %vm127_vm0, %v3276_v5 }
 0xa63   :  { %3744 = vmatmul.mubr.msk.f32.gmra.mxu1 %vm127_vm0, %v3276_v5 }
 0xb1e   :  { %v3361_v10 = vpop.f32.mrf.mxu0 }
 0xb1f   :  { %v3438_v1 = vpop.f32.mrf.mxu1  ;;  %v3362_v23 = vadd.f32 %v3361_v10, %v3282_v8 }
 0xb20   :  { %v3439_v42 = vadd.f32 %v3438_v1, %v3282_v8  ;;  %v3363_v27 = vpop.f32.mrf.mxu0 }
 0xb21   :  { %v3440_v38 = vpop.f32.mrf.mxu1  ;;  %v3449_v0 = vmul.f32 %v3362_v23, %v4369_v18  ;;  %v3364_v55 = vadd.f32 %v3363_v27, %v3282_v8 }
 0xb22   :  { %v3451_v57 = vmul.f32 %v3439_v42, %v4383_v12  ;;  %v3441_v45 = vadd.f32 %v3440_v38, %v3282_v8  ;;  %v3367_v32 = vpop.f32.mrf.mxu0 }
 0xb23   :  { %v3444_v3 = vpop.f32.mrf.mxu1  ;;  %3457 = vst [vmem:[%s5800_s13] sm:$0xff] %v3449_v0  ;;  %v3450_v60 = vmul.f32 %v3364_v55, %v4365_v25  ;;  %v3368_v43 = vadd.f32 %v3367_v32, %v3287_v58 }
 0xb24   :  { %3459 = vst [vmem:[%s5800_s13 + $0x10] sm:$0xff] %v3451_v57  ;;  %v3452_v46 = vmul.f32 %v3441_v45, %v4379_v22  ;;  %v3445_v36 = vadd.f32 %v3444_v3, %v3287_v58  ;;  %v3369_v9 = vpop.f32.mrf.mxu0 }
 0xb25   :  { %v3446_v34 = vpop.f32.mrf.mxu1  ;;  %3458 = vst [vmem:[%s5800_s13 + $0x8] sm:$0xff] %v3450_v60  ;;  %v3453_v49 = vmul.f32 %v3368_v43, %v4369_v18  ;;  %v3370_v53 = vadd.f32 %v3369_v9, %v3287_v58 }
 0xb26   :  { %3460 = vst [vmem:[%s5800_s13 + $0x18] sm:$0xff] %v3452_v46  ;;  %v3455_v4 = vmul.f32 %v3445_v36, %v4383_v12  ;;  %v3447_v6 = vadd.f32 %v3446_v34, %v3287_v58 }
 0xb27   :  { %3461 = vst [vmem:[%s5800_s13 + $0x20] sm:$0xff] %v3453_v49  ;;  %v3454_v44 = vmul.f32 %v3370_v53, %v4365_v25 }
 0xb28   :  { %3463 = vst [vmem:[%s5800_s13 + $0x30] sm:$0xff] %v3455_v4  ;;  %v3456_v16 = vmul.f32 %v3447_v6, %v4379_v22 }
 0xb29   :  { %3462 = vst [vmem:[%s5800_s13 + $0x28] sm:$0xff] %v3454_v44 }
 0xb2a   :  { %3464 = vst [vmem:[%s5800_s13 + $0x38] sm:$0xff] %v3456_v16 }

</bundles_post_ra>
